<compile_context>
chip_gen: v5e
topology: v5e:2x2
jax: 0.10.0
libtpu: 0.0.40
codegen_flags: <defaults>
</compile_context>

<pallas_src>
import jax
import jax.numpy as jnp
from jax import lax
from jax.experimental import pallas as pl
from jax.experimental.pallas import tpu as pltpu

NEG_INF = -1e30
LN_EPS = 1e-5
H = 128            # per-head output width of the GATConv
N_HEADS = 2
F_IN = 256


def _layer_norm(x, gamma, beta):
    # Exact (biased-variance) LayerNorm in f32, matching torch.nn.LayerNorm.
    mean = jnp.mean(x, axis=-1, keepdims=True)
    xc = x - mean
    var = jnp.mean(xc * xc, axis=-1, keepdims=True)
    return xc * lax.rsqrt(var + LN_EPS) * gamma + beta


# -----------------------------------------------------------------------------
# Fused kernel: GATConv + ReLU + (Linear -> LayerNorm -> ReLU) x3 + Linear + cdist
# -----------------------------------------------------------------------------
def fused_gat_mlp_cdist_kernel(x_ref, adj_ref, wbig_ref, bias_ref,
                               wa_ref, ba_ref, ga_ref, bta_ref,
                               w1_ref, b1_ref, g1_ref, bt1_ref,
                               w2_ref, b2_ref, g2_ref, bt2_ref,
                               w3_ref, b3_ref,
                               out_ref):
    x = x_ref[...]                              # [N, 256] bf16
    n = x.shape[0]
    mask = adj_ref[...] > 0.0                   # computed once, reused per head

    # ---- GATConv(256, 128, heads=2, concat=True) ----
    # One bf16 MXU matmul produces both heads' projections AND the 4 attention
    # columns (W_big = [W_h0 | W_h1 | W_h0@a_src0 | W_h0@a_dst0 | W_h1@a_src1 | W_h1@a_dst1]).
    h_big = jnp.dot(x, wbig_ref[...], preferred_element_type=jnp.float32)  # [N, 260] f32
    scores = h_big[:, N_HEADS * H:N_HEADS * H + 2 * N_HEADS]               # [N, 4]

    # Accumulate the first Linear (densea) directly per head: no gat scratch.
    acc = jnp.zeros((n, 128), jnp.float32)
    for hd in range(N_HEADS):
        a_src = scores[:, 2 * hd:2 * hd + 1]        # [N, 1]
        a_dst = scores[:, 2 * hd + 1:2 * hd + 2]    # [N, 1]
        # e[i, j] = LeakyReLU(a_dst[i] + a_src[j], 0.2) over edges j -> i
        e = a_dst + jnp.transpose(a_src)            # [N, N] f32
        e = jnp.where(e > 0, e, 0.2 * e)
        e = jnp.where(mask, e, NEG_INF)             # single masking path
        e = e - jnp.max(e, axis=-1, keepdims=True)
        p = jnp.exp(e)                              # masked entries underflow to 0
        # Wrapper guarantees self loops, so every row sum is > 0.
        inv = pl.reciprocal(jnp.sum(p, axis=-1, keepdims=True), approx=True)
        alpha = (p * inv).astype(jnp.bfloat16)      # bf16 for the MXU
        h_hd = h_big[:, hd * H:(hd + 1) * H].astype(jnp.bfloat16)
        o_hd = jnp.dot(alpha, h_hd, preferred_element_type=jnp.float32)    # [N, 128]
        o_hd = jnp.maximum(o_hd + bias_ref[:, hd * H:(hd + 1) * H], 0.0)   # bias + ReLU
        # Per-head half of the densea matmul, accumulated in f32.
        acc = acc + jnp.dot(o_hd.astype(jnp.bfloat16),
                            wa_ref[hd * H:(hd + 1) * H, :],
                            preferred_element_type=jnp.float32)            # [N, 128]

    # ---- MLP: Linear -> LayerNorm -> ReLU (x3) -> Linear ----
    xa = jnp.maximum(_layer_norm(acc + ba_ref[...], ga_ref[...], bta_ref[...]), 0.0)

    x1 = jnp.dot(xa.astype(jnp.bfloat16), w1_ref[...],
                 preferred_element_type=jnp.float32) + b1_ref[...]
    x1 = jnp.maximum(_layer_norm(x1, g1_ref[...], bt1_ref[...]), 0.0)      # [N, 64]

    x2 = jnp.dot(x1.astype(jnp.bfloat16), w2_ref[...],
                 preferred_element_type=jnp.float32) + b2_ref[...]
    x2 = jnp.maximum(_layer_norm(x2, g2_ref[...], bt2_ref[...]), 0.0)      # [N, 32]

    x3 = jnp.dot(x2.astype(jnp.bfloat16), w3_ref[...],
                 preferred_element_type=jnp.float32) + b3_ref[...]         # [N, 3] f32

    # ---- cdist(x3, x3, p=2): d[i,j] = sqrt(|xi|^2 + |xj|^2 - 2 xi.xj) ----
    # Kept entirely in f32 (contracting dim is only 3; precision matters here).
    sq = jnp.sum(x3 * x3, axis=-1, keepdims=True)                          # [N, 1]
    gram = lax.dot_general(x3, x3, (((1,), (1,)), ((), ())),
                           preferred_element_type=jnp.float32)             # [N, N]
    d2 = jnp.maximum(sq + jnp.transpose(sq) - 2.0 * gram, 0.0)
    rows = lax.broadcasted_iota(jnp.int32, (n, n), 0)
    cols = lax.broadcasted_iota(jnp.int32, (n, n), 1)
    d2 = jnp.where(rows == cols, 0.0, d2)        # exact-zero diagonal (Gram fix)
    out_ref[...] = jnp.sqrt(d2)


# -----------------------------------------------------------------------------
# Wrapper
# -----------------------------------------------------------------------------
def gat_net_forward(x, adj, params):
    N = x.shape[0]
    inputs = (x.astype(jnp.bfloat16), adj.astype(jnp.bfloat16),
              params["conv_w_big"], params["conv_bias"],
              params["wa"], params["ba"], params["ga"], params["bta"],
              params["w1"], params["b1"], params["g1"], params["bt1"],
              params["w2"], params["b2"], params["g2"], params["bt2"],
              params["w3"], params["b3"])
    vmem = pl.BlockSpec(memory_space=pltpu.MemorySpace.VMEM)
    return pl.pallas_call(
        fused_gat_mlp_cdist_kernel,
        out_shape=jax.ShapeDtypeStruct((N, N), jnp.float32),
        in_specs=[vmem] * len(inputs),
        out_specs=vmem,
        compiler_params=pltpu.CompilerParams(vmem_limit_bytes=64 * 1024 * 1024),
    )(*inputs)


# -----------------------------------------------------------------------------
# Deterministic parameter / input construction
# -----------------------------------------------------------------------------
def _glorot(key, shape):
    fan_in, fan_out = shape[0], shape[-1]
    lim = (6.0 / (fan_in + fan_out)) ** 0.5
    return jax.random.uniform(key, shape, jnp.float32, -lim, lim)


def make_params(key):
    ks = jax.random.split(key, 10)
    # GATConv(256, 128, heads=2): per-head projection weights packed side by
    # side, with the 4 folded attention columns appended (scores = x @ (W @ a)).
    w_h0 = _glorot(ks[0], (F_IN, H))
    w_h1 = _glorot(ks[1], (F_IN, H))
    as0, ad0 = _glorot(ks[2], (H,)), _glorot(ks[3], (H,))
    as1, ad1 = _glorot(ks[4], (H,)), _glorot(ks[5], (H,))
    att_cols = jnp.stack([w_h0 @ as0, w_h0 @ ad0,
                          w_h1 @ as1, w_h1 @ ad1], axis=1)        # [256, 4]
    conv_w_big = jnp.concatenate([w_h0, w_h1, att_cols], axis=1)  # [256, 260]

    bf16 = jnp.bfloat16
    return dict(
        # MXU weights in bf16 (halves DMA, bf16-native MXU on all generations).
        conv_w_big=conv_w_big.astype(bf16),
        wa=_glorot(ks[6], (2 * H, 128)).astype(bf16),
        w1=_glorot(ks[7], (128, 64)).astype(bf16),
        w2=_glorot(ks[8], (64, 32)).astype(bf16),
        w3=_glorot(ks[9], (32, 3)).astype(bf16),
        # Biases and LayerNorm affine params stay f32 (elementwise / stats path).
        conv_bias=jnp.zeros((1, 2 * H), jnp.float32),
        ba=jnp.zeros((1, 128), jnp.float32),
        b1=jnp.zeros((1, 64), jnp.float32),
        b2=jnp.zeros((1, 32), jnp.float32),
        b3=jnp.zeros((1, 3), jnp.float32),
        ga=jnp.ones((1, 128), jnp.float32),  bta=jnp.zeros((1, 128), jnp.float32),
        g1=jnp.ones((1, 64), jnp.float32),   bt1=jnp.zeros((1, 64), jnp.float32),
        g2=jnp.ones((1, 32), jnp.float32),   bt2=jnp.zeros((1, 32), jnp.float32),
    )


def edge_index_to_dense_adj(edge_index, num_nodes):
    # PyG convention: edge_index[0] = source, edge_index[1] = target; messages
    # flow source -> target, softmax over sources per target. add_self_loops=True
    # (guarantees every softmax row has at least one unmasked entry).
    src, dst = edge_index[0], edge_index[1]
    adj = jnp.zeros((num_nodes, num_nodes), jnp.float32)
    adj = adj.at[dst, src].set(1.0)
    idx = jnp.arange(num_nodes)
    adj = adj.at[idx, idx].set(1.0)
    return adj


if __name__ == "__main__":
    N, E = 128, 512

    key = jax.random.PRNGKey(0)
    k_x, k_src, k_dst, k_par = jax.random.split(key, 4)

    x = jax.random.normal(k_x, (N, F_IN), jnp.float32)
    edge_index = jnp.stack([
        jax.random.randint(k_src, (E,), 0, N),
        jax.random.randint(k_dst, (E,), 0, N),
    ])
    adj = edge_index_to_dense_adj(edge_index, N)
    params = make_params(k_par)

    dist = jax.jit(gat_net_forward)(x, adj, params)
    dist = jax.block_until_ready(dist)

    assert dist.shape == (N, N)
    assert bool(jnp.all(jnp.isfinite(dist)))
    assert float(jnp.max(jnp.abs(jnp.diagonal(dist)))) < 1e-2  # cdist(x, x) diag = 0
    print("KERNEL_OK")
</pallas_src>

<mosaic_0001>
module attributes {stable_mosaic.version = 11 : i64} {
  func.func @fused_gat_mlp_cdist_kernel(%arg0: memref<128x256xbf16, #tpu.memory_space<vmem>>, %arg1: memref<128x128xbf16, #tpu.memory_space<vmem>>, %arg2: memref<256x260xbf16, #tpu.memory_space<vmem>>, %arg3: memref<1x256xf32, #tpu.memory_space<vmem>>, %arg4: memref<256x128xbf16, #tpu.memory_space<vmem>>, %arg5: memref<1x128xf32, #tpu.memory_space<vmem>>, %arg6: memref<1x128xf32, #tpu.memory_space<vmem>>, %arg7: memref<1x128xf32, #tpu.memory_space<vmem>>, %arg8: memref<128x64xbf16, #tpu.memory_space<vmem>>, %arg9: memref<1x64xf32, #tpu.memory_space<vmem>>, %arg10: memref<1x64xf32, #tpu.memory_space<vmem>>, %arg11: memref<1x64xf32, #tpu.memory_space<vmem>>, %arg12: memref<64x32xbf16, #tpu.memory_space<vmem>>, %arg13: memref<1x32xf32, #tpu.memory_space<vmem>>, %arg14: memref<1x32xf32, #tpu.memory_space<vmem>>, %arg15: memref<1x32xf32, #tpu.memory_space<vmem>>, %arg16: memref<32x3xbf16, #tpu.memory_space<vmem>>, %arg17: memref<1x3xf32, #tpu.memory_space<vmem>>, %arg18: memref<128x128xf32, #tpu.memory_space<vmem>>) attributes {dimension_semantics = [], scalar_prefetch = 0 : i64, scratch_operands = 0 : i64, tpu.core_type = #tpu.core_type<tc>} {
    %c0 = arith.constant 0 : index
    %c0_0 = arith.constant 0 : index
    %0 = vector.load %arg0[%c0, %c0_0] : memref<128x256xbf16, #tpu.memory_space<vmem>>, vector<128x256xbf16>
    %c0_1 = arith.constant 0 : index
    %c0_2 = arith.constant 0 : index
    %1 = vector.load %arg1[%c0_1, %c0_2] : memref<128x128xbf16, #tpu.memory_space<vmem>>, vector<128x128xbf16>
    %cst = arith.constant 0.000000e+00 : bf16
    %2 = vector.broadcast %cst : bf16 to vector<128x128xbf16>
    %3 = arith.cmpf ogt, %1, %2 : vector<128x128xbf16>
    %c0_3 = arith.constant 0 : index
    %c0_4 = arith.constant 0 : index
    %4 = vector.load %arg2[%c0_3, %c0_4] : memref<256x260xbf16, #tpu.memory_space<vmem>>, vector<256x260xbf16>
    %cst_5 = arith.constant dense<0.000000e+00> : vector<128x260xf32>
    %5 = tpu.matmul %0, %4, %cst_5 {dimension_numbers = #tpu.dot_dimension_numbers<[1], [0], [0], [1], [0, 0, 1, 1], [], []>} : vector<128x256xbf16>, vector<256x260xbf16>, vector<128x260xf32> -> vector<128x260xf32>
    %6 = vector.extract_strided_slice %5 {offsets = [0, 256], sizes = [128, 4], strides = [1, 1]} : vector<128x260xf32> to vector<128x4xf32>
    %cst_6 = arith.constant 0.000000e+00 : f32
    %7 = vector.broadcast %cst_6 : f32 to vector<128x128xf32>
    %8 = vector.extract_strided_slice %6 {offsets = [0, 0], sizes = [128, 1], strides = [1, 1]} : vector<128x4xf32> to vector<128x1xf32>
    %9 = vector.extract_strided_slice %6 {offsets = [0, 1], sizes = [128, 1], strides = [1, 1]} : vector<128x4xf32> to vector<128x1xf32>
    %10 = tpu.transpose %8, [1, 0] : vector<128x1xf32> -> vector<1x128xf32>
    %11 = vector.broadcast %9 : vector<128x1xf32> to vector<128x128xf32>
    %12 = vector.broadcast %10 : vector<1x128xf32> to vector<128x128xf32>
    %13 = arith.addf %11, %12 : vector<128x128xf32>
    %cst_7 = arith.constant 0.000000e+00 : f32
    %14 = vector.broadcast %cst_7 : f32 to vector<128x128xf32>
    %15 = arith.cmpf ogt, %13, %14 : vector<128x128xf32>
    %cst_8 = arith.constant 2.000000e-01 : f32
    %16 = vector.broadcast %cst_8 : f32 to vector<128x128xf32>
    %17 = arith.mulf %16, %13 : vector<128x128xf32>
    %18 = arith.select %15, %13, %17 : vector<128x128xi1>, vector<128x128xf32>
    %cst_9 = arith.constant -1.000000e+30 : f32
    %19 = vector.broadcast %cst_9 : f32 to vector<128x128xf32>
    %20 = arith.select %3, %18, %19 : vector<128x128xi1>, vector<128x128xf32>
    %cst_10 = arith.constant dense<0xFF800000> : vector<128xf32>
    %21 = vector.multi_reduction <maximumf>, %20, %cst_10 [1] : vector<128x128xf32> to vector<128xf32>
    %22 = vector.shape_cast %21 : vector<128xf32> to vector<128x1xf32>
    %23 = vector.broadcast %22 : vector<128x1xf32> to vector<128x128xf32>
    %24 = arith.subf %20, %23 : vector<128x128xf32>
    %25 = math.exp %24 : vector<128x128xf32>
    %cst_11 = arith.constant dense<0.000000e+00> : vector<128xf32>
    %26 = vector.multi_reduction <add>, %25, %cst_11 [1] : vector<128x128xf32> to vector<128xf32>
    %27 = vector.shape_cast %26 : vector<128xf32> to vector<128x1xf32>
    %28 = tpu.reciprocal %27 {approx = true} : vector<128x1xf32> -> vector<128x1xf32>
    %29 = vector.broadcast %28 : vector<128x1xf32> to vector<128x128xf32>
    %30 = arith.mulf %25, %29 : vector<128x128xf32>
    %31 = arith.truncf %30 : vector<128x128xf32> to vector<128x128xbf16>
    %32 = vector.extract_strided_slice %5 {offsets = [0, 0], sizes = [128, 128], strides = [1, 1]} : vector<128x260xf32> to vector<128x128xf32>
    %33 = arith.truncf %32 : vector<128x128xf32> to vector<128x128xbf16>
    %cst_12 = arith.constant dense<0.000000e+00> : vector<128x128xf32>
    %34 = tpu.matmul %31, %33, %cst_12 {dimension_numbers = #tpu.dot_dimension_numbers<[1], [0], [0], [1], [0, 0, 1, 1], [], []>} : vector<128x128xbf16>, vector<128x128xbf16>, vector<128x128xf32> -> vector<128x128xf32>
    %c0_13 = arith.constant 0 : index
    %c0_14 = arith.constant 0 : index
    %35 = vector.load %arg3[%c0_13, %c0_14] : memref<1x256xf32, #tpu.memory_space<vmem>>, vector<1x128xf32>
    %36 = vector.broadcast %35 : vector<1x128xf32> to vector<128x128xf32>
    %37 = arith.addf %34, %36 : vector<128x128xf32>
    %cst_15 = arith.constant 0.000000e+00 : f32
    %38 = vector.broadcast %cst_15 : f32 to vector<128x128xf32>
    %39 = arith.maximumf %37, %38 : vector<128x128xf32>
    %40 = arith.truncf %39 : vector<128x128xf32> to vector<128x128xbf16>
    %c0_16 = arith.constant 0 : index
    %c0_17 = arith.constant 0 : index
    %41 = vector.load %arg4[%c0_16, %c0_17] : memref<256x128xbf16, #tpu.memory_space<vmem>>, vector<128x128xbf16>
    %cst_18 = arith.constant dense<0.000000e+00> : vector<128x128xf32>
    %42 = tpu.matmul %40, %41, %cst_18 {dimension_numbers = #tpu.dot_dimension_numbers<[1], [0], [0], [1], [0, 0, 1, 1], [], []>} : vector<128x128xbf16>, vector<128x128xbf16>, vector<128x128xf32> -> vector<128x128xf32>
    %43 = arith.addf %7, %42 : vector<128x128xf32>
    %44 = vector.extract_strided_slice %6 {offsets = [0, 2], sizes = [128, 1], strides = [1, 1]} : vector<128x4xf32> to vector<128x1xf32>
    %45 = vector.extract_strided_slice %6 {offsets = [0, 3], sizes = [128, 1], strides = [1, 1]} : vector<128x4xf32> to vector<128x1xf32>
    %46 = tpu.transpose %44, [1, 0] : vector<128x1xf32> -> vector<1x128xf32>
    %47 = vector.broadcast %45 : vector<128x1xf32> to vector<128x128xf32>
    %48 = vector.broadcast %46 : vector<1x128xf32> to vector<128x128xf32>
    %49 = arith.addf %47, %48 : vector<128x128xf32>
    %cst_19 = arith.constant 0.000000e+00 : f32
    %50 = vector.broadcast %cst_19 : f32 to vector<128x128xf32>
    %51 = arith.cmpf ogt, %49, %50 : vector<128x128xf32>
    %cst_20 = arith.constant 2.000000e-01 : f32
    %52 = vector.broadcast %cst_20 : f32 to vector<128x128xf32>
    %53 = arith.mulf %52, %49 : vector<128x128xf32>
    %54 = arith.select %51, %49, %53 : vector<128x128xi1>, vector<128x128xf32>
    %cst_21 = arith.constant -1.000000e+30 : f32
    %55 = vector.broadcast %cst_21 : f32 to vector<128x128xf32>
    %56 = arith.select %3, %54, %55 : vector<128x128xi1>, vector<128x128xf32>
    %cst_22 = arith.constant dense<0xFF800000> : vector<128xf32>
    %57 = vector.multi_reduction <maximumf>, %56, %cst_22 [1] : vector<128x128xf32> to vector<128xf32>
    %58 = vector.shape_cast %57 : vector<128xf32> to vector<128x1xf32>
    %59 = vector.broadcast %58 : vector<128x1xf32> to vector<128x128xf32>
    %60 = arith.subf %56, %59 : vector<128x128xf32>
    %61 = math.exp %60 : vector<128x128xf32>
    %cst_23 = arith.constant dense<0.000000e+00> : vector<128xf32>
    %62 = vector.multi_reduction <add>, %61, %cst_23 [1] : vector<128x128xf32> to vector<128xf32>
    %63 = vector.shape_cast %62 : vector<128xf32> to vector<128x1xf32>
    %64 = tpu.reciprocal %63 {approx = true} : vector<128x1xf32> -> vector<128x1xf32>
    %65 = vector.broadcast %64 : vector<128x1xf32> to vector<128x128xf32>
    %66 = arith.mulf %61, %65 : vector<128x128xf32>
    %67 = arith.truncf %66 : vector<128x128xf32> to vector<128x128xbf16>
    %68 = vector.extract_strided_slice %5 {offsets = [0, 128], sizes = [128, 128], strides = [1, 1]} : vector<128x260xf32> to vector<128x128xf32>
    %69 = arith.truncf %68 : vector<128x128xf32> to vector<128x128xbf16>
    %cst_24 = arith.constant dense<0.000000e+00> : vector<128x128xf32>
    %70 = tpu.matmul %67, %69, %cst_24 {dimension_numbers = #tpu.dot_dimension_numbers<[1], [0], [0], [1], [0, 0, 1, 1], [], []>} : vector<128x128xbf16>, vector<128x128xbf16>, vector<128x128xf32> -> vector<128x128xf32>
    %c0_25 = arith.constant 0 : index
    %c128 = arith.constant 128 : index
    %71 = vector.load %arg3[%c0_25, %c128] : memref<1x256xf32, #tpu.memory_space<vmem>>, vector<1x128xf32>
    %72 = vector.broadcast %71 : vector<1x128xf32> to vector<128x128xf32>
    %73 = arith.addf %70, %72 : vector<128x128xf32>
    %cst_26 = arith.constant 0.000000e+00 : f32
    %74 = vector.broadcast %cst_26 : f32 to vector<128x128xf32>
    %75 = arith.maximumf %73, %74 : vector<128x128xf32>
    %76 = arith.truncf %75 : vector<128x128xf32> to vector<128x128xbf16>
    %c128_27 = arith.constant 128 : index
    %c0_28 = arith.constant 0 : index
    %77 = vector.load %arg4[%c128_27, %c0_28] : memref<256x128xbf16, #tpu.memory_space<vmem>>, vector<128x128xbf16>
    %cst_29 = arith.constant dense<0.000000e+00> : vector<128x128xf32>
    %78 = tpu.matmul %76, %77, %cst_29 {dimension_numbers = #tpu.dot_dimension_numbers<[1], [0], [0], [1], [0, 0, 1, 1], [], []>} : vector<128x128xbf16>, vector<128x128xbf16>, vector<128x128xf32> -> vector<128x128xf32>
    %79 = arith.addf %43, %78 : vector<128x128xf32>
    %c0_30 = arith.constant 0 : index
    %c0_31 = arith.constant 0 : index
    %80 = vector.load %arg5[%c0_30, %c0_31] : memref<1x128xf32, #tpu.memory_space<vmem>>, vector<1x128xf32>
    %81 = vector.broadcast %80 : vector<1x128xf32> to vector<128x128xf32>
    %82 = arith.addf %79, %81 : vector<128x128xf32>
    %c0_32 = arith.constant 0 : index
    %c0_33 = arith.constant 0 : index
    %83 = vector.load %arg6[%c0_32, %c0_33] : memref<1x128xf32, #tpu.memory_space<vmem>>, vector<1x128xf32>
    %c0_34 = arith.constant 0 : index
    %c0_35 = arith.constant 0 : index
    %84 = vector.load %arg7[%c0_34, %c0_35] : memref<1x128xf32, #tpu.memory_space<vmem>>, vector<1x128xf32>
    %cst_36 = arith.constant dense<0.000000e+00> : vector<128xf32>
    %85 = vector.multi_reduction <add>, %82, %cst_36 [1] : vector<128x128xf32> to vector<128xf32>
    %86 = vector.shape_cast %85 : vector<128xf32> to vector<128x1xf32>
    %cst_37 = arith.constant 1.280000e+02 : f32
    %87 = vector.broadcast %cst_37 : f32 to vector<128x1xf32>
    %88 = arith.divf %86, %87 : vector<128x1xf32>
    %89 = vector.broadcast %88 : vector<128x1xf32> to vector<128x128xf32>
    %90 = arith.subf %82, %89 : vector<128x128xf32>
    %91 = arith.mulf %90, %90 : vector<128x128xf32>
    %cst_38 = arith.constant dense<0.000000e+00> : vector<128xf32>
    %92 = vector.multi_reduction <add>, %91, %cst_38 [1] : vector<128x128xf32> to vector<128xf32>
    %93 = vector.shape_cast %92 : vector<128xf32> to vector<128x1xf32>
    %cst_39 = arith.constant 1.280000e+02 : f32
    %94 = vector.broadcast %cst_39 : f32 to vector<128x1xf32>
    %95 = arith.divf %93, %94 : vector<128x1xf32>
    %cst_40 = arith.constant 9.99999974E-6 : f32
    %96 = vector.broadcast %cst_40 : f32 to vector<128x1xf32>
    %97 = arith.addf %95, %96 : vector<128x1xf32>
    %98 = math.rsqrt %97 : vector<128x1xf32>
    %99 = vector.broadcast %98 : vector<128x1xf32> to vector<128x128xf32>
    %100 = arith.mulf %90, %99 : vector<128x128xf32>
    %101 = vector.broadcast %83 : vector<1x128xf32> to vector<128x128xf32>
    %102 = arith.mulf %100, %101 : vector<128x128xf32>
    %103 = vector.broadcast %84 : vector<1x128xf32> to vector<128x128xf32>
    %104 = arith.addf %102, %103 : vector<128x128xf32>
    %cst_41 = arith.constant 0.000000e+00 : f32
    %105 = vector.broadcast %cst_41 : f32 to vector<128x128xf32>
    %106 = arith.maximumf %104, %105 : vector<128x128xf32>
    %107 = arith.truncf %106 : vector<128x128xf32> to vector<128x128xbf16>
    %c0_42 = arith.constant 0 : index
    %c0_43 = arith.constant 0 : index
    %108 = vector.load %arg8[%c0_42, %c0_43] : memref<128x64xbf16, #tpu.memory_space<vmem>>, vector<128x64xbf16>
    %cst_44 = arith.constant dense<0.000000e+00> : vector<128x64xf32>
    %109 = tpu.matmul %107, %108, %cst_44 {dimension_numbers = #tpu.dot_dimension_numbers<[1], [0], [0], [1], [0, 0, 1, 1], [], []>} : vector<128x128xbf16>, vector<128x64xbf16>, vector<128x64xf32> -> vector<128x64xf32>
    %c0_45 = arith.constant 0 : index
    %c0_46 = arith.constant 0 : index
    %110 = vector.load %arg9[%c0_45, %c0_46] : memref<1x64xf32, #tpu.memory_space<vmem>>, vector<1x64xf32>
    %111 = vector.broadcast %110 : vector<1x64xf32> to vector<128x64xf32>
    %112 = arith.addf %109, %111 : vector<128x64xf32>
    %c0_47 = arith.constant 0 : index
    %c0_48 = arith.constant 0 : index
    %113 = vector.load %arg10[%c0_47, %c0_48] : memref<1x64xf32, #tpu.memory_space<vmem>>, vector<1x64xf32>
    %c0_49 = arith.constant 0 : index
    %c0_50 = arith.constant 0 : index
    %114 = vector.load %arg11[%c0_49, %c0_50] : memref<1x64xf32, #tpu.memory_space<vmem>>, vector<1x64xf32>
    %cst_51 = arith.constant dense<0.000000e+00> : vector<128xf32>
    %115 = vector.multi_reduction <add>, %112, %cst_51 [1] : vector<128x64xf32> to vector<128xf32>
    %116 = vector.shape_cast %115 : vector<128xf32> to vector<128x1xf32>
    %cst_52 = arith.constant 6.400000e+01 : f32
    %117 = vector.broadcast %cst_52 : f32 to vector<128x1xf32>
    %118 = arith.divf %116, %117 : vector<128x1xf32>
    %119 = vector.broadcast %118 : vector<128x1xf32> to vector<128x64xf32>
    %120 = arith.subf %112, %119 : vector<128x64xf32>
    %121 = arith.mulf %120, %120 : vector<128x64xf32>
    %cst_53 = arith.constant dense<0.000000e+00> : vector<128xf32>
    %122 = vector.multi_reduction <add>, %121, %cst_53 [1] : vector<128x64xf32> to vector<128xf32>
    %123 = vector.shape_cast %122 : vector<128xf32> to vector<128x1xf32>
    %cst_54 = arith.constant 6.400000e+01 : f32
    %124 = vector.broadcast %cst_54 : f32 to vector<128x1xf32>
    %125 = arith.divf %123, %124 : vector<128x1xf32>
    %cst_55 = arith.constant 9.99999974E-6 : f32
    %126 = vector.broadcast %cst_55 : f32 to vector<128x1xf32>
    %127 = arith.addf %125, %126 : vector<128x1xf32>
    %128 = math.rsqrt %127 : vector<128x1xf32>
    %129 = vector.broadcast %128 : vector<128x1xf32> to vector<128x64xf32>
    %130 = arith.mulf %120, %129 : vector<128x64xf32>
    %131 = vector.broadcast %113 : vector<1x64xf32> to vector<128x64xf32>
    %132 = arith.mulf %130, %131 : vector<128x64xf32>
    %133 = vector.broadcast %114 : vector<1x64xf32> to vector<128x64xf32>
    %134 = arith.addf %132, %133 : vector<128x64xf32>
    %cst_56 = arith.constant 0.000000e+00 : f32
    %135 = vector.broadcast %cst_56 : f32 to vector<128x64xf32>
    %136 = arith.maximumf %134, %135 : vector<128x64xf32>
    %137 = arith.truncf %136 : vector<128x64xf32> to vector<128x64xbf16>
    %c0_57 = arith.constant 0 : index
    %c0_58 = arith.constant 0 : index
    %138 = vector.load %arg12[%c0_57, %c0_58] : memref<64x32xbf16, #tpu.memory_space<vmem>>, vector<64x32xbf16>
    %cst_59 = arith.constant dense<0.000000e+00> : vector<128x32xf32>
    %139 = tpu.matmul %137, %138, %cst_59 {dimension_numbers = #tpu.dot_dimension_numbers<[1], [0], [0], [1], [0, 0, 1, 1], [], []>} : vector<128x64xbf16>, vector<64x32xbf16>, vector<128x32xf32> -> vector<128x32xf32>
    %c0_60 = arith.constant 0 : index
    %c0_61 = arith.constant 0 : index
    %140 = vector.load %arg13[%c0_60, %c0_61] : memref<1x32xf32, #tpu.memory_space<vmem>>, vector<1x32xf32>
    %141 = vector.broadcast %140 : vector<1x32xf32> to vector<128x32xf32>
    %142 = arith.addf %139, %141 : vector<128x32xf32>
    %c0_62 = arith.constant 0 : index
    %c0_63 = arith.constant 0 : index
    %143 = vector.load %arg14[%c0_62, %c0_63] : memref<1x32xf32, #tpu.memory_space<vmem>>, vector<1x32xf32>
    %c0_64 = arith.constant 0 : index
    %c0_65 = arith.constant 0 : index
    %144 = vector.load %arg15[%c0_64, %c0_65] : memref<1x32xf32, #tpu.memory_space<vmem>>, vector<1x32xf32>
    %cst_66 = arith.constant dense<0.000000e+00> : vector<128xf32>
    %145 = vector.multi_reduction <add>, %142, %cst_66 [1] : vector<128x32xf32> to vector<128xf32>
    %146 = vector.shape_cast %145 : vector<128xf32> to vector<128x1xf32>
    %cst_67 = arith.constant 3.200000e+01 : f32
    %147 = vector.broadcast %cst_67 : f32 to vector<128x1xf32>
    %148 = arith.divf %146, %147 : vector<128x1xf32>
    %149 = vector.broadcast %148 : vector<128x1xf32> to vector<128x32xf32>
    %150 = arith.subf %142, %149 : vector<128x32xf32>
    %151 = arith.mulf %150, %150 : vector<128x32xf32>
    %cst_68 = arith.constant dense<0.000000e+00> : vector<128xf32>
    %152 = vector.multi_reduction <add>, %151, %cst_68 [1] : vector<128x32xf32> to vector<128xf32>
    %153 = vector.shape_cast %152 : vector<128xf32> to vector<128x1xf32>
    %cst_69 = arith.constant 3.200000e+01 : f32
    %154 = vector.broadcast %cst_69 : f32 to vector<128x1xf32>
    %155 = arith.divf %153, %154 : vector<128x1xf32>
    %cst_70 = arith.constant 9.99999974E-6 : f32
    %156 = vector.broadcast %cst_70 : f32 to vector<128x1xf32>
    %157 = arith.addf %155, %156 : vector<128x1xf32>
    %158 = math.rsqrt %157 : vector<128x1xf32>
    %159 = vector.broadcast %158 : vector<128x1xf32> to vector<128x32xf32>
    %160 = arith.mulf %150, %159 : vector<128x32xf32>
    %161 = vector.broadcast %143 : vector<1x32xf32> to vector<128x32xf32>
    %162 = arith.mulf %160, %161 : vector<128x32xf32>
    %163 = vector.broadcast %144 : vector<1x32xf32> to vector<128x32xf32>
    %164 = arith.addf %162, %163 : vector<128x32xf32>
    %cst_71 = arith.constant 0.000000e+00 : f32
    %165 = vector.broadcast %cst_71 : f32 to vector<128x32xf32>
    %166 = arith.maximumf %164, %165 : vector<128x32xf32>
    %167 = arith.truncf %166 : vector<128x32xf32> to vector<128x32xbf16>
    %c0_72 = arith.constant 0 : index
    %c0_73 = arith.constant 0 : index
    %168 = vector.load %arg16[%c0_72, %c0_73] : memref<32x3xbf16, #tpu.memory_space<vmem>>, vector<32x3xbf16>
    %cst_74 = arith.constant dense<0.000000e+00> : vector<128x3xf32>
    %169 = tpu.matmul %167, %168, %cst_74 {dimension_numbers = #tpu.dot_dimension_numbers<[1], [0], [0], [1], [0, 0, 1, 1], [], []>} : vector<128x32xbf16>, vector<32x3xbf16>, vector<128x3xf32> -> vector<128x3xf32>
    %c0_75 = arith.constant 0 : index
    %c0_76 = arith.constant 0 : index
    %170 = vector.load %arg17[%c0_75, %c0_76] : memref<1x3xf32, #tpu.memory_space<vmem>>, vector<1x3xf32>
    %171 = vector.broadcast %170 : vector<1x3xf32> to vector<128x3xf32>
    %172 = arith.addf %169, %171 : vector<128x3xf32>
    %173 = arith.mulf %172, %172 : vector<128x3xf32>
    %cst_77 = arith.constant dense<0.000000e+00> : vector<128xf32>
    %174 = vector.multi_reduction <add>, %173, %cst_77 [1] : vector<128x3xf32> to vector<128xf32>
    %175 = vector.shape_cast %174 : vector<128xf32> to vector<128x1xf32>
    %cst_78 = arith.constant dense<0.000000e+00> : vector<128x128xf32>
    %176 = tpu.matmul %172, %172, %cst_78 {dimension_numbers = #tpu.dot_dimension_numbers<[1], [1], [0], [0], [0, 0, 1, 0], [], []>} : vector<128x3xf32>, vector<128x3xf32>, vector<128x128xf32> -> vector<128x128xf32>
    %177 = tpu.transpose %175, [1, 0] : vector<128x1xf32> -> vector<1x128xf32>
    %178 = vector.broadcast %175 : vector<128x1xf32> to vector<128x128xf32>
    %179 = vector.broadcast %177 : vector<1x128xf32> to vector<128x128xf32>
    %180 = arith.addf %178, %179 : vector<128x128xf32>
    %cst_79 = arith.constant 2.000000e+00 : f32
    %181 = vector.broadcast %cst_79 : f32 to vector<128x128xf32>
    %182 = arith.mulf %181, %176 : vector<128x128xf32>
    %183 = arith.subf %180, %182 : vector<128x128xf32>
    %cst_80 = arith.constant 0.000000e+00 : f32
    %184 = vector.broadcast %cst_80 : f32 to vector<128x128xf32>
    %185 = arith.maximumf %183, %184 : vector<128x128xf32>
    %186 = tpu.iota {dimensions = array<i32: 0>} : vector<128x128xi32>
    %187 = tpu.iota {dimensions = array<i32: 1>} : vector<128x128xi32>
    %188 = arith.cmpi eq, %186, %187 : vector<128x128xi32>
    %cst_81 = arith.constant 0.000000e+00 : f32
    %189 = vector.broadcast %cst_81 : f32 to vector<128x128xf32>
    %190 = arith.select %188, %189, %185 : vector<128x128xi1>, vector<128x128xf32>
    %191 = math.sqrt %190 : vector<128x128xf32>
    %c0_82 = arith.constant 0 : index
    %c0_83 = arith.constant 0 : index
    %192 = vector.load %arg18[%c0_82, %c0_83] : memref<128x128xf32, #tpu.memory_space<vmem>>, vector<128x128xf32>
    tpu.vector_store %arg18[%c0_82, %c0_83], %191 {strides = array<i32>} : memref<128x128xf32, #tpu.memory_space<vmem>>, vector<128x128xf32>,
    return
  }
}

</mosaic_0001>

<bundles_post_ra>
// kernel: gat_net_forward.1
= control target key start
LH: loop header
LB: loop body
LE: loop exit
PB: predicated region body
PF: predicated region fallthrough
CT: control target
= control target key end

     0   :  { %s7539_s0 = inlined_call_operand.vmem [shape: bf16[128,256], index: 0, kind: input, shape index: {}]   ;;  %s7540_s1 = inlined_call_operand.vmem [shape: bf16[128,128], index: 1, kind: input, shape index: {}]   ;;  %s7541_s2 = inlined_call_operand.vmem [shape: bf16[256,260], index: 2, kind: input, shape index: {}]   ;;  %s7542_s3 = inlined_call_operand.vmem [shape: f32[1,256], index: 3, kind: input, shape index: {}]   ;;  %s7543_s4 = inlined_call_operand.vmem [shape: bf16[256,128], index: 4, kind: input, shape index: {}]   ;;  %s7544_s5 = inlined_call_operand.vmem [shape: f32[1,128], index: 5, kind: input, shape index: {}]   ;;  %s7545_s6 = inlined_call_operand.vmem [shape: f32[1,128], index: 6, kind: input, shape index: {}]   ;;  %s7546_s7 = inlined_call_operand.vmem [shape: f32[1,128], index: 7, kind: input, shape index: {}]   ;;  %s7547_s8 = inlined_call_operand.vmem [shape: bf16[128,64], index: 8, kind: input, shape index: {}]   ;;  %s7548_s9 = inlined_call_operand.vmem [shape: f32[1,64], index: 9, kind: input, shape index: {}]   ;;  %s7549_s10 = inlined_call_operand.vmem [shape: f32[1,64], index: 10, kind: input, shape index: {}]   ;;  %s7550_s11 = inlined_call_operand.vmem [shape: f32[1,64], index: 11, kind: input, shape index: {}]   ;;  %s7551_s12 = inlined_call_operand.vmem [shape: bf16[64,32], index: 12, kind: input, shape index: {}]   ;;  %s7552_s13 = inlined_call_operand.vmem [shape: f32[1,32], index: 13, kind: input, shape index: {}]   ;;  %s7553_s14 = inlined_call_operand.vmem [shape: f32[1,32], index: 14, kind: input, shape index: {}]   ;;  %s7554_s15 = inlined_call_operand.vmem [shape: f32[1,32], index: 15, kind: input, shape index: {}]   ;;  %s7555_s16 = inlined_call_operand.vmem [shape: bf16[32,3], index: 16, kind: input, shape index: {}]   ;;  %s7556_s17 = inlined_call_operand.vmem [shape: f32[1,3], index: 17, kind: input, shape index: {}]   ;;  %s7557_s18 = inlined_call_operand.hbm [shape: f32[128,128], index: 18, kind: output, shape index: {}]  }
   0x1   :  { %7571 = sst [smem:[#allocation12_spill]] %s7539_s0 }
   0x2   :  { %7572 = sst [smem:[#allocation13_spill]] %s7540_s1 }
   0x3   :  { %7573 = sst [smem:[#allocation14_spill]] %s7541_s2 }
   0x4   :  { %s7574_s29 = sld [smem:[#allocation14_spill]] }
   0xa   :  { %v4217_v0 = vld [vmem:[%s7574_s29 + $0xa8] sm:$0xf]  ;;  %v4529_v1 = vld [vmem:[%s7574_s29 + $0xb0] sm:$0xf0]  ;;  %v4205_v5 = vld [vmem:[%s7574_s29 + $0x90] sm:$0xf] }
   0xb   :  { %v4313_v2 = vld [vmem:[%s7574_s29 + $0x168] sm:$0xf]  ;;  %v4218_v3 = vor.u32 %v4529_v1, %v4217_v0  ;;  %v4553_v4 = vld [vmem:[%s7574_s29 + $0x170] sm:$0xf0]  ;;  %v4526_v6 = vld [vmem:[%s7574_s29 + $0x98] sm:$0xf0] }
   0xc   :  { %v4314_v7 = vor.u32 %v4553_v4, %v4313_v2  ;;  %v4301_v8 = vld [vmem:[%s7574_s29 + $0x150] sm:$0xf]  ;;  %v4550_v9 = vld [vmem:[%s7574_s29 + $0x158] sm:$0xf0]  ;;  %v4206_v10 = vor.u32 %v4526_v6, %v4205_v5  ;;  %v4193_v12 = vld [vmem:[%s7574_s29 + $0x78] sm:$0xf] }
   0xd   :  { %525 = vmatpush.bf16.msra.mxu0 %v4218_v3  ;;  %4624 = vmatpush.bf16.msra.mxu2 %v4218_v3  ;;  %v4302_v11 = vor.u32 %v4550_v9, %v4301_v8  ;;  %v4523_v13 = vld [vmem:[%s7574_s29 + $0x80] sm:$0xf0]  ;;  %v4289_v14 = vld [vmem:[%s7574_s29 + $0x138] sm:$0xf]  ;;  %v4181_v18 = vld [vmem:[%s7574_s29 + $0x60] sm:$0xf] }
   0xe   :  { %574 = vmatpush.bf16.msra.mxu1 %v4314_v7  ;;  %4632 = vmatpush.bf16.msra.mxu3 %v4314_v7  ;;  %v4547_v15 = vld [vmem:[%s7574_s29 + $0x140] sm:$0xf0]  ;;  %v4194_v16 = vor.u32 %v4523_v13, %v4193_v12  ;;  %v4520_v19 = vld [vmem:[%s7574_s29 + $0x68] sm:$0xf0]  ;;  %v4277_v20 = vld [vmem:[%s7574_s29 + $0x120] sm:$0xf] }
   0xf   :  { %v4290_v17 = vor.u32 %v4547_v15, %v4289_v14  ;;  %v4544_v21 = vld [vmem:[%s7574_s29 + $0x128] sm:$0xf0]  ;;  %v4182_v22 = vor.u32 %v4520_v19, %v4181_v18  ;;  %v4169_v24 = vld [vmem:[%s7574_s29 + $0x48] sm:$0xf]  ;;  %v4517_v25 = vld [vmem:[%s7574_s29 + $0x50] sm:$0xf0] }
  0x10   :  { %v4278_v23 = vor.u32 %v4544_v21, %v4277_v20  ;;  %v4265_v26 = vld [vmem:[%s7574_s29 + $0x108] sm:$0xf]  ;;  %v4541_v27 = vld [vmem:[%s7574_s29 + $0x110] sm:$0xf0]  ;;  %v4170_v28 = vor.u32 %v4517_v25, %v4169_v24  ;;  %v4157_v30 = vld [vmem:[%s7574_s29 + $0x30] sm:$0xf] }
  0x11   :  { %526 = vmatpush.bf16.msra.mxu0 %v4206_v10  ;;  %4625 = vmatpush.bf16.msra.mxu2 %v4206_v10  ;;  %v4266_v29 = vor.u32 %v4541_v27, %v4265_v26  ;;  %v4514_v31 = vld [vmem:[%s7574_s29 + $0x38] sm:$0xf0]  ;;  %v4253_v32 = vld [vmem:[%s7574_s29 + $0xf0] sm:$0xf]  ;;  %v4145_v35 = vld [vmem:[%s7574_s29 + $0x18] sm:$0xf] }
  0x12   :  { %575 = vmatpush.bf16.msra.mxu1 %v4302_v11  ;;  %4633 = vmatpush.bf16.msra.mxu3 %v4302_v11  ;;  %v4538_v33 = vld [vmem:[%s7574_s29 + $0xf8] sm:$0xf0]  ;;  %v4158_v34 = vor.u32 %v4514_v31, %v4157_v30  ;;  %v4511_v36 = vld [vmem:[%s7574_s29 + $0x20] sm:$0xf0] }
  0x13   :  { %v4254_v37 = vor.u32 %v4538_v33, %v4253_v32 }
  0x15   :  { %527 = vmatpush.bf16.msra.mxu0 %v4194_v16  ;;  %4626 = vmatpush.bf16.msra.mxu2 %v4194_v16 }
  0x16   :  { %576 = vmatpush.bf16.msra.mxu1 %v4290_v17  ;;  %4634 = vmatpush.bf16.msra.mxu3 %v4290_v17 }
  0x19   :  { %528 = vmatpush.bf16.msra.mxu0 %v4182_v22  ;;  %4627 = vmatpush.bf16.msra.mxu2 %v4182_v22 }
  0x1a   :  { %577 = vmatpush.bf16.msra.mxu1 %v4278_v23  ;;  %4635 = vmatpush.bf16.msra.mxu3 %v4278_v23 }
  0x1d   :  { %529 = vmatpush.bf16.msra.mxu0 %v4170_v28  ;;  %4628 = vmatpush.bf16.msra.mxu2 %v4170_v28 }
  0x1e   :  { %578 = vmatpush.bf16.msra.mxu1 %v4266_v29  ;;  %4636 = vmatpush.bf16.msra.mxu3 %v4266_v29 }
  0x1f   :  { %23 = vsyncpa [#allocation3], 0  ;;  %v4241_v38 = vld [vmem:[%s7574_s29 + $0xd8] sm:$0xf]  ;;  %v4535_v39 = vld [vmem:[%s7574_s29 + $0xe0] sm:$0xf0]  ;;  %v4146_v40 = vor.u32 %v4511_v36, %v4145_v35 }
  0x20   :  { %v4242_v41 = vor.u32 %v4535_v39, %v4241_v38  ;;  %v4133_v42 = vld [vmem:[%s7574_s29] sm:$0xf]  ;;  %v4508_v43 = vld [vmem:[%s7574_s29 + $0x8] sm:$0xf0]  ;;  %s7575_s23 = sld [smem:[#allocation12_spill]]  ;;  %s4978_s2 = smov 126  }
  0x21   :  { %530 = vmatpush.bf16.msra.mxu0 %v4158_v34  ;;  %4629 = vmatpush.bf16.msra.mxu2 %v4158_v34  ;;  %v4229_v44 = vld [vmem:[%s7574_s29 + $0xc0] sm:$0xf]  ;;  %v4532_v45 = vld [vmem:[%s7574_s29 + $0xc8] sm:$0xf0]  ;;  %v4134_v48 = vor.u32 %v4508_v43, %v4133_v42  ;;  %v4225_v60 = vld [vmem:[%s7574_s29 + $0xb0] sm:$0xf] }
  0x22   :  { %579 = vmatpush.bf16.msra.mxu1 %v4254_v37  ;;  %4637 = vmatpush.bf16.msra.mxu3 %v4254_v37  ;;  %v4230_v52 = vor.u32 %v4532_v45, %v4229_v44  ;;  %v4530_v61 = vld [vmem:[%s7574_s29 + $0xb8] sm:$0xf0]  ;;  %v4321_v62 = vld [vmem:[%s7574_s29 + $0x170] sm:$0xf]  ;;  %v4213_v1 = vld [vmem:[%s7574_s29 + $0x98] sm:$0xf] }
  0x23   :  { %v4226_v63 = vor.u32 %v4530_v61, %v4225_v60  ;;  %v4554_v0 = vld [vmem:[%s7574_s29 + $0x178] sm:$0xf0]  ;;  %v4527_v2 = vld [vmem:[%s7574_s29 + $0xa0] sm:$0xf0]  ;;  %v4309_v4 = vld [vmem:[%s7574_s29 + $0x158] sm:$0xf] }
  0x24   :  { %v4322_v3 = vor.u32 %v4554_v0, %v4321_v62  ;;  %v4551_v5 = vld [vmem:[%s7574_s29 + $0x160] sm:$0xf0]  ;;  %v4214_v6 = vor.u32 %v4527_v2, %v4213_v1  ;;  %v4201_v8 = vld [vmem:[%s7574_s29 + $0x80] sm:$0xf]  ;;  %v4524_v9 = vld [vmem:[%s7574_s29 + $0x88] sm:$0xf0] }
  0x25   :  { %531 = vmatpush.bf16.msra.mxu0 %v4146_v40  ;;  %4630 = vmatpush.bf16.msra.mxu2 %v4146_v40  ;;  %v4310_v7 = vor.u32 %v4551_v5, %v4309_v4  ;;  %v4297_v10 = vld [vmem:[%s7574_s29 + $0x140] sm:$0xf]  ;;  %v4548_v11 = vld [vmem:[%s7574_s29 + $0x148] sm:$0xf0]  ;;  %v4202_v13 = vor.u32 %v4524_v9, %v4201_v8  ;;  %v4189_v16 = vld [vmem:[%s7574_s29 + $0x68] sm:$0xf] }
  0x26   :  { %v4069_v46 = vld [vmem:[%s7575_s23] sm:$0xf]  ;;  %v4492_v47 = vld [vmem:[%s7575_s23 + $0x4] sm:$0xf0]  ;;  %v4491_v51 = vld [vmem:[%s7575_s23 + $0x4] sm:$0xf]  ;;  %580 = vmatpush.bf16.msra.mxu1 %v4242_v41  ;;  %4638 = vmatpush.bf16.msra.mxu3 %v4242_v41  ;;  %v4298_v15 = vor.u32 %v4548_v11, %v4297_v10 }
  0x27   :  { %v4101_v49 = vld [vmem:[%s7575_s23 + $0x40] sm:$0xf]  ;;  %v4500_v50 = vld [vmem:[%s7575_s23 + $0x44] sm:$0xf0]  ;;  %v4071_v53 = vld [vmem:[%s7575_s23 + $0x8] sm:$0xf0]  ;;  %v5200_v56 = vor.u32 %v4492_v47, %v4069_v46 }
  0x28   :  { %v4499_v54 = vld [vmem:[%s7575_s23 + $0x44] sm:$0xf]  ;;  %v4103_v55 = vld [vmem:[%s7575_s23 + $0x48] sm:$0xf0]  ;;  %v5202_v57 = vor.u32 %v4500_v50, %v4101_v49  ;;  %v5204_v58 = vor.u32 %v4491_v51, %v4071_v53  ;;  %v4077_v12 = vld [vmem:[%s7575_s23 + $0x10] sm:$0xf] }
  0x29   :  { %532 = vmatpush.bf16.msra.mxu0 %v4134_v48  ;;  %4631 = vmatpush.bf16.msra.mxu2 %v4134_v48  ;;  %v5206_v59 = vor.u32 %v4499_v54, %v4103_v55  ;;  %v4494_v14 = vld [vmem:[%s7575_s23 + $0x14] sm:$0xf0]  ;;  %v4521_v17 = vld [vmem:[%s7574_s29 + $0x70] sm:$0xf0]  ;;  %v4109_v18 = vld [vmem:[%s7575_s23 + $0x50] sm:$0xf] }
  0x2a   :  { %581 = vmatpush.bf16.msra.mxu1 %v4230_v52  ;;  %4639 = vmatpush.bf16.msra.mxu3 %v4230_v52  ;;  %v4502_v19 = vld [vmem:[%s7575_s23 + $0x54] sm:$0xf0]  ;;  %v4493_v20 = vld [vmem:[%s7575_s23 + $0x14] sm:$0xf]  ;;  %v4079_v21 = vld [vmem:[%s7575_s23 + $0x18] sm:$0xf0]  ;;  %v4190_v24 = vor.u32 %v4521_v17, %v4189_v16  ;;  %v5284_v27 = vor.u32 %v4494_v14, %v4077_v12 }
  0x2b   :  { %v4501_v22 = vld [vmem:[%s7575_s23 + $0x54] sm:$0xf]  ;;  %v4111_v23 = vld [vmem:[%s7575_s23 + $0x58] sm:$0xf0]  ;;  %v4285_v25 = vld [vmem:[%s7574_s29 + $0x128] sm:$0xf]  ;;  %v5286_v28 = vor.u32 %v4502_v19, %v4109_v18  ;;  %v5288_v29 = vor.u32 %v4493_v20, %v4079_v21 }
  0x2c   :  { %533 = vmatmul.bf16.vlgmr.msra.gmra.mxu0 %v5200_v56  ;;  %553 = vmatmul.bf16.vlgmr.msra.gmra.mxu2 %v5202_v57  ;;  %v4545_v26 = vld [vmem:[%s7574_s29 + $0x130] sm:$0xf0]  ;;  %v5290_v30 = vor.u32 %v4501_v22, %v4111_v23  ;;  %v4177_v32 = vld [vmem:[%s7574_s29 + $0x50] sm:$0xf]  ;;  %v4518_v33 = vld [vmem:[%s7574_s29 + $0x58] sm:$0xf0] }
  0x2d   :  { %582 = vmatmul.bf16.vlgmr.msra.gmra.mxu1 %v5204_v58  ;;  %602 = vmatmul.bf16.vlgmr.msra.gmra.mxu3 %v5206_v59  ;;  %v4286_v31 = vor.u32 %v4545_v26, %v4285_v25  ;;  %v4273_v34 = vld [vmem:[%s7574_s29 + $0x110] sm:$0xf]  ;;  %v4178_v35 = vor.u32 %v4518_v33, %v4177_v32  ;;  %v4542_v36 = vld [vmem:[%s7574_s29 + $0x118] sm:$0xf0]  ;;  %v4165_v37 = vld [vmem:[%s7574_s29 + $0x38] sm:$0xf] }
  0x2e   :  { %721 = vmatpush.bf16.msrb.mxu0 %v4226_v63  ;;  %770 = vmatpush.bf16.msrb.mxu1 %v4322_v3  ;;  %v4515_v38 = vld [vmem:[%s7574_s29 + $0x40] sm:$0xf0]  ;;  %v4274_v39 = vor.u32 %v4542_v36, %v4273_v34  ;;  %v4261_v41 = vld [vmem:[%s7574_s29 + $0xf8] sm:$0xf]  ;;  %v4153_v43 = vld [vmem:[%s7574_s29 + $0x20] sm:$0xf] }
  0x2f   :  { %v4166_v40 = vor.u32 %v4515_v38, %v4165_v37  ;;  %v4539_v42 = vld [vmem:[%s7574_s29 + $0x100] sm:$0xf0]  ;;  %v4512_v44 = vld [vmem:[%s7574_s29 + $0x28] sm:$0xf0]  ;;  %v4085_v46 = vld [vmem:[%s7575_s23 + $0x20] sm:$0xf] }
  0x30   :  { %v4262_v45 = vor.u32 %v4539_v42, %v4261_v41  ;;  %v4154_v47 = vor.u32 %v4512_v44, %v4153_v43  ;;  %v4249_v48 = vld [vmem:[%s7574_s29 + $0xe0] sm:$0xf]  ;;  %v4536_v49 = vld [vmem:[%s7574_s29 + $0xe8] sm:$0xf0]  ;;  %v4496_v50 = vld [vmem:[%s7575_s23 + $0x24] sm:$0xf0] }
  0x31   :  { %v4141_v51 = vld [vmem:[%s7574_s29 + $0x8] sm:$0xf]  ;;  %v4509_v52 = vld [vmem:[%s7574_s29 + $0x10] sm:$0xf0]  ;;  %v4117_v53 = vld [vmem:[%s7575_s23 + $0x60] sm:$0xf]  ;;  %v4250_v63 = vor.u32 %v4536_v49, %v4249_v48  ;;  %v5368_v3 = vor.u32 %v4496_v50, %v4085_v46 }
  0x32   :  { %722 = vmatpush.bf16.msrb.mxu0 %v4214_v6  ;;  %771 = vmatpush.bf16.msrb.mxu1 %v4310_v7  ;;  %v4504_v54 = vld [vmem:[%s7575_s23 + $0x64] sm:$0xf0]  ;;  %v4495_v55 = vld [vmem:[%s7575_s23 + $0x24] sm:$0xf]  ;;  %v4087_v60 = vld [vmem:[%s7575_s23 + $0x28] sm:$0xf0]  ;;  %v4142_v0 = vor.u32 %v4509_v52, %v4141_v51 }
  0x33   :  { %v4503_v61 = vld [vmem:[%s7575_s23 + $0x64] sm:$0xf]  ;;  %v4119_v62 = vld [vmem:[%s7575_s23 + $0x68] sm:$0xf0]  ;;  %v4237_v1 = vld [vmem:[%s7574_s29 + $0xc8] sm:$0xf]  ;;  %v5370_v4 = vor.u32 %v4504_v54, %v4117_v53  ;;  %v5372_v5 = vor.u32 %v4495_v55, %v4087_v60 }
  0x34   :  { %v4533_v2 = vld [vmem:[%s7574_s29 + $0xd0] sm:$0xf0]  ;;  %v5374_v6 = vor.u32 %v4503_v61, %v4119_v62  ;;  %v4093_v8 = vld [vmem:[%s7575_s23 + $0x30] sm:$0xf]  ;;  %v4498_v9 = vld [vmem:[%s7575_s23 + $0x34] sm:$0xf0] }
  0x35   :  { %v4238_v7 = vor.u32 %v4533_v2, %v4237_v1  ;;  %v4125_v10 = vld [vmem:[%s7575_s23 + $0x70] sm:$0xf]  ;;  %v4506_v11 = vld [vmem:[%s7575_s23 + $0x74] sm:$0xf0]  ;;  %v4497_v12 = vld [vmem:[%s7575_s23 + $0x34] sm:$0xf]  ;;  %v5404_v16 = vor.u32 %v4498_v9, %v4093_v8 }
  0x36   :  { %723 = vmatpush.bf16.msrb.mxu0 %v4202_v13  ;;  %772 = vmatpush.bf16.msrb.mxu1 %v4298_v15  ;;  %v4095_v13 = vld [vmem:[%s7575_s23 + $0x38] sm:$0xf0]  ;;  %v4505_v14 = vld [vmem:[%s7575_s23 + $0x74] sm:$0xf]  ;;  %v5406_v17 = vor.u32 %v4506_v11, %v4125_v10  ;;  %v4528_v23 = vld [vmem:[%s7574_s29 + $0xac] sm:$0xf] }
  0x37   :  { %v4127_v15 = vld [vmem:[%s7575_s23 + $0x78] sm:$0xf0]  ;;  %v5408_v18 = vor.u32 %v4497_v12, %v4095_v13  ;;  %v4525_v34 = vld [vmem:[%s7574_s29 + $0x94] sm:$0xf]  ;;  %v4519_v44 = vld [vmem:[%s7574_s29 + $0x64] sm:$0xf] }
  0x38   :  { %v5410_v19 = vor.u32 %v4505_v14, %v4127_v15  ;;  %v4522_v38 = vld [vmem:[%s7574_s29 + $0x7c] sm:$0xf]  ;;  %v4516_v49 = vld [vmem:[%s7574_s29 + $0x4c] sm:$0xf]  ;;  %v4171_v50 = vld [vmem:[%s7574_s29 + $0x54] sm:$0xf0] }
  0x39   :  { %v4174_v51 = vor.u32 %v4516_v49, %v4171_v50  ;;  %v4513_v55 = vld [vmem:[%s7574_s29 + $0x34] sm:$0xf]  ;;  %v4159_v60 = vld [vmem:[%s7574_s29 + $0x3c] sm:$0xf0]  ;;  %v4507_v9 = vld [vmem:[%s7574_s29 + $0x4] sm:$0xf] }
  0x3a   :  { %724 = vmatpush.bf16.msrb.mxu0 %v4190_v24  ;;  %773 = vmatpush.bf16.msrb.mxu1 %v4286_v31  ;;  %v4219_v24 = vld [vmem:[%s7574_s29 + $0xb4] sm:$0xf0]  ;;  %v4162_v62 = vor.u32 %v4513_v55, %v4159_v60  ;;  %v4135_v10 = vld [vmem:[%s7574_s29 + $0xc] sm:$0xf0]  ;;  %v7563_v13 = vmov 1   ;;  %s7576_s26 = sld [smem:[#allocation13_spill]] }
  0x3b   :  { %v4222_v25 = vor.u32 %v4528_v23, %v4219_v24  ;;  %v4138_v12 = vor.u32 %v4507_v9, %v4135_v10  ;;  %4649 = vset.pattern.permute.xlu1 %v7563_v13  ;;  %4651 = vset.pattern.permute.xlu2 %v7563_v13  ;;  %v7561_v23 = vmov 3  }
  0x3c   :  { %538 = vmatmul.bf16.gmra.mxu0 %v5284_v27  ;;  %558 = vmatmul.bf16.gmra.mxu2 %v5286_v28 }
  0x3d   :  { %587 = vmatmul.bf16.gmra.mxu1 %v5288_v29  ;;  %607 = vmatmul.bf16.gmra.mxu3 %v5290_v30 }
  0x3e   :  { %725 = vmatpush.bf16.msrb.mxu0 %v4178_v35  ;;  %774 = vmatpush.bf16.msrb.mxu1 %v4274_v39  ;;  %v4207_v35 = vld [vmem:[%s7574_s29 + $0x9c] sm:$0xf0]  ;;  %v4195_v39 = vld [vmem:[%s7574_s29 + $0x84] sm:$0xf0] }
  0x3f   :  { %623 = vmatpush.bf16.msrb.mxu2 %v4222_v25  ;;  %v4210_v37 = vor.u32 %v4525_v34, %v4207_v35  ;;  %4650 = vset.pattern.permute.xlu0 %v7561_v23 }
  0x42   :  { %726 = vmatpush.bf16.msrb.mxu0 %v4166_v40  ;;  %775 = vmatpush.bf16.msrb.mxu1 %v4262_v45  ;;  %v4198_v40 = vor.u32 %v4522_v38, %v4195_v39  ;;  %v4183_v45 = vld [vmem:[%s7574_s29 + $0x6c] sm:$0xf0] }
  0x43   :  { %624 = vmatpush.bf16.msrb.mxu2 %v4210_v37 }
  0x46   :  { %727 = vmatpush.bf16.msrb.mxu0 %v4154_v47  ;;  %776 = vmatpush.bf16.msrb.mxu1 %v4250_v63  ;;  %v4186_v47 = vor.u32 %v4519_v44, %v4183_v45  ;;  %v4510_v63 = vld [vmem:[%s7574_s29 + $0x1c] sm:$0xf] }
  0x47   :  { %625 = vmatpush.bf16.msrb.mxu2 %v4198_v40 }
  0x4a   :  { %728 = vmatpush.bf16.msrb.mxu0 %v4142_v0  ;;  %777 = vmatpush.bf16.msrb.mxu1 %v4238_v7  ;;  %v4147_v0 = vld [vmem:[%s7574_s29 + $0x24] sm:$0xf0] }
  0x4b   :  { %626 = vmatpush.bf16.msrb.mxu2 %v4186_v47  ;;  %v4150_v1 = vor.u32 %v4510_v63, %v4147_v0 }
  0x4c   :  { %543 = vmatmul.bf16.gmra.mxu0 %v5368_v3  ;;  %563 = vmatmul.bf16.gmra.mxu2 %v5370_v4 }
  0x4d   :  { %592 = vmatmul.bf16.gmra.mxu1 %v5372_v5  ;;  %612 = vmatmul.bf16.gmra.mxu3 %v5374_v6 }
  0x4f   :  { %627 = vmatpush.bf16.msrb.mxu2 %v4174_v51 }
  0x53   :  { %628 = vmatpush.bf16.msrb.mxu2 %v4162_v62 }
  0x57   :  { %629 = vmatpush.bf16.msrb.mxu2 %v4150_v1 }
  0x5b   :  { %630 = vmatpush.bf16.msrb.mxu2 %v4138_v12 }
  0x5c   :  { %548 = vmatmul.bf16.gmra.mxu0 %v5404_v16  ;;  %568 = vmatmul.bf16.gmra.mxu2 %v5406_v17 }
  0x5d   :  { %597 = vmatmul.bf16.gmra.mxu1 %v5408_v18  ;;  %617 = vmatmul.bf16.gmra.mxu3 %v5410_v19 }
  0x6c   :  { %729 = vmatmul.bf16.vlgmr.msrb.gmra.mxu0 %v5200_v56  ;;  %631 = vmatmul.bf16.vlgmr.msrb.gmra.mxu2 %v5200_v56 }
  0x6d   :  { %778 = vmatmul.bf16.vlgmr.msrb.gmra.mxu1 %v5204_v58 }
  0x7c   :  { %734 = vmatmul.bf16.gmra.mxu0 %v5284_v27  ;;  %636 = vmatmul.bf16.gmra.mxu2 %v5284_v27 }
  0x7d   :  { %783 = vmatmul.bf16.gmra.mxu1 %v5288_v29 }
  0x8c   :  { %739 = vmatmul.bf16.gmra.mxu0 %v5368_v3  ;;  %641 = vmatmul.bf16.gmra.mxu2 %v5368_v3 }
  0x8d   :  { %788 = vmatmul.bf16.gmra.mxu1 %v5372_v5 }
  0x9c   :  { %744 = vmatmul.bf16.gmra.mxu0 %v5404_v16  ;;  %646 = vmatmul.bf16.gmra.mxu2 %v5404_v16 }
  0x9d   :  { %793 = vmatmul.bf16.gmra.mxu1 %v5408_v18 }
  0xa9   :  { %v534_v20 = vpop.f32.mrf.mxu0 }
  0xaa   :  { %v583_v21 = vpop.f32.mrf.mxu1 }
  0xab   :  { %v5424_v22 = vadd.f32 %v583_v21, %v534_v20 }
  0xac   :  { %749 = vmatmul.bf16.gmra.mxu0 %v5202_v57  ;;  %651 = vmatmul.bf16.gmra.mxu2 %v5202_v57 }
  0xad   :  { %798 = vmatmul.bf16.gmra.mxu1 %v5206_v59 }
  0xaf   :  { %v554_v26 = vpop.f32.mrf.mxu2 }
  0xb0   :  { %v603_v31 = vpop.f32.mrf.mxu3 }
  0xb1   :  { %v5434_v32 = vadd.f32 %v603_v31, %v554_v26  ;;  %v5436_v33 = vpop.f32.mrf.mxu0 }
  0xb2   :  { %v5444_v36 = vpop.f32.mrf.mxu1 }
  0xb7   :  { %v5452_v41 = vpop.f32.mrf.mxu2 }
  0xb8   :  { %v5454_v42 = vpop.f32.mrf.mxu3 }
  0xb9   :  { %v539_v43 = vpop.f32.mrf.mxu0  ;;  %v606_v27 = vadd.f32 %v5454_v42, %v5452_v41 }
  0xba   :  { %v588_v46 = vpop.f32.mrf.mxu1 }
  0xbb   :  { %v5462_v48 = vadd.f32 %v588_v46, %v539_v43 }
  0xbc   :  { %754 = vmatmul.bf16.gmra.mxu0 %v5286_v28  ;;  %656 = vmatmul.bf16.gmra.mxu2 %v5286_v28 }
  0xbd   :  { %803 = vmatmul.bf16.gmra.mxu1 %v5290_v30 }
  0xbf   :  { %v559_v52 = vpop.f32.mrf.mxu2 }
  0xc0   :  { %v608_v53 = vpop.f32.mrf.mxu3 }
  0xc1   :  { %v5472_v54 = vpop.f32.mrf.mxu0  ;;  %v609_v51 = vadd.f32 %v608_v53, %v559_v52  ;;  %v1168_v52 = vpack.c.bf16 %v606_v27, %v5434_v32 }
  0xc2   :  { %v5480_v61 = vpop.f32.mrf.mxu1 }
  0xc3   :  { %v591_v10 = vadd.f32 %v5480_v61, %v5472_v54 }
  0xc7   :  { %v561_v2 = vpop.f32.mrf.mxu2 }
  0xc8   :  { %v610_v7 = vpop.f32.mrf.mxu3 }
  0xc9   :  { %v5488_v8 = vpop.f32.mrf.mxu0  ;;  %v611_v55 = vadd.f32 %v610_v7, %v561_v2 }
  0xca   :  { %v5496_v11 = vpop.f32.mrf.mxu1 }
  0xcb   :  { %v1169_v62 = vpack.c.bf16 %v611_v55, %v609_v51  ;;  %v594_v32 = vadd.f32 %v5496_v11, %v5488_v8  ;;  %v586_v11 = vadd.f32 %v5444_v36, %v5436_v33 }
  0xcc   :  { %759 = vmatmul.bf16.gmra.mxu0 %v5370_v4  ;;  %661 = vmatmul.bf16.gmra.mxu2 %v5370_v4 }
  0xcd   :  { %808 = vmatmul.bf16.gmra.mxu1 %v5374_v6  ;;  %v1164_v54 = vpack.c.bf16 %v586_v11, %v5424_v22 }
  0xcf   :  { %v564_v14 = vpop.f32.mrf.mxu2 }
  0xd0   :  { %v613_v15 = vpop.f32.mrf.mxu3 }
  0xd1   :  { %v546_v20 = vpop.f32.mrf.mxu0  ;;  %v614_v43 = vadd.f32 %v613_v15, %v564_v14  ;;  %v1165_v15 = vpack.c.bf16 %v591_v10, %v5462_v48 }
  0xd2   :  { %v595_v21 = vpop.f32.mrf.mxu1 }
  0xd3   :  { %v596_v2 = vadd.f32 %v595_v21, %v546_v20 }
  0xd5   :  { %v1166_v12 = vpack.c.bf16 %v596_v2, %v594_v32 }
  0xd7   :  { %v566_v24 = vpop.f32.mrf.mxu2 }
  0xd8   :  { %v615_v25 = vpop.f32.mrf.mxu3 }
  0xd9   :  { %v549_v26 = vpop.f32.mrf.mxu0  ;;  %v616_v44 = vadd.f32 %v615_v25, %v566_v24 }
  0xda   :  { %v598_v31 = vpop.f32.mrf.mxu1 }
  0xdb   :  { %v1170_v60 = vpack.c.bf16 %v616_v44, %v614_v43  ;;  %v599_v3 = vadd.f32 %v598_v31, %v549_v26 }
  0xdc   :  { %764 = vmatmul.bf16.gmra.mxu0 %v5406_v17  ;;  %666 = vmatmul.bf16.gmra.mxu2 %v5406_v17 }
  0xdd   :  { %813 = vmatmul.bf16.gmra.mxu1 %v5410_v19 }
  0xdf   :  { %v569_v34 = vpop.f32.mrf.mxu2 }
  0xe0   :  { %v618_v35 = vpop.f32.mrf.mxu3 }
  0xe1   :  { %v551_v37 = vpop.f32.mrf.mxu0  ;;  %v619_v56 = vadd.f32 %v618_v35, %v569_v34 }
  0xe2   :  { %v600_v38 = vpop.f32.mrf.mxu1 }
  0xe3   :  { %v601_v53 = vadd.f32 %v600_v38, %v551_v37 }
  0xe5   :  { %v1167_v7 = vpack.c.bf16 %v601_v53, %v599_v3 }
  0xe7   :  { %v571_v39 = vpop.f32.mrf.mxu2 }
  0xe8   :  { %v620_v40 = vpop.f32.mrf.mxu3 }
  0xe9   :  { %v621_v45 = vadd.f32 %v620_v40, %v571_v39  ;;  %v730_v46 = vpop.f32.mrf.mxu0 }
  0xea   :  { %v779_v47 = vpop.f32.mrf.mxu1 }
  0xeb   :  { %v1171_v49 = vpack.c.bf16 %v621_v45, %v619_v56  ;;  %v5507_v50 = vadd.f32 %v779_v47, %v730_v46 }
  0xed   :  { %1176 = vmatpush.bf16.msra.mxu2 %v1171_v49  ;;  %853 = vperm.xlu1 %4649, %v5507_v50  }
  0xee   :  { %1265 = vrot.lane.b32.xlu0 %v5507_v50, %s4978_s2 }
  0xf1   :  { %1177 = vmatpush.bf16.msra.mxu2 %v1170_v60  ;;  %v732_v63 = vpop.f32.mrf.mxu0 }
  0xf2   :  { %v781_v0 = vpop.f32.mrf.mxu1 }
  0xf3   :  { %v5515_v1 = vadd.f32 %v781_v0, %v732_v63 }
  0xf5   :  { %1178 = vmatpush.bf16.msra.mxu2 %v1169_v62  ;;  %858 = vperm.xlu2 %4651, %v5515_v1  }
  0xf6   :  { %4652 = vset.pattern.permute.xlu1 %v7561_v23  ;;  %1346 = vperm.xlu0 %4650, %v5507_v50  }
  0xf7   :  { %1350 = vperm.xlu1 %4652, %v5515_v1  }
  0xf9   :  { %1179 = vmatpush.bf16.msra.mxu2 %v1168_v52  ;;  %v735_v41 = vpop.f32.mrf.mxu0 }
  0xfa   :  { %v784_v42 = vpop.f32.mrf.mxu1 }
  0xfb   :  { %v5522_v9 = vadd.f32 %v784_v42, %v735_v41 }
  0xfd   :  { %863 = vperm.xlu2 %4651, %v5522_v9   ;;  %1180 = vmatpush.bf16.msra.mxu2 %v1167_v7 }
  0xfe   :  { %1267 = vrot.lane.b32.xlu0 %v5515_v1, %s4978_s2 }
  0xff   :  { %1269 = vrot.lane.b32.xlu1 %v5522_v9, %s4978_s2 }
 0x100   :  { %4654 = vset.pattern.permute.xlu1 %v7563_v13 }
 0x101   :  { %1181 = vmatpush.bf16.msra.mxu2 %v1166_v12  ;;  %v737_v14 = vpop.f32.mrf.mxu0 }
 0x102   :  { %v786_v8 = vpop.f32.mrf.mxu1 }
 0x103   :  { %v5538_v20 = vadd.f32 %v786_v8, %v737_v14 }
 0x105   :  { %4653 = vset.pattern.permute.xlu2 %v7561_v23  ;;  %1182 = vmatpush.bf16.msra.mxu2 %v1165_v15 }
 0x106   :  { %1358 = vperm.xlu0 %4650, %v5538_v20   ;;  %1354 = vperm.xlu2 %4653, %v5522_v9  }
 0x107   :  { %1271 = vrot.lane.b32.xlu1 %v5538_v20, %s4978_s2 }
 0x109   :  { %1183 = vmatpush.bf16.msra.mxu2 %v1164_v54  ;;  %v740_v16 = vpop.f32.mrf.mxu0 }
 0x10a   :  { %v789_v61 = vpop.f32.mrf.mxu1 }
 0x10b   :  { %v5546_v33 = vadd.f32 %v789_v61, %v740_v16  ;;  %v4586_v61 = vld [vmem:[%s7576_s26] sm:$0xff]  }
 0x10e   :  { %4655 = vset.pattern.permute.xlu0 %v7563_v13  ;;  %1273 = vrot.lane.b32.xlu2 %v5546_v33, %s4978_s2 }
 0x10f   :  { %868 = vperm.xlu1 %4654, %v5538_v20   ;;  %873 = vperm.xlu0 %4655, %v5546_v33  }
 0x110   :  { %4661 = vset.pattern.permute.xlu2 %v7563_v13 }
 0x111   :  { %v742_v22 = vpop.f32.mrf.mxu0 }
 0x112   :  { %v791_v36 = vpop.f32.mrf.mxu1 }
 0x113   :  { %v5555_v48 = vadd.f32 %v791_v36, %v742_v22  ;;  %v5657_v22 = vld [vmem:[%s7576_s26 + $0x10] sm:$0xff]   ;;  %v4587_v36 = vunpack.c.l.bf16 %v4586_v61 }
 0x115   :  { %vm5674_vm0 = vcmp.gt.f32.partialorder %v4587_v36, 0.0 }
 0x116   :  { %1275 = vrot.lane.b32.xlu2 %v5555_v48, %s4978_s2 }
 0x117   :  { %4656 = vset.pattern.permute.xlu0 %v7561_v23  ;;  %4662 = vset.pattern.permute.xlu1 %v7561_v23 }
 0x118   :  { %1362 = vperm.xlu0 %4656, %v5546_v33  }
 0x119   :  { %v745_v21 = vpop.f32.mrf.mxu0 }
 0x11a   :  { %v794_v24 = vpop.f32.mrf.mxu1 }
 0x11b   :  { %v795_v28 = vadd.f32 %v794_v24, %v745_v21  ;;  %v4595_v21 = vunpack.c.l.bf16 %v5657_v22 }
 0x11d   :  { %vm5680_vm1 = vcmp.gt.f32.partialorder %v4595_v21, 0.0 }
 0x120   :  { %4657 = vset.pattern.permute.xlu0 %v7563_v13 }
 0x121   :  { %878 = vperm.xlu0 %4657, %v5555_v48   ;;  %v747_v57 = vpop.f32.mrf.mxu0 }
 0x122   :  { %v796_v25 = vpop.f32.mrf.mxu1 }
 0x123   :  { %v797_v26 = vadd.f32 %v796_v25, %v747_v57  ;;  %v4552_v57 = vld [vmem:[%s7574_s29 + $0x16c] sm:$0xf]  ;;  %v4315_v25 = vld [vmem:[%s7574_s29 + $0x174] sm:$0xf0] }
 0x125   :  { %888 = vperm.xlu2 %4661, %v797_v26   ;;  %1279 = vrot.lane.b32.xlu1 %v797_v26, %s4978_s2 }
 0x129   :  { %4658 = vset.pattern.permute.xlu0 %v7561_v23  ;;  %v750_v31 = vpop.f32.mrf.mxu0 }
 0x12a   :  { %1366 = vperm.xlu0 %4658, %v5555_v48   ;;  %v799_v34 = vpop.f32.mrf.mxu1 }
 0x12b   :  { %v800_v35 = vadd.f32 %v799_v34, %v750_v31  ;;  %v4549_v31 = vld [vmem:[%s7574_s29 + $0x154] sm:$0xf]  ;;  %v4303_v34 = vld [vmem:[%s7574_s29 + $0x15c] sm:$0xf0] }
 0x12d   :  { %1281 = vrot.lane.b32.xlu2 %v800_v35, %s4978_s2  ;;  %1374 = vperm.xlu1 %4662, %v797_v26  }
 0x12e   :  { %4664 = vset.pattern.permute.xlu2 %v7561_v23 }
 0x131   :  { %v752_v37 = vpop.f32.mrf.mxu0 }
 0x132   :  { %1277 = vrot.lane.b32.xlu0 %v795_v28, %s4978_s2  ;;  %v801_v38 = vpop.f32.mrf.mxu1 }
 0x133   :  { %v5572_v56 = vadd.f32 %v801_v38, %v752_v37  ;;  %4659 = vset.pattern.permute.xlu0 %v7563_v13 }
 0x135   :  { %1378 = vperm.xlu2 %4664, %v800_v35   ;;  %1382 = vperm.xlu1 %4662, %v5572_v56  }
 0x139   :  { %v755_v39 = vpop.f32.mrf.mxu0 }
 0x13a   :  { %883 = vperm.xlu0 %4659, %v795_v28   ;;  %v804_v40 = vpop.f32.mrf.mxu1 }
 0x13b   :  { %v805_v43 = vadd.f32 %v804_v40, %v755_v39 }
 0x13d   :  { %4665 = vset.pattern.permute.xlu2 %v7563_v13  ;;  %1285 = vrot.lane.b32.xlu1 %v805_v43, %s4978_s2 }
 0x13e   :  { %903 = vperm.xlu2 %4665, %v805_v43  }
 0x141   :  { %v757_v4 = vpop.f32.mrf.mxu0 }
 0x142   :  { %4660 = vset.pattern.permute.xlu0 %v7561_v23  ;;  %v806_v44 = vpop.f32.mrf.mxu1 }
 0x143   :  { %v5580_v45 = vadd.f32 %v806_v44, %v757_v4  ;;  %1370 = vperm.xlu0 %4660, %v795_v28   ;;  %v4306_v4 = vor.u32 %v4549_v31, %v4303_v34  ;;  %v4546_v44 = vld [vmem:[%s7574_s29 + $0x13c] sm:$0xf]  ;;  %v4617_v34 = vld [vmem:[%s7576_s26 + $0x8] sm:$0xff]  }
 0x146   :  { %1287 = vrot.lane.b32.xlu2 %v5580_v45, %s4978_s2 }
 0x147   :  { %4667 = vset.pattern.permute.xlu2 %v7561_v23 }
 0x149   :  { %v760_v46 = vpop.f32.mrf.mxu0 }
 0x14a   :  { %v809_v47 = vpop.f32.mrf.mxu1 }
 0x14b   :  { %4663 = vset.pattern.permute.xlu0 %v7563_v13  ;;  %v5594_v55 = vadd.f32 %v809_v47, %v760_v46  ;;  %v4291_v46 = vld [vmem:[%s7574_s29 + $0x144] sm:$0xf0] }
 0x14c   :  { %893 = vperm.xlu0 %4663, %v800_v35  }
 0x14e   :  { %1390 = vperm.xlu2 %4667, %v5580_v45  }
 0x14f   :  { %v859_v2 = vpop.permute.xlu2 %858 }
 0x151   :  { %v762_v17 = vpop.f32.mrf.mxu0 }
 0x152   :  { %v811_v49 = vpop.f32.mrf.mxu1 }
 0x153   :  { %v5587_v51 = vadd.f32 %v811_v49, %v762_v17  ;;  %v5695_v49 = vld [vmem:[%s7576_s26 + $0x18] sm:$0xff]  }
 0x154   :  { %1283 = vrot.lane.b32.xlu0 %v5572_v56, %s4978_s2 }
 0x155   :  { %1291 = vrot.lane.b32.xlu1 %v5587_v51, %s4978_s2  ;;  %4666 = vset.pattern.permute.xlu0 %v7561_v23 }
 0x157   :  { %v864_v32 = vpop.permute.xlu2 %863 }
 0x159   :  { %v765_v60 = vpop.f32.mrf.mxu0 }
 0x15a   :  { %v814_v27 = vpop.f32.mrf.mxu1 }
 0x15b   :  { %v5605_v62 = vadd.f32 %v814_v27, %v765_v60 }
 0x15c   :  { %1386 = vperm.xlu0 %4666, %v805_v43  }
 0x15d   :  { %1293 = vrot.lane.b32.xlu2 %v5605_v62, %s4978_s2 }
 0x160   :  { %v5629_v7 = vpop.permute.xlu0 %1265  ;;  %v5637_v14 = vpop.permute.xlu2 %1354 }
 0x161   :  { %v767_v63 = vpop.f32.mrf.mxu0 }
 0x162   :  { %v816_v0 = vpop.f32.mrf.mxu1 }
 0x164   :  { %1289 = vrot.lane.b32.xlu0 %v5594_v55, %s4978_s2 }
 0x165   :  { %4671 = vset.pattern.permute.xlu0 %v7563_v13 }
 0x168   :  { %v5633_v10 = vpop.permute.xlu0 %1346  ;;  %v5643_v15 = vpop.permute.xlu2 %1273 }
 0x170   :  { %v5639_v8 = vpop.permute.xlu0 %1267  ;;  %v5649_v16 = vpop.permute.xlu2 %1275 }
 0x18a   :  { %819 = vxpose.xlu1.b32.start [1/16] (narrow) %v5507_v50, 8  ;;  %v854_v50 = vpop.permute.xlu1 %853 }
 0x192   :  { %820 = vxpose.xlu1.b32.cont [2/16] (narrow) %v5515_v1, 8  ;;  %v5610_v1 = vadd.f32 %v816_v0, %v767_v63  ;;  %v5614_v52 = vpop.permute.xlu1 %1350 }
 0x194   :  { %1295 = vrot.lane.b32.xlu0 %v5610_v1, %s4978_s2 }
 0x19a   :  { %821 = vxpose.xlu1.b32.cont [3/16] (narrow) %v5522_v9, 8  ;;  %v5617_v53 = vpop.permute.xlu1 %1269 }
 0x1a2   :  { %822 = vxpose.xlu1.b32.cont [4/16] (narrow) %v5538_v20, 8  ;;  %v5620_v3 = vpop.permute.xlu1 %1271  ;;  %v5645_v20 = vpop.permute.xlu0 %1358 }
 0x1aa   :  { %823 = vxpose.xlu1.b32.cont [5/16] (narrow) %v5546_v33, 8  ;;  %v5623_v41 = vpop.permute.xlu1 %868  ;;  %v874_v33 = vpop.permute.xlu0 %873 }
 0x1b2   :  { %824 = vxpose.xlu1.b32.cont [6/16] (narrow) %v5555_v48, 8  ;;  %v5626_v42 = vpop.permute.xlu1 %1279  ;;  %v5697_v60 = vpop.permute.xlu0 %1362 }
 0x1ba   :  { %825 = vxpose.xlu1.b32.cont [7/16] (narrow) %v795_v28, 8  ;;  %v5631_v9 = vpop.permute.xlu1 %1374 }
 0x1c2   :  { %826 = vxpose.xlu1.b32.cont [8/16] (narrow) %v797_v26, 8  ;;  %v5635_v12 = vpop.permute.xlu1 %1382  ;;  %v4318_v26 = vor.u32 %v4552_v57, %v4315_v25 }
 0x1c4   :  { %672 = vmatpush.bf16.msrb.mxu3 %v4318_v26 }
 0x1c8   :  { %673 = vmatpush.bf16.msrb.mxu3 %v4306_v4  ;;  %v4279_v4 = vld [vmem:[%s7574_s29 + $0x12c] sm:$0xf0] }
 0x1ca   :  { %827 = vxpose.xlu1.b32.cont [9/16] (narrow) %v800_v35, 8  ;;  %v5641_v11 = vpop.permute.xlu1 %1285  ;;  %v889_v35 = vpop.permute.xlu2 %888 }
 0x1d2   :  { %828 = vxpose.xlu1.b32.cont [10/16] (narrow) %v5572_v56, 8  ;;  %v5647_v54 = vpop.permute.xlu1 %1291 }
 0x1da   :  { %829 = vxpose.xlu1.b32.cont [11/16] (narrow) %v805_v43, 8 }
 0x1e2   :  { %830 = vxpose.xlu1.b32.cont [12/16] (narrow) %v5580_v45, 8 }
 0x1ea   :  { %831 = vxpose.xlu1.b32.cont [13/16] (narrow) %v5594_v55, 8 }
 0x1f2   :  { %832 = vxpose.xlu1.b32.cont [14/16] (narrow) %v5587_v51, 8 }
 0x1fa   :  { %833 = vxpose.xlu1.b32.cont [15/16] (narrow) %v5605_v62, 8 }
 0x202   :  { %834 = vxpose.xlu1.b32.end [16/16] (narrow) %v5610_v1, 8 }
 0x22e   :  { %v835_v48 = vpop.trf.xlu1 }
 0x22f   :  { %v5660_v24 = vperm.slane %v835_v48, 0  ;;  %v4600_v48 = vunpack.c.h.bf16 %v5695_v49 }
 0x231   :  { %v932_v37 = vadd.f32 %v5660_v24, %v854_v50  ;;  %v936_v38 = vadd.f32 %v5660_v24, %v874_v33  ;;  %v933_v40 = vadd.f32 %v5660_v24, %v859_v2  ;;  %v939_v43 = vadd.f32 %v5660_v24, %v889_v35 }
 0x232   :  { %v4588_v2 = vunpack.c.h.bf16 %v4586_v61  ;;  %v4294_v33 = vor.u32 %v4546_v44, %v4291_v46  ;;  %vm5714_vm7 = vcmp.gt.f32.partialorder %v4600_v48, 0.0  ;;  %v934_v31 = vadd.f32 %v5660_v24, %v864_v32  ;;  %v4543_v32 = vld [vmem:[%s7574_s29 + $0x124] sm:$0xf] }
 0x233   :  { %vm948_vm2 = vcmp.gt.f32.partialorder %v932_v37, 0.0  ;;  %v964_v47 = vmul.f32 0.2, %v932_v37  ;;  %vm952_vm3 = vcmp.gt.f32.partialorder %v936_v38, 0.0  ;;  %v968_v17 = vmul.f32 0.2, %v936_v38 }
 0x234   :  { %v965_v36 = vmul.f32 0.2, %v933_v40  ;;  %v971_v21 = vmul.f32 0.2, %v939_v43  ;;  %vm949_vm4 = vcmp.gt.f32.partialorder %v933_v40, 0.0  ;;  %vm955_vm5 = vcmp.gt.f32.partialorder %v939_v43, 0.0  ;;  %674 = vmatpush.bf16.msrb.mxu3 %v4294_v33 }
 0x235   :  { %v980_v27 = vsel %vm948_vm2, %v932_v37, %v964_v47  ;;  %v984_v50 = vsel %vm952_vm3, %v936_v38, %v968_v17  ;;  %vm5710_vm6 = vcmp.gt.f32.partialorder %v4588_v2, 0.0  ;;  %v879_v38 = vpop.permute.xlu0 %878  ;;  %vm950_vm8 = vcmp.gt.f32.partialorder %v934_v31, 0.0  ;;  %v4540_v33 = vld [vmem:[%s7574_s29 + $0x10c] sm:$0xf] }
 0x236   :  { %v5701_v63 = vsel %vm5674_vm0, %v980_v27, -1e+30  ;;  %v5705_v0 = vsel %vm5680_vm1, %v984_v50, -1e+30  ;;  %v981_v25 = vsel %vm949_vm4, %v933_v40, %v965_v36  ;;  %v987_v26 = vsel %vm955_vm5, %v939_v43, %v971_v21  ;;  %v4267_v36 = vld [vmem:[%s7574_s29 + $0x114] sm:$0xf0] }
 0x237   :  { %1012 = vmax.xlane.f32.xlu0 %v5701_v63  ;;  %1020 = vmax.xlane.f32.xlu2 %v5705_v0  ;;  %v5724_v35 = vsel %vm5710_vm6, %v981_v25, -1e+30  ;;  %v5728_v37 = vsel %vm5714_vm7, %v987_v26, -1e+30  ;;  %v4591_v40 = vunpack.c.l.bf16 %v4617_v34  ;;  %v966_v43 = vmul.f32 0.2, %v934_v31 }
 0x238   :  { %7585 = vst [vmem:[#allocation5_spill] sm:$0xff] %v5728_v37  ;;  %v935_v47 = vadd.f32 %v5660_v24, %v5623_v41  ;;  %v4282_v17 = vor.u32 %v4543_v32, %v4279_v4  ;;  %v4592_v50 = vunpack.c.h.bf16 %v4617_v34  ;;  %v4270_v48 = vor.u32 %v4540_v33, %v4267_v36  ;;  %v4537_v21 = vld [vmem:[%s7574_s29 + $0xf4] sm:$0xf]  ;;  %v4255_v25 = vld [vmem:[%s7574_s29 + $0xfc] sm:$0xf0] }
 0x239   :  { %vm5738_vm9 = vcmp.gt.f32.partialorder %v4591_v40, 0.0  ;;  %v982_v46 = vsel %vm950_vm8, %v934_v31, %v966_v43  ;;  %v4258_v34 = vor.u32 %v4537_v21, %v4255_v25  ;;  %v4534_v43 = vld [vmem:[%s7574_s29 + $0xdc] sm:$0xf]  ;;  %v4243_v32 = vld [vmem:[%s7574_s29 + $0xe4] sm:$0xf0]  ;;  %v4596_v33 = vunpack.c.h.bf16 %v5657_v22 }
 0x23a   :  { %675 = vmatpush.bf16.msrb.mxu3 %v4282_v17  ;;  %v5746_v27 = vsel %vm5738_vm9, %v982_v46, -1e+30  ;;  %v967_v2 = vmul.f32 0.2, %v935_v47  ;;  %vm951_vm10 = vcmp.gt.f32.partialorder %v935_v47, 0.0  ;;  %vm5763_vm11 = vcmp.gt.f32.partialorder %v4592_v50, 0.0 }
 0x23b   :  { %v4531_v4 = vld [vmem:[%s7574_s29 + $0xc4] sm:$0xf]  ;;  %v4246_v46 = vor.u32 %v4534_v43, %v4243_v32  ;;  %vm5788_vm13 = vcmp.gt.f32.partialorder %v4596_v33, 0.0  ;;  %v4599_v22 = vunpack.c.l.bf16 %v5695_v49 }
 0x23c   :  { %v983_v31 = vsel %vm951_vm10, %v935_v47, %v967_v2  ;;  %v4231_v47 = vld [vmem:[%s7574_s29 + $0xcc] sm:$0xf0]  ;;  %v937_v2 = vadd.f32 %v5660_v24, %v879_v38 }
 0x23d   :  { %v5755_v41 = vpop.permute.xlu0 %1366  ;;  %v5769_v40 = vsel %vm5763_vm11, %v983_v31, -1e+30  ;;  %v4234_v50 = vor.u32 %v4531_v4, %v4231_v47  ;;  %vm5799_vm15 = vcmp.gt.f32.partialorder %v4599_v22, 0.0 }
 0x23e   :  { %676 = vmatpush.bf16.msrb.mxu3 %v4270_v48  ;;  %v969_v36 = vmul.f32 0.2, %v937_v2  ;;  %vm953_vm12 = vcmp.gt.f32.partialorder %v937_v2, 0.0 }
 0x23f   :  { %1014 = vmax.xlane.f32.xlu0 %v5724_v35  ;;  %1026 = vmax.xlane.f32.xlu2 %v5728_v37 }
 0x240   :  { %v985_v25 = vsel %vm953_vm12, %v937_v2, %v969_v36 }
 0x242   :  { %677 = vmatpush.bf16.msrb.mxu3 %v4258_v34  ;;  %v5795_v34 = vsel %vm5788_vm13, %v985_v25, -1e+30 }
 0x245   :  { %v1278_v17 = vpop.permute.xlu0 %1277 }
 0x246   :  { %678 = vmatpush.bf16.msrb.mxu3 %v4246_v46 }
 0x247   :  { %1016 = vmax.xlane.f32.xlu0 %v5746_v27 }
 0x24a   :  { %679 = vmatpush.bf16.msrb.mxu3 %v4234_v50 }
 0x24d   :  { %680 = vmatmul.bf16.vlgmr.msrb.gmra.mxu3 %v5204_v58  ;;  %v884_v48 = vpop.permute.xlu0 %883 }
 0x24e   :  { %v938_v31 = vadd.f32 %v5660_v24, %v884_v48 }
 0x24f   :  { %1018 = vmax.xlane.f32.xlu0 %v5769_v40 }
 0x250   :  { %v970_v38 = vmul.f32 0.2, %v938_v31  ;;  %vm954_vm14 = vcmp.gt.f32.partialorder %v938_v31, 0.0 }
 0x252   :  { %v986_v43 = vsel %vm954_vm14, %v938_v31, %v970_v38 }
 0x253   :  { %v5806_v32 = vsel %vm5799_vm15, %v986_v43, -1e+30 }
 0x255   :  { %4668 = vset.pattern.permute.xlu1 %v7563_v13 }
 0x25d   :  { %685 = vmatmul.bf16.gmra.mxu3 %v5288_v29  ;;  %v5821_v29 = vpop.permute.xlu0 %1370 }
 0x262   :  { %1022 = vmax.xlane.f32.xlu1 %v5795_v34 }
 0x268   :  { %1313 = vxpose.xlu2.b32.start [1/16] (narrow) %v5629_v7, 8 }
 0x26a   :  { %1024 = vmax.xlane.f32.xlu1 %v5806_v32 }
 0x26d   :  { %690 = vmatmul.bf16.gmra.mxu3 %v5372_v5  ;;  %v1282_v5 = vpop.permute.xlu2 %1281 }
 0x270   :  { %1314 = vxpose.xlu2.b32.cont [2/16] (narrow) %v5639_v8, 8  ;;  %v632_v8 = vpop.f32.mrf.mxu2 }
 0x278   :  { %1315 = vxpose.xlu2.b32.cont [3/16] (narrow) %v5617_v53, 8 }
 0x27d   :  { %695 = vmatmul.bf16.gmra.mxu3 %v5408_v18  ;;  %v5826_v18 = vpop.permute.xlu2 %1378 }
 0x280   :  { %1316 = vxpose.xlu2.b32.cont [4/16] (narrow) %v5620_v3, 8 }
 0x283   :  { %898 = vperm.xlu1 %4668, %v5572_v56   ;;  %v894_v56 = vpop.permute.xlu0 %893 }
 0x285   :  { %v5828_v53 = vpop.permute.xlu2 %903 }
 0x288   :  { %1317 = vxpose.xlu2.b32.cont [5/16] (narrow) %v5643_v15, 8 }
 0x28b   :  { %908 = vperm.xlu1 %4668, %v5580_v45   ;;  %v1284_v45 = vpop.permute.xlu0 %1283 }
 0x28d   :  { %700 = vmatmul.bf16.gmra.mxu3 %v5206_v59  ;;  %v1288_v3 = vpop.permute.xlu2 %1287 }
 0x290   :  { %1318 = vxpose.xlu2.b32.cont [6/16] (narrow) %v5649_v16, 8 }
 0x293   :  { %918 = vperm.xlu1 %4668, %v5587_v51   ;;  %v5832_v59 = vpop.permute.xlu0 %1386 }
 0x295   :  { %v5835_v7 = vpop.permute.xlu2 %1390 }
 0x298   :  { %1319 = vxpose.xlu2.b32.cont [7/16] (narrow) %v1278_v17, 8 }
 0x29b   :  { %4673 = vset.pattern.permute.xlu1 %v7561_v23 }
 0x29d   :  { %705 = vmatmul.bf16.gmra.mxu3 %v5290_v30  ;;  %v1294_v30 = vpop.permute.xlu2 %1293 }
 0x2a0   :  { %1320 = vxpose.xlu2.b32.cont [8/16] (narrow) %v5626_v42, 8  ;;  %v1290_v42 = vpop.permute.xlu0 %1289 }
 0x2a8   :  { %1321 = vxpose.xlu2.b32.cont [9/16] (narrow) %v1282_v5, 8 }
 0x2ad   :  { %710 = vmatmul.bf16.gmra.mxu3 %v5374_v6  ;;  %v5840_v6 = vpop.f32.mrf.mxu2 }
 0x2b0   :  { %1322 = vxpose.xlu2.b32.cont [10/16] (narrow) %v1284_v45, 8 }
 0x2b5   :  { %v637_v4 = vpop.f32.mrf.mxu2 }
 0x2b8   :  { %1323 = vxpose.xlu2.b32.cont [11/16] (narrow) %v5641_v11, 8  ;;  %v1296_v11 = vpop.permute.xlu0 %1295 }
 0x2bd   :  { %715 = vmatmul.bf16.gmra.mxu3 %v5410_v19  ;;  %v5846_v19 = vpop.xlane.xlu2 %1020 }
 0x2c0   :  { %1324 = vxpose.xlu2.b32.cont [12/16] (narrow) %v1288_v3, 8  ;;  %v5848_v17 = vpop.xlane.xlu0 %1012 }
 0x2c5   :  { %v5854_v2 = vpop.xlane.xlu2 %1026 }
 0x2c6   :  { %7594 = vst [vmem:[#allocation6_spill] sm:$0xff] %v5854_v2 }
 0x2c8   :  { %1325 = vxpose.xlu2.b32.cont [13/16] (narrow) %v1290_v42, 8  ;;  %v5856_v36 = vpop.xlane.xlu0 %1014 }
 0x2cd   :  { %v7618_v21 = vld [vmem:[#allocation6_spill] sm:$0xff] }
 0x2d0   :  { %1326 = vxpose.xlu2.b32.cont [14/16] (narrow) %v5647_v54, 8  ;;  %v681_v15 = vpop.f32.mrf.mxu3  ;;  %v5850_v54 = vpop.f32.mrf.mxu2 }
 0x2d1   :  { %v5838_v16 = vadd.f32 %v681_v15, %v632_v8  ;;  %v1017_v3 = vpop.xlane.xlu0 %1016  ;;  %v5874_v15 = vld [vmem:[%s7576_s26 + $0x20] sm:$0xff]  }
 0x2d2   :  { %v4604_v39 = vunpack.c.h.bf16 %v5874_v15 }
 0x2d4   :  { %vm5957_vm10 = vcmp.gt.f32.partialorder %v4604_v39, 0.0 }
 0x2d5   :  { %v5917_v57 = vpop.xlane.xlu1 %1022 }
 0x2d8   :  { %1327 = vxpose.xlu2.b32.cont [15/16] (narrow) %v1294_v30, 8  ;;  %v5842_v49 = vpop.f32.mrf.mxu3  ;;  %v642_v33 = vpop.f32.mrf.mxu2  ;;  %v940_v30 = vadd.f32 %v5660_v24, %v894_v56 }
 0x2da   :  { %vm956_vm4 = vcmp.gt.f32.partialorder %v940_v30, 0.0 }
 0x2e0   :  { %1328 = vxpose.xlu2.b32.end [16/16] (narrow) %v1296_v11, 8  ;;  %v686_v46 = vpop.f32.mrf.mxu3  ;;  %v5862_v38 = vpop.f32.mrf.mxu2 }
 0x2e1   :  { %v5844_v47 = vadd.f32 %v686_v46, %v637_v4  ;;  %v4603_v46 = vunpack.c.l.bf16 %v5874_v15 }
 0x2e8   :  { %v5852_v50 = vpop.f32.mrf.mxu3 }
 0x2f0   :  { %v691_v48 = vpop.f32.mrf.mxu3 }
 0x2f1   :  { %v5858_v25 = vadd.f32 %v691_v48, %v642_v33  ;;  %v972_v33 = vmul.f32 0.2, %v940_v30  ;;  %v1046_v48 = vsub.f32 %v5746_v27, %v1017_v3  ;;  %v1019_v27 = vpop.xlane.xlu0 %1018 }
 0x2f8   :  { %v5868_v45 = vpop.f32.mrf.mxu3 }
 0x300   :  { %v696_v61 = vpop.f32.mrf.mxu3 }
 0x301   :  { %v1329_v31 = vpop.trf.xlu2 }
 0x302   :  { %v5860_v22 = vperm.slane %v1329_v31, 0  ;;  %v647_v31 = vpop.f32.mrf.mxu2 }
 0x303   :  { %v5894_v28 = vadd.f32 %v696_v61, %v647_v31 }
 0x304   :  { %v1417_v43 = vadd.f32 %v5860_v22, %v5631_v9  ;;  %v1410_v5 = vadd.f32 %v5860_v22, %v5633_v10  ;;  %v1411_v9 = vadd.f32 %v5860_v22, %v5614_v52  ;;  %v1419_v39 = vadd.f32 %v5860_v22, %v5635_v12 }
 0x306   :  { %vm1433_vm2 = vcmp.gt.f32.partialorder %v1417_v43, 0.0  ;;  %v1449_v42 = vmul.f32 0.2, %v1417_v43  ;;  %vm1426_vm3 = vcmp.gt.f32.partialorder %v1410_v5, 0.0  ;;  %v1442_v8 = vmul.f32 0.2, %v1410_v5 }
 0x307   :  { %v1443_v52 = vmul.f32 0.2, %v1411_v9  ;;  %vm1427_vm5 = vcmp.gt.f32.partialorder %v1411_v9, 0.0  ;;  %vm1435_vm12 = vcmp.gt.f32.partialorder %v1419_v39, 0.0 }
 0x308   :  { %v1465_v11 = vsel %vm1433_vm2, %v1417_v43, %v1449_v42  ;;  %v1458_v4 = vsel %vm1426_vm3, %v1410_v5, %v1442_v8  ;;  %v988_v5 = vsel %vm956_vm4, %v940_v30, %v972_v33  ;;  %v1064_v42 = vmul.f32 1.442695, %v1046_v48 }
 0x309   :  { %v5880_v10 = vsel %vm5714_vm7, %v1465_v11, -1e+30  ;;  %v5885_v56 = vsel %vm5674_vm0, %v1458_v4, -1e+30  ;;  %vm5890_vm7 = vcmp.gt.f32.partialorder %v4603_v46, 0.0  ;;  %v1459_v8 = vsel %vm1427_vm5, %v1411_v9, %v1443_v52 }
 0x30a   :  { %1504 = vmax.xlane.f32.xlu1 %v5880_v10  ;;  %1490 = vmax.xlane.f32.xlu0 %v5885_v56  ;;  %v1412_v11 = vadd.f32 %v5860_v22, %v5637_v14  ;;  %v5900_v3 = vsel %vm5890_vm7, %v988_v5, -1e+30  ;;  %v5905_v4 = vsel %vm5710_vm6, %v1459_v8, -1e+30  ;;  %4688 = vpow2.f32 %v1064_v42  ;;  %v5909_v46 = vpop.f32.mrf.mxu2  ;;  %v5911_v14 = vpop.f32.mrf.mxu3 }
 0x30b   :  { %7597 = vst [vmem:[#allocation7_spill] sm:$0xff] %v5900_v3  ;;  %v1047_v30 = vsub.f32 %v5769_v40, %v1019_v27  ;;  %v1413_v52 = vadd.f32 %v5860_v22, %v5645_v20 }
 0x30c   :  { %v1444_v9 = vmul.f32 0.2, %v1412_v11  ;;  %vm1428_vm0 = vcmp.gt.f32.partialorder %v1412_v11, 0.0 }
 0x30d   :  { %v1066_v33 = vmul.f32 1.442695, %v1047_v30  ;;  %v1445_v61 = vmul.f32 0.2, %v1413_v52  ;;  %vm1429_vm6 = vcmp.gt.f32.partialorder %v1413_v52, 0.0 }
 0x30e   :  { %v1460_v48 = vsel %vm1428_vm0, %v1412_v11, %v1444_v9  ;;  %v1414_v11 = vadd.f32 %v5860_v22, %v5697_v60  ;;  %v1416_v60 = vadd.f32 %v5860_v22, %v5821_v29 }
 0x30f   :  { %v5921_v40 = vsel %vm5738_vm9, %v1460_v48, -1e+30  ;;  %4690 = vpow2.f32 %v1066_v33  ;;  %v1461_v20 = vsel %vm1429_vm6, %v1413_v52, %v1445_v61  ;;  %v5939_v33 = vpop.xlane.xlu1 %1024 }
 0x310   :  { %v5915_v31 = vpop.eup %4688  ;;  %v5933_v44 = vsel %vm5763_vm11, %v1461_v20, -1e+30  ;;  %v1446_v30 = vmul.f32 0.2, %v1414_v11  ;;  %vm1430_vm8 = vcmp.gt.f32.partialorder %v1414_v11, 0.0  ;;  %vm1432_vm9 = vcmp.gt.f32.partialorder %v1416_v60, 0.0 }
 0x311   :  { %7598 = vst [vmem:[#allocation8_spill] sm:$0xff] %v5915_v31  ;;  %v1448_v61 = vmul.f32 0.2, %v1416_v60 }
 0x312   :  { %1028 = vmax.xlane.f32.xlu1 %v5900_v3  ;;  %1492 = vmax.xlane.f32.xlu0 %v5905_v4  ;;  %v652_v5 = vpop.f32.mrf.mxu2  ;;  %v701_v42 = vpop.f32.mrf.mxu3  ;;  %v1462_v52 = vsel %vm1430_vm8, %v1414_v11, %v1446_v30 }
 0x313   :  { %v5925_v8 = vadd.f32 %v701_v42, %v652_v5  ;;  %v5947_v26 = vsel %vm5680_vm1, %v1462_v52, -1e+30  ;;  %v1464_v13 = vsel %vm1432_vm9, %v1416_v60, %v1448_v61  ;;  %v1418_v60 = vadd.f32 %v5860_v22, %v5826_v18 }
 0x314   :  { %v5953_v11 = vsel %vm5799_vm15, %v1464_v13, -1e+30  ;;  %v7603_v18 = vmov 1  }
 0x315   :  { %v5929_v27 = vpop.eup %4690  ;;  %v1450_v58 = vmul.f32 0.2, %v1418_v60  ;;  %vm1434_vm11 = vcmp.gt.f32.partialorder %v1418_v60, 0.0 }
 0x316   :  { %7599 = vst [vmem:[#allocation9_spill] sm:$0xff] %v5929_v27 }
 0x317   :  { %v899_v42 = vpop.permute.xlu1 %898 }
 0x318   :  { %v941_v23 = vadd.f32 %v5660_v24, %v899_v42  ;;  %v1466_v42 = vsel %vm1434_vm11, %v1418_v60, %v1450_v58 }
 0x31a   :  { %1096 = vadd.xlane.f32.xlu1 %v5915_v31  ;;  %1494 = vmax.xlane.f32.xlu0 %v5921_v40  ;;  %v5937_v9 = vpop.f32.mrf.mxu2  ;;  %v5941_v48 = vpop.f32.mrf.mxu3  ;;  %v973_v29 = vmul.f32 0.2, %v941_v23  ;;  %vm957_vm1 = vcmp.gt.f32.partialorder %v941_v23, 0.0 }
 0x31c   :  { %v989_v37 = vsel %vm957_vm1, %v941_v23, %v973_v29  ;;  %v5973_v23 = vsel %vm5890_vm7, %v1466_v42, -1e+30  ;;  %v1044_v29 = vsub.f32 %v5701_v63, %v5848_v17  ;;  %v1045_v42 = vsub.f32 %v5724_v35, %v5856_v36 }
 0x31d   :  { %v5965_v13 = vsel %vm5957_vm10, %v989_v37, -1e+30  ;;  %7602 = vst [vmem:[#allocation10_spill] sm:$0xff] %v5973_v23  ;;  %v1451_v37 = vmul.f32 0.2, %v1419_v39  ;;  %v7605_v63 = vmov 3  }
 0x31e   :  { %v1060_v2 = vmul.f32 1.442695, %v1044_v29  ;;  %v1062_v31 = vmul.f32 1.442695, %v1045_v42 }
 0x31f   :  { %v1467_v58 = vsel %vm1435_vm12, %v1419_v39, %v1451_v37 }
 0x320   :  { %v5983_v12 = vsel %vm5957_vm10, %v1467_v58, -1e+30  ;;  %4692 = vpow2.f32 %v1060_v2 }
 0x321   :  { %7604 = vst [vmem:[#allocation11_spill] sm:$0xff] %v5983_v12  ;;  %4694 = vpow2.f32 %v1062_v31  ;;  %v704_v31 = vadd.f32 %v5941_v48, %v5937_v9  ;;  %v694_v9 = vadd.f32 %v5868_v45, %v5862_v38  ;;  %v6021_v38 = vld [vmem:[%s7576_s26 + $0x30] sm:$0xff]  }
 0x322   :  { %1098 = vadd.xlane.f32.xlu1 %v5929_v27  ;;  %1496 = vmax.xlane.f32.xlu0 %v5933_v44  ;;  %v657_v5 = vpop.f32.mrf.mxu2  ;;  %v706_v20 = vpop.f32.mrf.mxu3 }
 0x323   :  { %v707_v35 = vadd.f32 %v706_v20, %v657_v5  ;;  %v1646_v5 = vpack.c.bf16 %v704_v31, %v5925_v8  ;;  %v4621_v20 = vld [vmem:[%s7576_s26 + $0x28] sm:$0xff]   ;;  %v689_v8 = vadd.f32 %v5852_v50, %v5850_v54  ;;  %v684_v54 = vadd.f32 %v5842_v49, %v5840_v6 }
 0x325   :  { %v1643_v50 = vpack.c.bf16 %v689_v8, %v5844_v47 }
 0x326   :  { %v5989_v17 = vpop.eup %4692 }
 0x327   :  { %v5993_v27 = vpop.eup %4694 }
 0x32a   :  { %1498 = vmax.xlane.f32.xlu0 %v5947_v26  ;;  %v659_v30 = vpop.f32.mrf.mxu2  ;;  %v708_v52 = vpop.f32.mrf.mxu3 }
 0x32b   :  { %v709_v36 = vadd.f32 %v708_v52, %v659_v30  ;;  %v4607_v30 = vunpack.c.l.bf16 %v4621_v20 }
 0x32d   :  { %vm6011_vm15 = vcmp.gt.f32.partialorder %v4607_v30, 0.0 }
 0x332   :  { %1502 = vmax.xlane.f32.xlu0 %v5953_v11  ;;  %v662_v15 = vpop.f32.mrf.mxu2  ;;  %v711_v61 = vpop.f32.mrf.mxu3 }
 0x333   :  { %v712_v29 = vadd.f32 %v711_v61, %v662_v15  ;;  %v942_v15 = vadd.f32 %v5660_v24, %v5828_v53  ;;  %v699_v61 = vadd.f32 %v5911_v14, %v5909_v46 }
 0x335   :  { %v974_v52 = vmul.f32 0.2, %v942_v15  ;;  %v1645_v48 = vpack.c.bf16 %v699_v61, %v5894_v28  ;;  %vm958_vm14 = vcmp.gt.f32.partialorder %v942_v15, 0.0  ;;  %v4612_v28 = vunpack.c.h.bf16 %v6021_v38 }
 0x337   :  { %v990_v14 = vsel %vm958_vm14, %v942_v15, %v974_v52  ;;  %vm6035_vm3 = vcmp.gt.f32.partialorder %v4612_v28, 0.0 }
 0x338   :  { %v6025_v45 = vsel %vm6011_vm15, %v990_v14, -1e+30 }
 0x33a   :  { %1030 = vmax.xlane.f32.xlu0 %v5965_v13  ;;  %v713_v60 = vpop.f32.mrf.mxu3 }
 0x33b   :  { %1398 = vperm.xlu1 %4673, %v5587_v51   ;;  %v664_v51 = vpop.f32.mrf.mxu2 }
 0x33c   :  { %v714_v58 = vadd.f32 %v713_v60, %v664_v51  ;;  %v1644_v51 = vpack.c.bf16 %v694_v9, %v5858_v25  ;;  %v1415_v25 = vadd.f32 %v5860_v22, %v5755_v41 }
 0x33e   :  { %v1648_v42 = vpack.c.bf16 %v714_v58, %v712_v29  ;;  %vm1431_vm4 = vcmp.gt.f32.partialorder %v1415_v25, 0.0 }
 0x342   :  { %4669 = vset.pattern.permute.xlu2 %v7603_v18  ;;  %1506 = vmax.xlane.f32.xlu0 %v5973_v23  ;;  %v716_v23 = vpop.f32.mrf.mxu3 }
 0x343   :  { %1402 = vperm.xlu1 %4673, %v5605_v62   ;;  %v667_v43 = vpop.f32.mrf.mxu2 }
 0x344   :  { %v717_v39 = vadd.f32 %v716_v23, %v667_v43  ;;  %v1647_v23 = vpack.c.bf16 %v709_v36, %v707_v35 }
 0x349   :  { %913 = vperm.xlu2 %4669, %v5594_v55  }
 0x34a   :  { %1508 = vmax.xlane.f32.xlu0 %v5983_v12  ;;  %v718_v37 = vpop.f32.mrf.mxu3 }
 0x34b   :  { %v669_v3 = vpop.f32.mrf.mxu2 }
 0x34c   :  { %v719_v2 = vadd.f32 %v718_v37, %v669_v3  ;;  %v1642_v3 = vpack.c.bf16 %v684_v54, %v5838_v16 }
 0x34e   :  { %v1649_v12 = vpack.c.bf16 %v719_v2, %v717_v39  ;;  %v1447_v39 = vmul.f32 0.2, %v1415_v25  ;;  %v4608_v2 = vunpack.c.h.bf16 %v4621_v20 }
 0x350   :  { %1654 = vmatpush.bf16.msra.mxu3 %v1649_v12  ;;  %vm6057_vm7 = vcmp.gt.f32.partialorder %v4608_v2, 0.0 }
 0x351   :  { %4670 = vset.pattern.permute.xlu2 %v7605_v63 }
 0x352   :  { %1394 = vperm.xlu2 %4670, %v5594_v55   ;;  %1092 = vadd.xlane.f32.xlu0 %v5989_v17  ;;  %v909_v55 = vpop.permute.xlu1 %908 }
 0x353   :  { %v943_v37 = vadd.f32 %v5660_v24, %v909_v55 }
 0x354   :  { %1655 = vmatpush.bf16.msra.mxu3 %v1648_v42  ;;  %v1421_v42 = vadd.f32 %v5860_v22, %v5835_v7 }
 0x355   :  { %v975_v35 = vmul.f32 0.2, %v943_v37  ;;  %vm959_vm5 = vcmp.gt.f32.partialorder %v943_v37, 0.0 }
 0x357   :  { %v991_v36 = vsel %vm959_vm5, %v943_v37, %v975_v35 }
 0x358   :  { %1656 = vmatpush.bf16.msra.mxu3 %v1647_v23  ;;  %v6067_v55 = vsel %vm6057_vm7, %v991_v36, -1e+30  ;;  %v1453_v23 = vmul.f32 0.2, %v1421_v42 }
 0x35a   :  { %4672 = vset.pattern.permute.xlu2 %v7603_v18  ;;  %1094 = vadd.xlane.f32.xlu0 %v5993_v27  ;;  %v919_v18 = vpop.permute.xlu1 %918 }
 0x35b   :  { %v945_v53 = vadd.f32 %v5660_v24, %v919_v18 }
 0x35c   :  { %1657 = vmatpush.bf16.msra.mxu3 %v1646_v5 }
 0x35d   :  { %v977_v60 = vmul.f32 0.2, %v945_v53  ;;  %vm961_vm2 = vcmp.gt.f32.partialorder %v945_v53, 0.0 }
 0x35f   :  { %v993_v43 = vsel %vm961_vm2, %v945_v53, %v977_v60 }
 0x360   :  { %1658 = vmatpush.bf16.msra.mxu3 %v1645_v48  ;;  %v6042_v6 = vsel %vm6035_vm3, %v993_v43, -1e+30  ;;  %v6110_v43 = vld [vmem:[%s7576_s26 + $0x38] sm:$0xff]  }
 0x361   :  { %v4615_v37 = vunpack.c.l.bf16 %v6110_v43 }
 0x363   :  { %vm6132_vm9 = vcmp.gt.f32.partialorder %v4615_v37, 0.0 }
 0x364   :  { %1659 = vmatpush.bf16.msra.mxu3 %v1644_v51 }
 0x368   :  { %1660 = vmatpush.bf16.msra.mxu3 %v1643_v50 }
 0x36c   :  { %1661 = vmatpush.bf16.msra.mxu3 %v1642_v3 }
 0x36d   :  { %1032 = vmax.xlane.f32.xlu1 %v6025_v45 }
 0x36e   :  { %923 = vperm.xlu0 %4671, %v5605_v62   ;;  %v1463_v62 = vsel %vm1431_vm4, %v1415_v25, %v1447_v39 }
 0x36f   :  { %v6048_v41 = vsel %vm5788_vm13, %v1463_v62, -1e+30  ;;  %vm1437_vm13 = vcmp.gt.f32.partialorder %v1421_v42, 0.0  ;;  %v4611_v62 = vunpack.c.l.bf16 %v6021_v38 }
 0x370   :  { %v1469_v5 = vsel %vm1437_vm13, %v1421_v42, %v1453_v23 }
 0x371   :  { %v6078_v52 = vsel %vm6057_vm7, %v1469_v5, -1e+30  ;;  %vm6124_vm8 = vcmp.gt.f32.partialorder %v4611_v62, 0.0 }
 0x375   :  { %1038 = vmax.xlane.f32.xlu1 %v6042_v6 }
 0x376   :  { %4675 = vset.pattern.permute.xlu0 %v7605_v63 }
 0x37b   :  { %1500 = vmax.xlane.f32.xlu2 %v6048_v41 }
 0x37d   :  { %v1491_v16 = vpop.xlane.xlu0 %1490  ;;  %v1505_v47 = vpop.xlane.xlu1 %1504 }
 0x37e   :  { %v1522_v15 = vsub.f32 %v5885_v56, %v1491_v16  ;;  %v1049_v56 = vsub.f32 %v5795_v34, %v5917_v57 }
 0x380   :  { %v1538_v7 = vmul.f32 1.442695, %v1522_v15  ;;  %v1070_v9 = vmul.f32 1.442695, %v1049_v56 }
 0x382   :  { %4696 = vpow2.f32 %v1538_v7 }
 0x385   :  { %v6051_v49 = vpop.xlane.xlu0 %1492  ;;  %v6054_v58 = vpop.xlane.xlu1 %1028 }
 0x388   :  { %v6089_v53 = vpop.eup %4696 }
 0x38d   :  { %v1495_v29 = vpop.xlane.xlu0 %1494  ;;  %v6071_v61 = vpop.xlane.xlu1 %1096 }
 0x38e   :  { %v1524_v34 = vsub.f32 %v5921_v40, %v1495_v29 }
 0x393   :  { %928 = vperm.xlu2 %4672, %v5610_v1  }
 0x395   :  { %v6063_v31 = vpop.xlane.xlu0 %1496 }
 0x398   :  { %1034 = vmax.xlane.f32.xlu0 %v6067_v55 }
 0x39b   :  { %4674 = vset.pattern.permute.xlu2 %v7605_v63  ;;  %v1050_v63 = vsub.f32 %v5806_v32, %v5939_v33  ;;  %v1529_v32 = vsub.f32 %v5880_v10, %v1505_v47  ;;  %v1542_v33 = vmul.f32 1.442695, %v1524_v34  ;;  %v1420_v47 = vadd.f32 %v5860_v22, %v5832_v59 }
 0x39c   :  { %1406 = vperm.xlu2 %4674, %v5610_v1   ;;  %v6085_v1 = vpop.xlane.xlu1 %1098  ;;  %v1523_v59 = vsub.f32 %v5905_v4, %v6051_v49 }
 0x39d   :  { %v1499_v20 = vpop.xlane.xlu0 %1498  ;;  %v1552_v51 = vmul.f32 1.442695, %v1529_v32  ;;  %v1452_v36 = vmul.f32 0.2, %v1420_v47  ;;  %vm1436_vm1 = vcmp.gt.f32.partialorder %v1420_v47, 0.0 }
 0x39e   :  { %v1526_v30 = vsub.f32 %v5947_v26, %v1499_v20  ;;  %v1072_v26 = vmul.f32 1.442695, %v1050_v63  ;;  %v1540_v20 = vmul.f32 1.442695, %v1523_v59  ;;  %v1048_v63 = vsub.f32 %v5705_v0, %v5846_v19 }
 0x39f   :  { %v1468_v4 = vsel %vm1436_vm1, %v1420_v47, %v1452_v36  ;;  %v1525_v0 = vsub.f32 %v5933_v44, %v6063_v31 }
 0x3a0   :  { %v1546_v18 = vmul.f32 1.442695, %v1526_v30  ;;  %1512 = vmax.xlane.f32.xlu0 %v6078_v52  ;;  %v1068_v46 = vmul.f32 1.442695, %v1048_v63 }
 0x3a1   :  { %v1544_v32 = vmul.f32 1.442695, %v1525_v0 }
 0x3a2   :  { %4698 = vpow2.f32 %v1546_v18  ;;  %v6150_v18 = vsel %vm6011_vm15, %v1468_v4, -1e+30 }
 0x3a3   :  { %4700 = vpow2.f32 %v1070_v9  ;;  %v914_v54 = vpop.permute.xlu2 %913 }
 0x3a4   :  { %4702 = vpow2.f32 %v1072_v26  ;;  %v944_v40 = vadd.f32 %v5660_v24, %v914_v54 }
 0x3a5   :  { %v6087_v48 = vpop.xlane.xlu0 %1502  ;;  %4704 = vpow2.f32 %v1542_v33 }
 0x3a6   :  { %4706 = vpow2.f32 %v1552_v51  ;;  %v976_v16 = vmul.f32 0.2, %v944_v40  ;;  %vm960_vm0 = vcmp.gt.f32.partialorder %v944_v40, 0.0  ;;  %v1528_v30 = vsub.f32 %v5953_v11, %v6087_v48 }
 0x3a8   :  { %v6091_v14 = vpop.eup %4698  ;;  %1570 = vadd.xlane.f32.xlu0 %v6089_v53  ;;  %v992_v38 = vsel %vm960_vm0, %v944_v40, %v976_v16  ;;  %v1550_v9 = vmul.f32 1.442695, %v1528_v30 }
 0x3a9   :  { %1578 = vadd.xlane.f32.xlu1 %v6091_v14  ;;  %v6097_v28 = vpop.eup %4700  ;;  %v6138_v5 = vsel %vm6124_vm8, %v992_v38, -1e+30 }
 0x3aa   :  { %v6099_v60 = vpop.eup %4702 }
 0x3ab   :  { %v6112_v3 = vpop.eup %4704 }
 0x3ac   :  { %v6114_v39 = vpop.eup %4706  ;;  %v1395_v51 = vpop.permute.xlu2 %1394 }
 0x3ad   :  { %v1399_v57 = vpop.permute.xlu1 %1398  ;;  %v1031_v8 = vpop.xlane.xlu0 %1030  ;;  %v1422_v31 = vadd.f32 %v5860_v22, %v1395_v51 }
 0x3ae   :  { %v1053_v2 = vsub.f32 %v5965_v13, %v1031_v8  ;;  %v1423_v35 = vadd.f32 %v5860_v22, %v1399_v57 }
 0x3af   :  { %vm1438_vm11 = vcmp.gt.f32.partialorder %v1422_v31, 0.0 }
 0x3b0   :  { %1102 = vadd.xlane.f32.xlu0 %v6097_v28  ;;  %v1078_v13 = vmul.f32 1.442695, %v1053_v2  ;;  %v1455_v49 = vmul.f32 0.2, %v1423_v35  ;;  %vm1439_vm10 = vcmp.gt.f32.partialorder %v1423_v35, 0.0 }
 0x3b1   :  { %1104 = vadd.xlane.f32.xlu1 %v6099_v60 }
 0x3b2   :  { %4708 = vpow2.f32 %v1078_v13  ;;  %v1471_v56 = vsel %vm1439_vm10, %v1423_v35, %v1455_v49  ;;  %v7619_v13 = vld [vmem:[#allocation5_spill] sm:$0xff]  ;;  %v4616_v49 = vunpack.c.h.bf16 %v6110_v43 }
 0x3b3   :  { %4710 = vpow2.f32 %v1540_v20  ;;  %v6157_v11 = vsel %vm6035_vm3, %v1471_v56, -1e+30  ;;  %v1051_v4 = vsub.f32 %v7619_v13, %v7618_v21  ;;  %v7620_v20 = vld [vmem:[#allocation7_spill] sm:$0xff] }
 0x3b4   :  { %4712 = vpow2.f32 %v1550_v9  ;;  %v1052_v30 = vsub.f32 %v7620_v20, %v6054_v58  ;;  %vm6202_vm12 = vcmp.gt.f32.partialorder %v4616_v49, 0.0  ;;  %v4561_v20 = vld [vmem:[%s7543_s4 + $0x30] sm:$0xff] }
 0x3b5   :  { %v1403_v50 = vpop.permute.xlu1 %1402  ;;  %v6105_v25 = vpop.xlane.xlu0 %1506  ;;  %v1074_v63 = vmul.f32 1.442695, %v1051_v4  ;;  %v4562_v4 = vld [vmem:[%s7543_s4 + $0x38] sm:$0xff] }
 0x3b6   :  { %v1424_v10 = vadd.f32 %v5860_v22, %v1403_v50  ;;  %v1076_v0 = vmul.f32 1.442695, %v1052_v30  ;;  %1888 = vmatpush.bf16.msra.mxu1 %v4562_v4 }
 0x3b8   :  { %1574 = vadd.xlane.f32.xlu0 %v6112_v3  ;;  %v1456_v29 = vmul.f32 0.2, %v1424_v10  ;;  %vm1440_vm6 = vcmp.gt.f32.partialorder %v1424_v10, 0.0  ;;  %v6159_v48 = vpop.eup %4708 }
 0x3b9   :  { %1584 = vadd.xlane.f32.xlu1 %v6114_v39  ;;  %v6163_v34 = vpop.eup %4710 }
 0x3ba   :  { %v1472_v15 = vsel %vm1440_vm6, %v1424_v10, %v1456_v29  ;;  %v6168_v12 = vpop.eup %4712  ;;  %v1454_v10 = vmul.f32 0.2, %v1422_v31  ;;  %1889 = vmatpush.bf16.msra.mxu1 %v4561_v20 }
 0x3bb   :  { %v6143_v7 = vsel %vm6132_vm9, %v1472_v15, -1e+30 }
 0x3bc   :  { %v1470_v47 = vsel %vm1438_vm11, %v1422_v31, %v1454_v10 }
 0x3bd   :  { %v6130_v42 = vpop.xlane.xlu0 %1508  ;;  %v6185_v29 = vsel %vm6124_vm8, %v1470_v47, -1e+30 }
 0x3c0   :  { %1036 = vmax.xlane.f32.xlu0 %v6138_v5 }
 0x3c1   :  { %1518 = vmax.xlane.f32.xlu1 %v6143_v7 }
 0x3c5   :  { %1510 = vmax.xlane.f32.xlu2 %v6150_v18  ;;  %v1093_v26 = vpop.xlane.xlu0 %1092 }
 0x3c6   :  { %4714 = vrcp.f32 %v1093_v26 }
 0x3c7   :  { %4716 = vpow2.f32 %v1068_v46  ;;  %v4559_v46 = vld [vmem:[%s7543_s4 + $0x20] sm:$0xff] }
 0x3c8   :  { %1516 = vmax.xlane.f32.xlu0 %v6157_v11 }
 0x3c9   :  { %1110 = vadd.xlane.f32.xlu1 %v6159_v48 }
 0x3cc   :  { %v4715_v57 = vpop.eup %4714 }
 0x3cd   :  { %1572 = vadd.xlane.f32.xlu2 %v6163_v34  ;;  %v1095_v19 = vpop.xlane.xlu0 %1094  ;;  %v6171_v33 = vpop.eup %4716  ;;  %v1140_v54 = vmul.f32 %v4715_v57, %v5989_v17 }
 0x3ce   :  { %4718 = vrcp.f32 %v1095_v19 }
 0x3cf   :  { %4720 = vpow2.f32 %v1544_v32  ;;  %v7623_v32 = vld [vmem:[#allocation11_spill] sm:$0xff] }
 0x3d0   :  { %1582 = vadd.xlane.f32.xlu0 %v6168_v12  ;;  %4722 = vrcp.f32 %v6085_v1  ;;  %v7616_v1 = vld [vmem:[#allocation9_spill] sm:$0xff]  ;;  %v1531_v57 = vsub.f32 %v7623_v32, %v6130_v42 }
 0x3d1   :  { %4724 = vrcp.f32 %v6071_v61  ;;  %v7617_v61 = vld [vmem:[#allocation8_spill] sm:$0xff] }
 0x3d4   :  { %v4719_v8 = vpop.eup %4718 }
 0x3d5   :  { %1100 = vadd.xlane.f32.xlu2 %v6171_v33  ;;  %v1141_v40 = vmul.f32 %v4719_v8, %v5993_v27  ;;  %v6178_v50 = vpop.eup %4720 }
 0x3d6   :  { %v4723_v16 = vpop.eup %4722 }
 0x3d7   :  { %v1156_v44 = vpack.c.bf16 %v1141_v40, %v1140_v54  ;;  %v4725_v27 = vpop.eup %4724  ;;  %v1143_v2 = vmul.f32 %v4723_v16, %v7616_v1  ;;  %v1556_v54 = vmul.f32 1.442695, %v1531_v57  ;;  %v7624_v16 = vld [vmem:[#allocation10_spill] sm:$0xff] }
 0x3d8   :  { %v1142_v35 = vmul.f32 %v4725_v27, %v7617_v61 }
 0x3d9   :  { %1184 = vmatmul.bf16.vlgmr.msra.gmra.mxu2 %v1156_v44 }
 0x3da   :  { %v1157_v38 = vpack.c.bf16 %v1143_v2, %v1142_v35 }
 0x3dd   :  { %1576 = vadd.xlane.f32.xlu2 %v6178_v50 }
 0x3e0   :  { %v1033_v62 = vpop.xlane.xlu1 %1032  ;;  %v924_v43 = vpop.permute.xlu0 %923 }
 0x3e1   :  { %v1054_v17 = vsub.f32 %v6025_v45, %v1033_v62  ;;  %v946_v8 = vadd.f32 %v5660_v24, %v924_v43 }
 0x3e3   :  { %v1080_v37 = vmul.f32 1.442695, %v1054_v17  ;;  %v978_v40 = vmul.f32 0.2, %v946_v8  ;;  %vm962_vm15 = vcmp.gt.f32.partialorder %v946_v8, 0.0  ;;  %v1530_v17 = vsub.f32 %v7624_v16, %v6105_v25  ;;  %v4556_v16 = vld [vmem:[%s7543_s4 + $0x8] sm:$0xff] }
 0x3e5   :  { %4726 = vpow2.f32 %v1080_v37  ;;  %1514 = vmax.xlane.f32.xlu2 %v6185_v29  ;;  %v994_v62 = vsel %vm962_vm15, %v946_v8, %v978_v40  ;;  %v1554_v1 = vmul.f32 1.442695, %v1530_v17 }
 0x3e6   :  { %v6224_v42 = vsel %vm6132_vm9, %v994_v62, -1e+30 }
 0x3e8   :  { %v1039_v61 = vpop.xlane.xlu1 %1038 }
 0x3e9   :  { %1189 = vmatmul.bf16.gmra.mxu2 %v1157_v38  ;;  %v1057_v57 = vsub.f32 %v6042_v6, %v1039_v61  ;;  %v4557_v6 = vld [vmem:[%s7543_s4 + $0x10] sm:$0xff] }
 0x3eb   :  { %v6190_v36 = vpop.eup %4726  ;;  %v1086_v62 = vmul.f32 1.442695, %v1057_v57 }
 0x3ec   :  { %1112 = vadd.xlane.f32.xlu1 %v6190_v36 }
 0x3ee   :  { %v1501_v45 = vpop.xlane.xlu2 %1500 }
 0x3ef   :  { %v1527_v59 = vsub.f32 %v6048_v41, %v1501_v45 }
 0x3f1   :  { %v1548_v15 = vmul.f32 1.442695, %v1527_v59 }
 0x3f3   :  { %4728 = vpow2.f32 %v1548_v15 }
 0x3f4   :  { %4730 = vpow2.f32 %v1074_v63  ;;  %v4560_v63 = vld [vmem:[%s7543_s4 + $0x28] sm:$0xff] }
 0x3f5   :  { %4732 = vpow2.f32 %v1076_v0  ;;  %1890 = vmatpush.bf16.msra.mxu1 %v4560_v63 }
 0x3f6   :  { %v929_v56 = vpop.permute.xlu2 %928  ;;  %4734 = vpow2.f32 %v1556_v54 }
 0x3f7   :  { %v947_v9 = vadd.f32 %v5660_v24, %v929_v56  ;;  %4736 = vpow2.f32 %v1554_v1 }
 0x3f9   :  { %v6200_v26 = vpop.eup %4728  ;;  %vm963_vm14 = vcmp.gt.f32.partialorder %v947_v9, 0.0  ;;  %v979_v41 = vmul.f32 0.2, %v947_v9  ;;  %1891 = vmatpush.bf16.msra.mxu1 %v4559_v46 }
 0x3fa   :  { %1580 = vadd.xlane.f32.xlu2 %v6200_v26  ;;  %v6215_v51 = vpop.eup %4730 }
 0x3fb   :  { %v995_v19 = vsel %vm963_vm14, %v947_v9, %v979_v41  ;;  %v6218_v31 = vpop.eup %4732 }
 0x3fc   :  { %v6209_v58 = vsel %vm6202_vm12, %v995_v19, -1e+30  ;;  %v6229_v47 = vpop.eup %4734 }
 0x3fd   :  { %1042 = vmax.xlane.f32.xlu0 %v6209_v58  ;;  %v6239_v45 = vpop.eup %4736 }
 0x3fe   :  { %v1407_v44 = vpop.permute.xlu2 %1406 }
 0x3ff   :  { %v1425_v10 = vadd.f32 %v5860_v22, %v1407_v44 }
 0x401   :  { %v1457_v24 = vmul.f32 0.2, %v1425_v10  ;;  %vm1441_vm2 = vcmp.gt.f32.partialorder %v1425_v10, 0.0 }
 0x402   :  { %1106 = vadd.xlane.f32.xlu2 %v6215_v51 }
 0x403   :  { %v1473_v37 = vsel %vm1441_vm2, %v1425_v10, %v1457_v24 }
 0x404   :  { %v6234_v22 = vsel %vm6202_vm12, %v1473_v37, -1e+30 }
 0x405   :  { %1108 = vadd.xlane.f32.xlu0 %v6218_v31 }
 0x40a   :  { %1040 = vmax.xlane.f32.xlu2 %v6224_v42 }
 0x40b   :  { %v1035_v27 = vpop.xlane.xlu0 %1034 }
 0x40c   :  { %v1055_v23 = vsub.f32 %v6067_v55, %v1035_v27 }
 0x40d   :  { %1588 = vadd.xlane.f32.xlu0 %v6229_v47 }
 0x40e   :  { %v1082_v35 = vmul.f32 1.442695, %v1055_v23 }
 0x412   :  { %1520 = vmax.xlane.f32.xlu2 %v6234_v22 }
 0x413   :  { %v1513_v2 = vpop.xlane.xlu0 %1512 }
 0x414   :  { %v1533_v25 = vsub.f32 %v6078_v52, %v1513_v2  ;;  %v4555_v2 = vld [vmem:[%s7543_s4] sm:$0xff] }
 0x416   :  { %v1560_v38 = vmul.f32 1.442695, %v1533_v25 }
 0x418   :  { %4738 = vpow2.f32 %v1560_v38 }
 0x419   :  { %4740 = vpow2.f32 %v1082_v35 }
 0x41a   :  { %1586 = vadd.xlane.f32.xlu2 %v6239_v45 }
 0x41b   :  { %v1571_v59 = vpop.xlane.xlu0 %1570 }
 0x41c   :  { %v6244_v21 = vpop.xlane.xlu1 %1578 }
 0x41e   :  { %v6242_v15 = vpop.eup %4738 }
 0x41f   :  { %1592 = vadd.xlane.f32.xlu1 %v6242_v15  ;;  %v6247_v55 = vpop.eup %4740 }
 0x422   :  { %1114 = vadd.xlane.f32.xlu2 %v6247_v55 }
 0x423   :  { %v1103_v52 = vpop.xlane.xlu0 %1102 }
 0x424   :  { %v6250_v13 = vpop.xlane.xlu1 %1104 }
 0x42b   :  { %v1575_v49 = vpop.xlane.xlu0 %1574 }
 0x42c   :  { %v6258_v30 = vpop.xlane.xlu1 %1584 }
 0x433   :  { %v1037_v56 = vpop.xlane.xlu0 %1036 }
 0x434   :  { %v1056_v9 = vsub.f32 %v6138_v5, %v1037_v56  ;;  %v1519_v8 = vpop.xlane.xlu1 %1518 }
 0x435   :  { %v1536_v44 = vsub.f32 %v6143_v7, %v1519_v8 }
 0x436   :  { %v1084_v41 = vmul.f32 1.442695, %v1056_v9 }
 0x437   :  { %v1566_v24 = vmul.f32 1.442695, %v1536_v44 }
 0x438   :  { %v1511_v0 = vpop.xlane.xlu2 %1510  ;;  %4742 = vpow2.f32 %v1084_v41 }
 0x439   :  { %v1532_v43 = vsub.f32 %v6150_v18, %v1511_v0  ;;  %v4558_v18 = vld [vmem:[%s7543_s4 + $0x18] sm:$0xff] }
 0x43a   :  { %1892 = vmatpush.bf16.msra.mxu1 %v4558_v18 }
 0x43b   :  { %v1558_v19 = vmul.f32 1.442695, %v1532_v43  ;;  %v1517_v32 = vpop.xlane.xlu0 %1516 }
 0x43c   :  { %v1535_v54 = vsub.f32 %v6157_v11, %v1517_v32 }
 0x43d   :  { %4744 = vpow2.f32 %v1558_v19 }
 0x43e   :  { %v6270_v5 = vpop.eup %4742  ;;  %v1564_v40 = vmul.f32 1.442695, %v1535_v54  ;;  %4746 = vrcp.f32 %v1571_v59  ;;  %1893 = vmatpush.bf16.msra.mxu1 %v4557_v6 }
 0x43f   :  { %1116 = vadd.xlane.f32.xlu2 %v6270_v5 }
 0x440   :  { %v1573_v10 = vpop.xlane.xlu2 %1572  ;;  %4748 = vpow2.f32 %v1564_v40 }
 0x441   :  { %4750 = vrcp.f32 %v1573_v10 }
 0x442   :  { %4752 = vpow2.f32 %v1086_v62  ;;  %1894 = vmatpush.bf16.msra.mxu1 %v4556_v16 }
 0x443   :  { %v6280_v11 = vpop.eup %4744  ;;  %4754 = vrcp.f32 %v1103_v52 }
 0x444   :  { %1590 = vadd.xlane.f32.xlu0 %v6280_v11  ;;  %v4747_v7 = vpop.eup %4746  ;;  %4756 = vpow2.f32 %v1566_v24 }
 0x445   :  { %v1618_v1 = vmul.f32 %v4747_v7, %v6089_v53 }
 0x446   :  { %v6286_v17 = vpop.eup %4748  ;;  %1895 = vmatpush.bf16.msra.mxu1 %v4555_v2 }
 0x447   :  { %v4751_v27 = vpop.eup %4750  ;;  %1596 = vadd.xlane.f32.xlu2 %v6286_v17 }
 0x448   :  { %v1101_v37 = vpop.xlane.xlu2 %1100  ;;  %v1619_v23 = vmul.f32 %v4751_v27, %v6163_v34  ;;  %v6294_v25 = vpop.eup %4752 }
 0x449   :  { %4758 = vrcp.f32 %v1101_v37  ;;  %v4755_v35 = vpop.eup %4754 }
 0x44a   :  { %v1634_v61 = vpack.c.bf16 %v1619_v23, %v1618_v1  ;;  %v6297_v38 = vpop.eup %4756  ;;  %4760 = vrcp.f32 %v1575_v49  ;;  %v1145_v52 = vmul.f32 %v4755_v35, %v6097_v28  ;;  %v6308_v28 = vld [vmem:[%s7542_s3] ss:$0 sm:$0xff] }
 0x44c   :  { %1118 = vadd.xlane.f32.xlu0 %v6294_v25  ;;  %1662 = vmatmul.bf16.vlgmr.msra.gmra.mxu3 %v1634_v61 }
 0x44f   :  { %v4759_v59 = vpop.eup %4758  ;;  %1598 = vadd.xlane.f32.xlu2 %v6297_v38 }
 0x450   :  { %v1577_v53 = vpop.xlane.xlu2 %1576  ;;  %v1144_v34 = vmul.f32 %v4759_v59, %v6171_v33  ;;  %v4761_v20 = vpop.eup %4760 }
 0x451   :  { %4762 = vrcp.f32 %v1577_v53  ;;  %v1620_v9 = vmul.f32 %v4761_v20, %v6112_v3 }
 0x452   :  { %v1158_v4 = vpack.c.bf16 %v1145_v52, %v1144_v34 }
 0x454   :  { %1194 = vmatmul.bf16.gmra.mxu2 %v1158_v4 }
 0x457   :  { %v4763_v56 = vpop.eup %4762 }
 0x458   :  { %v1515_v63 = vpop.xlane.xlu2 %1514  ;;  %v1621_v46 = vmul.f32 %v4763_v56, %v6178_v50 }
 0x459   :  { %v1534_v41 = vsub.f32 %v6185_v29, %v1515_v63  ;;  %v1583_v29 = vpop.xlane.xlu0 %1582  ;;  %v1111_v63 = vpop.xlane.xlu1 %1110 }
 0x45a   :  { %v1635_v49 = vpack.c.bf16 %v1621_v46, %v1620_v9 }
 0x45b   :  { %v1562_v0 = vmul.f32 1.442695, %v1534_v41 }
 0x45c   :  { %v1185_v43 = vpop.f32.mrf.mxu2  ;;  %1667 = vmatmul.bf16.gmra.mxu3 %v1635_v49 }
 0x45d   :  { %4764 = vpow2.f32 %v1562_v0  ;;  %v1186_v19 = vadd.f32 %v6308_v28, %v1185_v43 }
 0x45e   :  { %4766 = vrcp.f32 %v6244_v21 }
 0x45f   :  { %v1225_v32 = vmax.f32 %v1186_v19, 0.0 }
 0x463   :  { %v6310_v33 = vpop.eup %4764 }
 0x464   :  { %1594 = vadd.xlane.f32.xlu1 %v6310_v33  ;;  %v1187_v3 = vpop.f32.mrf.mxu2  ;;  %v4767_v18 = vpop.eup %4766 }
 0x465   :  { %v1188_v50 = vadd.f32 %v6308_v28, %v1187_v3  ;;  %v1622_v27 = vmul.f32 %v4767_v18, %v6091_v14  ;;  %v4568_v18 = vld [vmem:[%s7543_s4 + $0x68] sm:$0xff] }
 0x467   :  { %v1226_v57 = vmax.f32 %v1188_v50, 0.0 }
 0x469   :  { %v1241_v8 = vpack.c.bf16 %v1226_v57, %v1225_v32  ;;  %v1113_v32 = vpop.xlane.xlu1 %1112 }
 0x46b   :  { %1896 = vmatmul.bf16.vlgmr.msra.gmra.mxu1 %v1241_v8 }
 0x46c   :  { %v1190_v54 = vpop.f32.mrf.mxu2 }
 0x46d   :  { %v1581_v40 = vpop.xlane.xlu2 %1580  ;;  %v1191_v24 = vadd.f32 %v6308_v28, %v1190_v54 }
 0x46e   :  { %4768 = vrcp.f32 %v1581_v40 }
 0x46f   :  { %4770 = vrcp.f32 %v6250_v13  ;;  %v1227_v23 = vmax.f32 %v1191_v24, 0.0  ;;  %v4570_v13 = vld [vmem:[%s7543_s4 + $0x78] sm:$0xff] }
 0x470   :  { %v1043_v44 = vpop.xlane.xlu0 %1042  ;;  %1791 = vmatpush.bf16.msra.mxu0 %v4570_v13 }
 0x471   :  { %v1059_v10 = vsub.f32 %v6209_v58, %v1043_v44 }
 0x473   :  { %v1090_v62 = vmul.f32 1.442695, %v1059_v10 }
 0x474   :  { %v4769_v6 = vpop.eup %4768  ;;  %v1192_v7 = vpop.f32.mrf.mxu2 }
 0x475   :  { %4772 = vpow2.f32 %v1090_v62  ;;  %v1107_v16 = vpop.xlane.xlu2 %1106  ;;  %v1623_v21 = vmul.f32 %v4769_v6, %v6200_v26  ;;  %v1193_v37 = vadd.f32 %v6308_v28, %v1192_v7  ;;  %v4771_v2 = vpop.eup %4770  ;;  %v4566_v7 = vld [vmem:[%s7543_s4 + $0x58] sm:$0xff] }
 0x476   :  { %4774 = vrcp.f32 %v1107_v16  ;;  %v1146_v59 = vmul.f32 %v4771_v2, %v6099_v60  ;;  %v4564_v16 = vld [vmem:[%s7543_s4 + $0x48] sm:$0xff] }
 0x477   :  { %v1636_v1 = vpack.c.bf16 %v1623_v21, %v1622_v27  ;;  %v1228_v58 = vmax.f32 %v1193_v37, 0.0  ;;  %4776 = vrcp.f32 %v1583_v29  ;;  %v4563_v37 = vld [vmem:[%s7543_s4 + $0x40] sm:$0xff] }
 0x478   :  { %4778 = vrcp.f32 %v6258_v30  ;;  %v1109_v34 = vpop.xlane.xlu0 %1108  ;;  %v4569_v30 = vld [vmem:[%s7543_s4 + $0x70] sm:$0xff] }
 0x479   :  { %1672 = vmatmul.bf16.gmra.mxu3 %v1636_v1  ;;  %v1242_v61 = vpack.c.bf16 %v1228_v58, %v1227_v23  ;;  %4780 = vrcp.f32 %v1109_v34  ;;  %1792 = vmatpush.bf16.msra.mxu0 %v4569_v30 }
 0x47b   :  { %v6325_v35 = vpop.eup %4772  ;;  %1901 = vmatmul.bf16.gmra.mxu1 %v1242_v61 }
 0x47c   :  { %v4775_v14 = vpop.eup %4774  ;;  %1122 = vadd.xlane.f32.xlu1 %v6325_v35 }
 0x47d   :  { %v1041_v26 = vpop.xlane.xlu2 %1040  ;;  %v1147_v53 = vmul.f32 %v4775_v14, %v6215_v51  ;;  %v4777_v20 = vpop.eup %4776  ;;  %1793 = vmatpush.bf16.msra.mxu0 %v4568_v18 }
 0x47e   :  { %v1058_v52 = vsub.f32 %v6224_v42, %v1041_v26  ;;  %v4779_v9 = vpop.eup %4778  ;;  %v1624_v46 = vmul.f32 %v4777_v20, %v6168_v12 }
 0x47f   :  { %v1159_v4 = vpack.c.bf16 %v1147_v53, %v1146_v59  ;;  %v1625_v51 = vmul.f32 %v4779_v9, %v6114_v39  ;;  %v4781_v41 = vpop.eup %4780 }
 0x480   :  { %v1088_v56 = vmul.f32 1.442695, %v1058_v52  ;;  %v1589_v19 = vpop.xlane.xlu0 %1588  ;;  %v1148_v12 = vmul.f32 %v4781_v41, %v6218_v31 }
 0x481   :  { %1199 = vmatmul.bf16.gmra.mxu2 %v1159_v4  ;;  %v1637_v49 = vpack.c.bf16 %v1625_v51, %v1624_v46 }
 0x482   :  { %4782 = vpow2.f32 %v1088_v56 }
 0x483   :  { %4784 = vrcp.f32 %v1111_v63 }
 0x485   :  { %v1521_v60 = vpop.xlane.xlu2 %1520 }
 0x486   :  { %v1537_v42 = vsub.f32 %v6234_v22, %v1521_v60 }
 0x488   :  { %v6338_v0 = vpop.eup %4782  ;;  %v1568_v43 = vmul.f32 1.442695, %v1537_v42 }
 0x489   :  { %1120 = vadd.xlane.f32.xlu0 %v6338_v0  ;;  %1677 = vmatmul.bf16.gmra.mxu3 %v1637_v49  ;;  %v4785_v3 = vpop.eup %4784 }
 0x48a   :  { %4786 = vpow2.f32 %v1568_v43  ;;  %v1149_v29 = vmul.f32 %v4785_v3, %v6159_v48 }
 0x48b   :  { %4788 = vrcp.f32 %v1589_v19 }
 0x48c   :  { %v1160_v39 = vpack.c.bf16 %v1149_v29, %v1148_v12 }
 0x48d   :  { %v1587_v50 = vpop.xlane.xlu2 %1586 }
 0x48e   :  { %4790 = vrcp.f32 %v1587_v50 }
 0x48f   :  { %4792 = vrcp.f32 %v1113_v32 }
 0x490   :  { %v6343_v22 = vpop.eup %4786 }
 0x491   :  { %1600 = vadd.xlane.f32.xlu0 %v6343_v22  ;;  %1204 = vmatmul.bf16.gmra.mxu2 %v1160_v39  ;;  %v4789_v57 = vpop.eup %4788 }
 0x492   :  { %v1627_v31 = vmul.f32 %v4789_v57, %v6229_v47  ;;  %v4567_v47 = vld [vmem:[%s7543_s4 + $0x60] sm:$0xff] }
 0x493   :  { %1794 = vmatpush.bf16.msra.mxu0 %v4567_v47 }
 0x494   :  { %v4791_v8 = vpop.eup %4790 }
 0x495   :  { %v1115_v54 = vpop.xlane.xlu2 %1114  ;;  %v1626_v40 = vmul.f32 %v4791_v8, %v6239_v45  ;;  %v4793_v48 = vpop.eup %4792 }
 0x496   :  { %4794 = vrcp.f32 %v1115_v54  ;;  %v1150_v62 = vmul.f32 %v4793_v48, %v6190_v36  ;;  %v1593_v45 = vpop.xlane.xlu1 %1592  ;;  %v4565_v36 = vld [vmem:[%s7543_s4 + $0x50] sm:$0xff] }
 0x497   :  { %v1638_v44 = vpack.c.bf16 %v1627_v31, %v1626_v40  ;;  %1795 = vmatpush.bf16.msra.mxu0 %v4566_v7  ;;  %4796 = vrcp.f32 %v1593_v45 }
 0x499   :  { %1682 = vmatmul.bf16.gmra.mxu3 %v1638_v44 }
 0x49b   :  { %1796 = vmatpush.bf16.msra.mxu0 %v4565_v36 }
 0x49c   :  { %v4795_v10 = vpop.eup %4794 }
 0x49d   :  { %v1151_v6 = vmul.f32 %v4795_v10, %v6247_v55  ;;  %v4797_v21 = vpop.eup %4796 }
 0x49e   :  { %v1629_v13 = vmul.f32 %v4797_v21, %v6242_v15 }
 0x49f   :  { %v1161_v24 = vpack.c.bf16 %v1151_v6, %v1150_v62  ;;  %1797 = vmatpush.bf16.msra.mxu0 %v4564_v16 }
 0x4a1   :  { %1209 = vmatmul.bf16.gmra.mxu2 %v1161_v24 }
 0x4a3   :  { %1798 = vmatpush.bf16.msra.mxu0 %v4563_v37 }
 0x4b2   :  { %v1117_v27 = vpop.xlane.xlu2 %1116 }
 0x4b7   :  { %v1591_v55 = vpop.xlane.xlu0 %1590 }
 0x4b8   :  { %4798 = vrcp.f32 %v1591_v55 }
 0x4b9   :  { %4800 = vrcp.f32 %v1117_v27 }
 0x4ba   :  { %v1597_v52 = vpop.xlane.xlu2 %1596 }
 0x4be   :  { %v4799_v1 = vpop.eup %4798 }
 0x4bf   :  { %v1119_v23 = vpop.xlane.xlu0 %1118  ;;  %v1628_v58 = vmul.f32 %v4799_v1, %v6280_v11  ;;  %v4801_v61 = vpop.eup %4800  ;;  %v6375_v11 = vld [vmem:[%s7542_s3 + $0x1] ss:$0 sm:$0xff] }
 0x4c0   :  { %4802 = vrcp.f32 %v1119_v23  ;;  %v1152_v26 = vmul.f32 %v4801_v61, %v6270_v5 }
 0x4c1   :  { %v1639_v2 = vpack.c.bf16 %v1629_v13, %v1628_v58  ;;  %4804 = vrcp.f32 %v1597_v52 }
 0x4c2   :  { %v1599_v31 = vpop.xlane.xlu2 %1598 }
 0x4c3   :  { %1687 = vmatmul.bf16.gmra.mxu3 %v1639_v2 }
 0x4c6   :  { %v4803_v14 = vpop.eup %4802 }
 0x4c7   :  { %v1153_v59 = vmul.f32 %v4803_v14, %v6294_v25  ;;  %v4805_v30 = vpop.eup %4804 }
 0x4c8   :  { %v1631_v41 = vmul.f32 %v4805_v30, %v6286_v17 }
 0x4c9   :  { %v1162_v53 = vpack.c.bf16 %v1153_v59, %v1152_v26 }
 0x4cb   :  { %1214 = vmatmul.bf16.gmra.mxu2 %v1162_v53 }
 0x4cf   :  { %v1663_v34 = vpop.f32.mrf.mxu3 }
 0x4d0   :  { %v1664_v15 = vadd.f32 %v6375_v11, %v1663_v34 }
 0x4d2   :  { %v1703_v63 = vmax.f32 %v1664_v15, 0.0 }
 0x4d7   :  { %v1595_v4 = vpop.xlane.xlu1 %1594  ;;  %v1195_v20 = vpop.f32.mrf.mxu2 }
 0x4d8   :  { %4806 = vrcp.f32 %v1595_v4  ;;  %v1665_v56 = vpop.f32.mrf.mxu3  ;;  %v1196_v60 = vadd.f32 %v6308_v28, %v1195_v20 }
 0x4d9   :  { %v1666_v5 = vadd.f32 %v6375_v11, %v1665_v56 }
 0x4da   :  { %v1229_v3 = vmax.f32 %v1196_v60, 0.0 }
 0x4db   :  { %v1704_v25 = vmax.f32 %v1666_v5, 0.0 }
 0x4dd   :  { %v1719_v9 = vpack.c.bf16 %v1704_v25, %v1703_v63 }
 0x4de   :  { %v4807_v46 = vpop.eup %4806 }
 0x4df   :  { %1799 = vmatmul.bf16.vlgmr.msra.gmra.mxu0 %v1719_v9  ;;  %v1197_v51 = vpop.f32.mrf.mxu2  ;;  %v1630_v42 = vmul.f32 %v4807_v46, %v6310_v33 }
 0x4e0   :  { %v1198_v49 = vadd.f32 %v6308_v28, %v1197_v51  ;;  %v1668_v43 = vpop.f32.mrf.mxu3 }
 0x4e1   :  { %v1640_v19 = vpack.c.bf16 %v1631_v41, %v1630_v42  ;;  %v1669_v29 = vadd.f32 %v6375_v11, %v1668_v43 }
 0x4e2   :  { %v1230_v12 = vmax.f32 %v1198_v49, 0.0 }
 0x4e3   :  { %1692 = vmatmul.bf16.gmra.mxu3 %v1640_v19  ;;  %v1705_v57 = vmax.f32 %v1669_v29, 0.0 }
 0x4e4   :  { %v1243_v50 = vpack.c.bf16 %v1230_v12, %v1229_v3 }
 0x4e6   :  { %1906 = vmatmul.bf16.gmra.mxu1 %v1243_v50 }
 0x4e8   :  { %v1670_v39 = vpop.f32.mrf.mxu3 }
 0x4e9   :  { %v1671_v32 = vadd.f32 %v6375_v11, %v1670_v39 }
 0x4eb   :  { %v1706_v8 = vmax.f32 %v1671_v32, 0.0 }
 0x4ed   :  { %v1720_v54 = vpack.c.bf16 %v1706_v8, %v1705_v57 }
 0x4ef   :  { %1804 = vmatmul.bf16.gmra.mxu0 %v1720_v54  ;;  %v1123_v33 = vpop.xlane.xlu1 %1122 }
 0x4f0   :  { %4808 = vrcp.f32 %v1123_v33 }
 0x4f6   :  { %v4809_v44 = vpop.eup %4808 }
 0x4f7   :  { %v1155_v24 = vmul.f32 %v4809_v44, %v6325_v35 }
 0x4fc   :  { %v1673_v17 = vpop.f32.mrf.mxu3  ;;  %v1121_v40 = vpop.xlane.xlu0 %1120 }
 0x4fd   :  { %4810 = vrcp.f32 %v1121_v40  ;;  %v1674_v10 = vadd.f32 %v6375_v11, %v1673_v17 }
 0x4fe   :  { %4812 = vrcp.f32 %v1599_v31  ;;  %v1897_v31 = vpop.f32.mrf.mxu1 }
 0x4ff   :  { %v1707_v36 = vmax.f32 %v1674_v10, 0.0 }
 0x503   :  { %v4811_v48 = vpop.eup %4810 }
 0x504   :  { %v1675_v18 = vpop.f32.mrf.mxu3  ;;  %v1601_v62 = vpop.xlane.xlu0 %1600  ;;  %v1154_v6 = vmul.f32 %v4811_v48, %v6338_v0 }
 0x505   :  { %v1676_v47 = vadd.f32 %v6375_v11, %v1675_v18  ;;  %4814 = vrcp.f32 %v1601_v62  ;;  %v1200_v45 = vpop.f32.mrf.mxu2  ;;  %v4813_v16 = vpop.eup %4812 }
 0x506   :  { %v1163_v7 = vpack.c.bf16 %v1155_v24, %v1154_v6  ;;  %v1201_v37 = vadd.f32 %v6308_v28, %v1200_v45  ;;  %v1632_v23 = vmul.f32 %v4813_v16, %v6297_v38  ;;  %v6408_v6 = vld [vmem:[%s7544_s5] ss:$0 sm:$0xff] }
 0x507   :  { %v1708_v55 = vmax.f32 %v1676_v47, 0.0 }
 0x508   :  { %1219 = vmatmul.bf16.gmra.mxu2 %v1163_v7  ;;  %v1231_v2 = vmax.f32 %v1201_v37, 0.0  ;;  %v1899_v7 = vpop.f32.mrf.mxu1 }
 0x509   :  { %v1721_v27 = vpack.c.bf16 %v1708_v55, %v1707_v36 }
 0x50b   :  { %v4815_v21 = vpop.eup %4814  ;;  %1809 = vmatmul.bf16.gmra.mxu0 %v1721_v27 }
 0x50c   :  { %v1678_v1 = vpop.f32.mrf.mxu3  ;;  %v1633_v0 = vmul.f32 %v4815_v21, %v6343_v22 }
 0x50d   :  { %v1202_v35 = vpop.f32.mrf.mxu2  ;;  %v1679_v26 = vadd.f32 %v6375_v11, %v1678_v1 }
 0x50e   :  { %v1203_v58 = vadd.f32 %v6308_v28, %v1202_v35  ;;  %v1641_v13 = vpack.c.bf16 %v1633_v0, %v1632_v23 }
 0x50f   :  { %v1709_v52 = vmax.f32 %v1679_v26, 0.0 }
 0x510   :  { %v1232_v61 = vmax.f32 %v1203_v58, 0.0  ;;  %1697 = vmatmul.bf16.gmra.mxu3 %v1641_v13  ;;  %v1902_v21 = vpop.f32.mrf.mxu1 }
 0x512   :  { %v1244_v14 = vpack.c.bf16 %v1232_v61, %v1231_v2 }
 0x514   :  { %1911 = vmatmul.bf16.gmra.mxu1 %v1244_v14  ;;  %v1680_v59 = vpop.f32.mrf.mxu3 }
 0x515   :  { %v1205_v53 = vpop.f32.mrf.mxu2  ;;  %v1681_v34 = vadd.f32 %v6375_v11, %v1680_v59 }
 0x516   :  { %v1206_v22 = vadd.f32 %v6308_v28, %v1205_v53 }
 0x517   :  { %v1710_v15 = vmax.f32 %v1681_v34, 0.0 }
 0x518   :  { %v1233_v5 = vmax.f32 %v1206_v22, 0.0  ;;  %v1904_v14 = vpop.f32.mrf.mxu1 }
 0x519   :  { %v1722_v38 = vpack.c.bf16 %v1710_v15, %v1709_v52 }
 0x51b   :  { %1814 = vmatmul.bf16.gmra.mxu0 %v1722_v38 }
 0x51c   :  { %v1683_v4 = vpop.f32.mrf.mxu3 }
 0x51d   :  { %v1207_v20 = vpop.f32.mrf.mxu2  ;;  %v1684_v30 = vadd.f32 %v6375_v11, %v1683_v4 }
 0x51e   :  { %v1208_v56 = vadd.f32 %v6308_v28, %v1207_v20 }
 0x51f   :  { %v1711_v51 = vmax.f32 %v1684_v30, 0.0 }
 0x520   :  { %v1234_v63 = vmax.f32 %v1208_v56, 0.0 }
 0x522   :  { %v1245_v25 = vpack.c.bf16 %v1234_v63, %v1233_v5 }
 0x524   :  { %1916 = vmatmul.bf16.gmra.mxu1 %v1245_v25  ;;  %v1685_v9 = vpop.f32.mrf.mxu3 }
 0x525   :  { %v1210_v46 = vpop.f32.mrf.mxu2  ;;  %v1686_v60 = vadd.f32 %v6375_v11, %v1685_v9 }
 0x526   :  { %v1211_v49 = vadd.f32 %v6308_v28, %v1210_v46 }
 0x527   :  { %v1712_v42 = vmax.f32 %v1686_v60, 0.0 }
 0x528   :  { %v1235_v3 = vmax.f32 %v1211_v49, 0.0 }
 0x529   :  { %v1723_v41 = vpack.c.bf16 %v1712_v42, %v1711_v51 }
 0x52b   :  { %1819 = vmatmul.bf16.gmra.mxu0 %v1723_v41 }
 0x52d   :  { %v1212_v43 = vpop.f32.mrf.mxu2 }
 0x52e   :  { %v1213_v19 = vadd.f32 %v6308_v28, %v1212_v43 }
 0x530   :  { %v1236_v12 = vmax.f32 %v1213_v19, 0.0 }
 0x532   :  { %v1246_v50 = vpack.c.bf16 %v1236_v12, %v1235_v3 }
 0x534   :  { %1921 = vmatmul.bf16.gmra.mxu1 %v1246_v50 }
 0x546   :  { %v1688_v29 = vpop.f32.mrf.mxu3 }
 0x547   :  { %v1689_v39 = vadd.f32 %v6375_v11, %v1688_v29 }
 0x549   :  { %v1713_v54 = vmax.f32 %v1689_v39, 0.0  ;;  %v4979_v39 = vmov 128.0  }
 0x54a   :  { %4816 = vrcp.f32 %v4979_v39 }
 0x54e   :  { %v1215_v32 = vpop.f32.mrf.mxu2  ;;  %v1690_v57 = vpop.f32.mrf.mxu3 }
 0x54f   :  { %v1691_v8 = vadd.f32 %v6375_v11, %v1690_v57  ;;  %v1216_v40 = vadd.f32 %v6308_v28, %v1215_v32 }
 0x550   :  { %v4817_v32 = vpop.eup %4816 }
 0x551   :  { %v1714_v33 = vmax.f32 %v1691_v8, 0.0  ;;  %v1237_v10 = vmax.f32 %v1216_v40, 0.0  ;;  %v1992_v57 = vmul.f32 128.0, %v4817_v32  ;;  %vm1996_vm3 = vweird.f32 %v4817_v32 }
 0x553   :  { %v1724_v17 = vpack.c.bf16 %v1714_v33, %v1713_v54  ;;  %v1993_v8 = vsub.f32 1.0, %v1992_v57 }
 0x555   :  { %1824 = vmatmul.bf16.gmra.mxu0 %v1724_v17  ;;  %v1994_v54 = vmul.f32 %v4817_v32, %v1993_v8 }
 0x556   :  { %v1217_v44 = vpop.f32.mrf.mxu2 }
 0x557   :  { %v1218_v48 = vadd.f32 %v6308_v28, %v1217_v44  ;;  %v1995_v33 = vadd.f32 %v4817_v32, %v1994_v54 }
 0x559   :  { %v1238_v18 = vmax.f32 %v1218_v48, 0.0  ;;  %v6444_v17 = vsel %vm1996_vm3, %v4817_v32, %v1995_v33 }
 0x55b   :  { %v1247_v62 = vpack.c.bf16 %v1238_v18, %v1237_v10 }
 0x55c   :  { %v1800_v24 = vpop.f32.mrf.mxu0 }
 0x55d   :  { %v1898_v47 = vadd.f32 %v1897_v31, %v1800_v24  ;;  %1926 = vmatmul.bf16.gmra.mxu1 %v1247_v62 }
 0x55f   :  { %v6411_v45 = vadd.f32 %v6408_v6, %v1898_v47 }
 0x561   :  { %1959 = vadd.xlane.f32.xlu1 %v6411_v45 }
 0x563   :  { %v1907_v34 = vpop.f32.mrf.mxu1 }
 0x564   :  { %v1802_v36 = vpop.f32.mrf.mxu0 }
 0x565   :  { %v1900_v55 = vadd.f32 %v1899_v7, %v1802_v36 }
 0x566   :  { %v1693_v16 = vpop.f32.mrf.mxu3 }
 0x567   :  { %v6415_v27 = vadd.f32 %v6408_v6, %v1900_v55  ;;  %v1694_v1 = vadd.f32 %v6375_v11, %v1693_v16 }
 0x569   :  { %1961 = vadd.xlane.f32.xlu2 %v6415_v27  ;;  %v1715_v13 = vmax.f32 %v1694_v1, 0.0 }
 0x56b   :  { %v1909_v4 = vpop.f32.mrf.mxu1 }
 0x56c   :  { %v1805_v37 = vpop.f32.mrf.mxu0 }
 0x56d   :  { %v1903_v23 = vadd.f32 %v1902_v21, %v1805_v37 }
 0x56e   :  { %v1695_v0 = vpop.f32.mrf.mxu3 }
 0x56f   :  { %v1696_v35 = vadd.f32 %v6375_v11, %v1695_v0  ;;  %v6421_v58 = vadd.f32 %v6408_v6, %v1903_v23 }
 0x571   :  { %v1716_v2 = vmax.f32 %v1696_v35, 0.0  ;;  %1963 = vadd.xlane.f32.xlu0 %v6421_v58 }
 0x573   :  { %v1725_v61 = vpack.c.bf16 %v1716_v2, %v1715_v13 }
 0x574   :  { %v1807_v26 = vpop.f32.mrf.mxu0 }
 0x575   :  { %v1905_v59 = vadd.f32 %v1904_v14, %v1807_v26  ;;  %1829 = vmatmul.bf16.gmra.mxu0 %v1725_v61 }
 0x577   :  { %v6425_v53 = vadd.f32 %v6408_v6, %v1905_v59 }
 0x579   :  { %1965 = vadd.xlane.f32.xlu1 %v6425_v53 }
 0x588   :  { %v1810_v52 = vpop.f32.mrf.mxu0 }
 0x589   :  { %v1908_v15 = vadd.f32 %v1907_v34, %v1810_v52 }
 0x58b   :  { %v1220_v38 = vpop.f32.mrf.mxu2  ;;  %v6429_v22 = vadd.f32 %v6408_v6, %v1908_v15 }
 0x58c   :  { %v1221_v5 = vadd.f32 %v6308_v28, %v1220_v38 }
 0x58d   :  { %1967 = vadd.xlane.f32.xlu2 %v6429_v22 }
 0x58e   :  { %v1239_v46 = vmax.f32 %v1221_v5, 0.0 }
 0x590   :  { %v1812_v20 = vpop.f32.mrf.mxu0 }
 0x591   :  { %v1910_v56 = vadd.f32 %v1909_v4, %v1812_v20  ;;  %v1912_v51 = vpop.f32.mrf.mxu1 }
 0x593   :  { %v1222_v63 = vpop.f32.mrf.mxu2  ;;  %v1698_v25 = vpop.f32.mrf.mxu3  ;;  %v6434_v30 = vadd.f32 %v6408_v6, %v1910_v56 }
 0x594   :  { %v1223_v9 = vadd.f32 %v6308_v28, %v1222_v63  ;;  %v1699_v43 = vadd.f32 %v6375_v11, %v1698_v25  ;;  %v4578_v25 = vld [vmem:[%s7547_s8 + $0x38] sm:$0xff] }
 0x595   :  { %1969 = vadd.xlane.f32.xlu0 %v6434_v30  ;;  %2416 = vmatpush.bf16.msrb.mxu2 %v4578_v25 }
 0x596   :  { %v1240_v60 = vmax.f32 %v1223_v9, 0.0  ;;  %v1717_v28 = vmax.f32 %v1699_v43, 0.0 }
 0x598   :  { %v1248_v42 = vpack.c.bf16 %v1240_v60, %v1239_v46  ;;  %v1815_v41 = vpop.f32.mrf.mxu0 }
 0x599   :  { %v1913_v49 = vadd.f32 %v1912_v51, %v1815_v41 }
 0x59a   :  { %1931 = vmatmul.bf16.gmra.mxu1 %v1248_v42 }
 0x59b   :  { %v6440_v19 = vadd.f32 %v6408_v6, %v1913_v49  ;;  %v1700_v3 = vpop.f32.mrf.mxu3 }
 0x59c   :  { %v1701_v12 = vadd.f32 %v6375_v11, %v1700_v3  ;;  %v1914_v11 = vpop.f32.mrf.mxu1 }
 0x59d   :  { %1971 = vadd.xlane.f32.xlu0 %v6440_v19 }
 0x59e   :  { %v1718_v50 = vmax.f32 %v1701_v12, 0.0 }
 0x5a0   :  { %v1726_v29 = vpack.c.bf16 %v1718_v50, %v1717_v28  ;;  %v1817_v44 = vpop.f32.mrf.mxu0 }
 0x5a1   :  { %v1915_v62 = vadd.f32 %v1914_v11, %v1817_v44  ;;  %v4575_v44 = vld [vmem:[%s7547_s8 + $0x20] sm:$0xff] }
 0x5a2   :  { %1834 = vmatmul.bf16.gmra.mxu0 %v1726_v29 }
 0x5a3   :  { %v6459_v16 = vadd.f32 %v6408_v6, %v1915_v62 }
 0x5a4   :  { %v1917_v7 = vpop.f32.mrf.mxu1 }
 0x5a8   :  { %v1820_v36 = vpop.f32.mrf.mxu0 }
 0x5a9   :  { %v1918_v21 = vadd.f32 %v1917_v7, %v1820_v36 }
 0x5ab   :  { %v6469_v23 = vadd.f32 %v6408_v6, %v1918_v21 }
 0x5ac   :  { %v1919_v0 = vpop.f32.mrf.mxu1 }
 0x5b0   :  { %v1822_v35 = vpop.f32.mrf.mxu0 }
 0x5b1   :  { %v1920_v2 = vadd.f32 %v1919_v0, %v1822_v35  ;;  %v4572_v35 = vld [vmem:[%s7547_s8 + $0x8] sm:$0xff] }
 0x5b4   :  { %v1922_v34 = vpop.f32.mrf.mxu1 }
 0x5bc   :  { %v1924_v5 = vpop.f32.mrf.mxu1 }
 0x5d2   :  { %v1825_v59 = vpop.f32.mrf.mxu0 }
 0x5d3   :  { %v1923_v52 = vadd.f32 %v1922_v34, %v1825_v59 }
 0x5d4   :  { %v1960_v40 = vpop.xlane.xlu1 %1959 }
 0x5d5   :  { %v1998_v31 = vmul.f32 %v6444_v17, %v1960_v40  ;;  %v6483_v15 = vadd.f32 %v6408_v6, %v1923_v52  ;;  %v4576_v40 = vld [vmem:[%s7547_s8 + $0x28] sm:$0xff] }
 0x5d7   :  { %v6448_v48 = vsub.f32 %v6411_v45, %v1998_v31 }
 0x5d9   :  { %v2030_v10 = vmul.f32 %v6448_v48, %v6448_v48 }
 0x5da   :  { %v1827_v20 = vpop.f32.mrf.mxu0  ;;  %v1927_v49 = vpop.f32.mrf.mxu1 }
 0x5db   :  { %2046 = vadd.xlane.f32.xlu1 %v2030_v10  ;;  %v1925_v9 = vadd.f32 %v1924_v5, %v1827_v20 }
 0x5dc   :  { %v1962_v18 = vpop.xlane.xlu2 %1961 }
 0x5dd   :  { %v1999_v24 = vmul.f32 %v6444_v17, %v1962_v18  ;;  %v6503_v42 = vadd.f32 %v6408_v6, %v1925_v9  ;;  %v4574_v18 = vld [vmem:[%s7547_s8 + $0x18] sm:$0xff] }
 0x5df   :  { %v6454_v47 = vsub.f32 %v6415_v27, %v1999_v24 }
 0x5e1   :  { %v2031_v55 = vmul.f32 %v6454_v47, %v6454_v47 }
 0x5e2   :  { %v1929_v39 = vpop.f32.mrf.mxu1 }
 0x5e3   :  { %2048 = vadd.xlane.f32.xlu2 %v2031_v55  ;;  %1973 = vadd.xlane.f32.xlu1 %v6459_v16  ;;  %v4573_v55 = vld [vmem:[%s7547_s8 + $0x10] sm:$0xff] }
 0x5e4   :  { %v1964_v45 = vpop.xlane.xlu0 %1963 }
 0x5e5   :  { %v2000_v37 = vmul.f32 %v6444_v17, %v1964_v45 }
 0x5e7   :  { %v6464_v1 = vsub.f32 %v6421_v58, %v2000_v37  ;;  %v6477_v58 = vadd.f32 %v6408_v6, %v1920_v2  ;;  %v4571_v2 = vld [vmem:[%s7547_s8] sm:$0xff] }
 0x5e9   :  { %v2032_v27 = vmul.f32 %v6464_v1, %v6464_v1 }
 0x5eb   :  { %2050 = vadd.xlane.f32.xlu2 %v2032_v27  ;;  %1975 = vadd.xlane.f32.xlu1 %v6469_v23 }
 0x5ec   :  { %v1966_v13 = vpop.xlane.xlu1 %1965 }
 0x5ed   :  { %v2001_v61 = vmul.f32 %v6444_v17, %v1966_v13 }
 0x5ef   :  { %v6474_v14 = vsub.f32 %v6425_v53, %v2001_v61 }
 0x5f1   :  { %v2033_v26 = vmul.f32 %v6474_v14, %v6474_v14 }
 0x5f2   :  { %v1830_v51 = vpop.f32.mrf.mxu0 }
 0x5f3   :  { %1977 = vadd.xlane.f32.xlu2 %v6477_v58  ;;  %2052 = vadd.xlane.f32.xlu0 %v2033_v26  ;;  %v1928_v3 = vadd.f32 %v1927_v49, %v1830_v51 }
 0x5fa   :  { %v1832_v29 = vpop.f32.mrf.mxu0 }
 0x5fb   :  { %1979 = vadd.xlane.f32.xlu2 %v6483_v15  ;;  %v1930_v32 = vadd.f32 %v1929_v39, %v1832_v29 }
 0x5fd   :  { %v6519_v57 = vadd.f32 %v6408_v6, %v1930_v32 }
 0x600   :  { %v1968_v38 = vpop.xlane.xlu2 %1967 }
 0x601   :  { %v2002_v53 = vmul.f32 %v6444_v17, %v1968_v38 }
 0x603   :  { %v6488_v4 = vsub.f32 %v6429_v22, %v2002_v53  ;;  %v4577_v22 = vld [vmem:[%s7547_s8 + $0x30] sm:$0xff] }
 0x604   :  { %2417 = vmatpush.bf16.msrb.mxu2 %v4577_v22 }
 0x605   :  { %v2034_v56 = vmul.f32 %v6488_v4, %v6488_v4 }
 0x607   :  { %2054 = vadd.xlane.f32.xlu0 %v2034_v56 }
 0x608   :  { %v1970_v63 = vpop.xlane.xlu0 %1969  ;;  %2418 = vmatpush.bf16.msrb.mxu2 %v4576_v40  ;;  %v6573_v40 = vld [vmem:[%s7546_s7] ss:$0 sm:$0xff]  ;;  %s4983_s7 = smov 128  }
 0x609   :  { %v2003_v46 = vmul.f32 %v6444_v17, %v1970_v63 }
 0x60b   :  { %v6500_v60 = vsub.f32 %v6434_v30, %v2003_v46  ;;  %v6513_v30 = vadd.f32 %v6408_v6, %v1928_v3 }
 0x60c   :  { %2419 = vmatpush.bf16.msrb.mxu2 %v4575_v44 }
 0x60d   :  { %v2035_v41 = vmul.f32 %v6500_v60, %v6500_v60 }
 0x60f   :  { %2056 = vadd.xlane.f32.xlu1 %v2035_v41  ;;  %1981 = vadd.xlane.f32.xlu0 %v6503_v42 }
 0x610   :  { %v1972_v43 = vpop.xlane.xlu0 %1971  ;;  %2420 = vmatpush.bf16.msrb.mxu2 %v4574_v18 }
 0x611   :  { %v2004_v12 = vmul.f32 %v6444_v17, %v1972_v43 }
 0x613   :  { %v6510_v28 = vsub.f32 %v6440_v19, %v2004_v12 }
 0x614   :  { %2421 = vmatpush.bf16.msrb.mxu2 %v4573_v55 }
 0x615   :  { %v2036_v50 = vmul.f32 %v6510_v28, %v6510_v28 }
 0x617   :  { %2058 = vadd.xlane.f32.xlu1 %v2036_v50  ;;  %1983 = vadd.xlane.f32.xlu0 %v6513_v30  ;;  %v1932_v19 = vpop.f32.mrf.mxu1 }
 0x618   :  { %2422 = vmatpush.bf16.msrb.mxu2 %v4572_v35 }
 0x61c   :  { %2423 = vmatpush.bf16.msrb.mxu2 %v4571_v2 }
 0x61f   :  { %v1835_v8 = vpop.f32.mrf.mxu0  ;;  %1985 = vadd.xlane.f32.xlu1 %v6519_v57  ;;  %v1934_v22 = vpop.f32.mrf.mxu1 }
 0x620   :  { %v1933_v54 = vadd.f32 %v1932_v19, %v1835_v8 }
 0x622   :  { %v6523_v33 = vadd.f32 %v6408_v6, %v1933_v54 }
 0x627   :  { %1987 = vadd.xlane.f32.xlu1 %v6523_v33  ;;  %v1837_v25 = vpop.f32.mrf.mxu0 }
 0x628   :  { %v1935_v43 = vadd.f32 %v1934_v22, %v1837_v25 }
 0x64e   :  { %v2047_v31 = vpop.xlane.xlu1 %2046 }
 0x64f   :  { %v2078_v11 = vmul.f32 %v2047_v31, %v6444_v17 }
 0x651   :  { %v2094_v10 = vadd.f32 1e-05, %v2078_v11  ;;  %v6579_v11 = vadd.f32 %v6408_v6, %v1935_v43 }
 0x653   :  { %4818 = vrsqrt.f32 %v2094_v10  ;;  %vm2116_vm5 = vweird.f32 %v2094_v10 }
 0x656   :  { %v2049_v62 = vpop.xlane.xlu2 %2048  ;;  %v1974_v24 = vpop.xlane.xlu1 %1973 }
 0x657   :  { %v2079_v7 = vmul.f32 %v2049_v62, %v6444_v17  ;;  %v2005_v36 = vmul.f32 %v6444_v17, %v1974_v24 }
 0x659   :  { %v4819_v45 = vpop.eup %4818  ;;  %v2095_v21 = vadd.f32 1e-05, %v2079_v7  ;;  %v6542_v37 = vsub.f32 %v6459_v16, %v2005_v36 }
 0x65a   :  { %v2111_v27 = vmul.f32 %v4819_v45, %v2094_v10  ;;  %vm2117_vm4 = vweird.f32 %v4819_v45 }
 0x65b   :  { %4820 = vrsqrt.f32 %v2095_v21  ;;  %v2037_v0 = vmul.f32 %v6542_v37, %v6542_v37  ;;  %vm2118_vm7 = vmor %vm2116_vm5, %vm2117_vm4  ;;  %vm2126_vm0 = vweird.f32 %v2095_v21 }
 0x65c   :  { %v2112_v13 = vmul.f32 %v4819_v45, %v2111_v27 }
 0x65d   :  { %2060 = vadd.xlane.f32.xlu2 %v2037_v0 }
 0x65e   :  { %v2113_v61 = vmul.f32 0.5, %v2112_v13  ;;  %v2051_v16 = vpop.xlane.xlu2 %2050  ;;  %v1976_v26 = vpop.xlane.xlu1 %1975 }
 0x65f   :  { %v2080_v59 = vmul.f32 %v2051_v16, %v6444_v17  ;;  %v2006_v34 = vmul.f32 %v6444_v17, %v1976_v26 }
 0x660   :  { %v2114_v52 = vsub.f32 1.5, %v2113_v61 }
 0x661   :  { %v4821_v38 = vpop.eup %4820  ;;  %v2096_v53 = vadd.f32 1e-05, %v2080_v59  ;;  %v6555_v20 = vsub.f32 %v6469_v23, %v2006_v34  ;;  %v6562_v23 = vld [vmem:[%s7545_s6] ss:$0 sm:$0xff]  ;;  %s4055_s6 = sshll.u32 %s7557_s18, 4  ;;  %s4056_s6 = int_to_ptr.hbm [resolvable:$true] %s4055_s6 }
 0x662   :  { %v2115_v56 = vmul.f32 %v4819_v45, %v2114_v52  ;;  %v2121_v5 = vmul.f32 %v4821_v38, %v2095_v21  ;;  %vm2127_vm13 = vweird.f32 %v4821_v38 }
 0x663   :  { %4822 = vrsqrt.f32 %v2096_v53  ;;  %v2038_v63 = vmul.f32 %v6555_v20, %v6555_v20  ;;  %vm2128_vm6 = vmor %vm2126_vm0, %vm2127_vm13  ;;  %vm2136_vm9 = vweird.f32 %v2096_v53 }
 0x664   :  { %v2119_v9 = vsel %vm2118_vm7, %v4819_v45, %v2115_v56  ;;  %v2122_v46 = vmul.f32 %v4821_v38, %v2121_v5 }
 0x665   :  { %2062 = vadd.xlane.f32.xlu2 %v2038_v63  ;;  %v2270_v3 = vmul.f32 %v2119_v9, %v6448_v48 }
 0x666   :  { %v2123_v51 = vmul.f32 0.5, %v2122_v46  ;;  %v1978_v41 = vpop.xlane.xlu2 %1977  ;;  %v2053_v49 = vpop.xlane.xlu0 %2052 }
 0x667   :  { %v2007_v12 = vmul.f32 %v6444_v17, %v1978_v41  ;;  %v2081_v50 = vmul.f32 %v2053_v49, %v6444_v17  ;;  %v2289_v48 = vmul.f32 %v6562_v23, %v2270_v3 }
 0x668   :  { %v2124_v29 = vsub.f32 1.5, %v2123_v51 }
 0x669   :  { %v4823_v39 = vpop.eup %4822  ;;  %v6568_v32 = vsub.f32 %v6477_v58, %v2007_v12  ;;  %v2097_v8 = vadd.f32 1e-05, %v2081_v50  ;;  %v2308_v24 = vadd.f32 %v6573_v40, %v2289_v48 }
 0x66a   :  { %v2125_v19 = vmul.f32 %v4821_v38, %v2124_v29  ;;  %v2131_v54 = vmul.f32 %v4823_v39, %v2096_v53  ;;  %vm2137_vm8 = vweird.f32 %v4823_v39 }
 0x66b   :  { %4824 = vrsqrt.f32 %v2097_v8  ;;  %v2039_v31 = vmul.f32 %v6568_v32, %v6568_v32  ;;  %vm2138_vm1 = vmor %vm2136_vm9, %vm2137_vm8  ;;  %v2324_v35 = vmax.f32 %v2308_v24, 0.0  ;;  %vm2146_vm11 = vweird.f32 %v2097_v8 }
 0x66c   :  { %v2129_v58 = vsel %vm2128_vm6, %v4821_v38, %v2125_v19  ;;  %v2132_v44 = vmul.f32 %v4823_v39, %v2131_v54 }
 0x66d   :  { %v2271_v10 = vmul.f32 %v2129_v58, %v6454_v47  ;;  %2064 = vadd.xlane.f32.xlu0 %v2039_v31  ;;  %1989 = vadd.xlane.f32.xlu2 %v6579_v11 }
 0x66e   :  { %v2133_v18 = vmul.f32 0.5, %v2132_v44  ;;  %v1980_v62 = vpop.xlane.xlu2 %1979 }
 0x66f   :  { %v2290_v7 = vmul.f32 %v6562_v23, %v2271_v10  ;;  %v2008_v36 = vmul.f32 %v6444_v17, %v1980_v62 }
 0x670   :  { %v2134_v55 = vsub.f32 1.5, %v2133_v18 }
 0x671   :  { %v4825_v45 = vpop.eup %4824  ;;  %v2309_v6 = vadd.f32 %v6573_v40, %v2290_v7  ;;  %v6588_v21 = vsub.f32 %v6483_v15, %v2008_v36 }
 0x672   :  { %v2135_v47 = vmul.f32 %v4823_v39, %v2134_v55  ;;  %v2141_v27 = vmul.f32 %v4825_v45, %v2097_v8  ;;  %vm2147_vm10 = vweird.f32 %v4825_v45 }
 0x673   :  { %v2040_v0 = vmul.f32 %v6588_v21, %v6588_v21  ;;  %v2325_v13 = vmax.f32 %v2309_v6, 0.0  ;;  %vm2148_vm12 = vmor %vm2146_vm11, %vm2147_vm10 }
 0x674   :  { %v2139_v2 = vsel %vm2138_vm1, %v4823_v39, %v2135_v47  ;;  %v2142_v61 = vmul.f32 %v4825_v45, %v2141_v27 }
 0x675   :  { %2066 = vadd.xlane.f32.xlu0 %v2040_v0  ;;  %v2340_v16 = vpack.c.bf16 %v2325_v13, %v2324_v35  ;;  %v2272_v59 = vmul.f32 %v2139_v2, %v6464_v1 }
 0x676   :  { %v2143_v26 = vmul.f32 0.5, %v2142_v61 }
 0x677   :  { %2424 = vmatmul.bf16.vlgmr.msrb.gmra.mxu2 %v2340_v16  ;;  %v2291_v53 = vmul.f32 %v6562_v23, %v2272_v59 }
 0x678   :  { %v2144_v34 = vsub.f32 1.5, %v2143_v26 }
 0x679   :  { %v2310_v1 = vadd.f32 %v6573_v40, %v2291_v53 }
 0x67a   :  { %v2145_v15 = vmul.f32 %v4825_v45, %v2144_v34  ;;  %v2055_v52 = vpop.xlane.xlu0 %2054 }
 0x67b   :  { %v2082_v38 = vmul.f32 %v2055_v52, %v6444_v17  ;;  %v2326_v49 = vmax.f32 %v2310_v1, 0.0 }
 0x67c   :  { %v2149_v56 = vsel %vm2148_vm12, %v4825_v45, %v2145_v15 }
 0x67d   :  { %v2273_v5 = vmul.f32 %v2149_v56, %v6474_v14  ;;  %v2098_v63 = vadd.f32 1e-05, %v2082_v38 }
 0x67f   :  { %4826 = vrsqrt.f32 %v2098_v63  ;;  %v2292_v25 = vmul.f32 %v6562_v23, %v2273_v5  ;;  %vm2156_vm15 = vweird.f32 %v2098_v63 }
 0x681   :  { %v2311_v9 = vadd.f32 %v6573_v40, %v2292_v25 }
 0x682   :  { %v1982_v46 = vpop.xlane.xlu0 %1981  ;;  %v2057_v22 = vpop.xlane.xlu1 %2056 }
 0x683   :  { %v2009_v51 = vmul.f32 %v6444_v17, %v1982_v46  ;;  %v2083_v41 = vmul.f32 %v2057_v22, %v6444_v17  ;;  %v2327_v43 = vmax.f32 %v2311_v9, 0.0 }
 0x685   :  { %v4827_v3 = vpop.eup %4826  ;;  %v6602_v12 = vsub.f32 %v6503_v42, %v2009_v51  ;;  %v2099_v14 = vadd.f32 1e-05, %v2083_v41  ;;  %v2341_v50 = vpack.c.bf16 %v2327_v43, %v2326_v49 }
 0x686   :  { %v2151_v29 = vmul.f32 %v4827_v3, %v2098_v63  ;;  %vm2157_vm14 = vweird.f32 %v4827_v3 }
 0x687   :  { %4828 = vrsqrt.f32 %v2099_v14  ;;  %2429 = vmatmul.bf16.gmra.mxu2 %v2341_v50  ;;  %v2041_v39 = vmul.f32 %v6602_v12, %v6602_v12  ;;  %vm2158_vm2 = vmor %vm2156_vm15, %vm2157_vm14  ;;  %vm2166_vm4 = vweird.f32 %v2099_v14 }
 0x688   :  { %v2152_v8 = vmul.f32 %v4827_v3, %v2151_v29 }
 0x689   :  { %2068 = vadd.xlane.f32.xlu1 %v2041_v39 }
 0x68a   :  { %v2153_v19 = vmul.f32 0.5, %v2152_v8  ;;  %v1984_v54 = vpop.xlane.xlu0 %1983  ;;  %v2059_v48 = vpop.xlane.xlu1 %2058 }
 0x68b   :  { %v2010_v31 = vmul.f32 %v6444_v17, %v1984_v54  ;;  %v2084_v38 = vmul.f32 %v2059_v48, %v6444_v17 }
 0x68c   :  { %v2154_v58 = vsub.f32 1.5, %v2153_v19 }
 0x68d   :  { %v4829_v44 = vpop.eup %4828  ;;  %v6608_v42 = vsub.f32 %v6513_v30, %v2010_v31  ;;  %v2100_v53 = vadd.f32 1e-05, %v2084_v38 }
 0x68e   :  { %v2155_v10 = vmul.f32 %v4827_v3, %v2154_v58  ;;  %v2161_v18 = vmul.f32 %v4829_v44, %v2099_v14  ;;  %vm2167_vm3 = vweird.f32 %v4829_v44 }
 0x68f   :  { %v2042_v62 = vmul.f32 %v6608_v42, %v6608_v42  ;;  %vm2168_vm5 = vmor %vm2166_vm4, %vm2167_vm3  ;;  %4830 = vrsqrt.f32 %v2100_v53  ;;  %vm2176_vm13 = vweird.f32 %v2100_v53 }
 0x690   :  { %v2159_v24 = vsel %vm2158_vm2, %v4827_v3, %v2155_v10  ;;  %v2162_v7 = vmul.f32 %v4829_v44, %v2161_v18  ;;  %vm2467_vm2 = vcmask 523264  }
 0x691   :  { %2070 = vadd.xlane.f32.xlu2 %v2042_v62  ;;  %v2274_v45 = vmul.f32 %v2159_v24, %v6488_v4 }
 0x692   :  { %v2163_v36 = vmul.f32 0.5, %v2162_v7  ;;  %v1986_v55 = vpop.xlane.xlu1 %1985 }
 0x693   :  { %v2011_v6 = vmul.f32 %v6444_v17, %v1986_v55  ;;  %v2293_v35 = vmul.f32 %v6562_v23, %v2274_v45 }
 0x694   :  { %v2164_v47 = vsub.f32 1.5, %v2163_v36 }
 0x695   :  { %v6615_v30 = vsub.f32 %v6519_v57, %v2011_v6  ;;  %v2312_v57 = vadd.f32 %v6573_v40, %v2293_v35  ;;  %v4831_v56 = vpop.eup %4830 }
 0x696   :  { %v2165_v27 = vmul.f32 %v4829_v44, %v2164_v47  ;;  %v2171_v5 = vmul.f32 %v4831_v56, %v2100_v53  ;;  %vm2177_vm7 = vweird.f32 %v4831_v56 }
 0x697   :  { %v2043_v0 = vmul.f32 %v6615_v30, %v6615_v30  ;;  %v2328_v15 = vmax.f32 %v2312_v57, 0.0  ;;  %vm2178_vm0 = vmor %vm2176_vm13, %vm2177_vm7 }
 0x698   :  { %v2169_v13 = vsel %vm2168_vm5, %v4829_v44, %v2165_v27  ;;  %v2172_v63 = vmul.f32 %v4831_v56, %v2171_v5 }
 0x699   :  { %v2275_v2 = vmul.f32 %v2169_v13, %v6500_v60  ;;  %2072 = vadd.xlane.f32.xlu0 %v2043_v0 }
 0x69a   :  { %v1988_v4 = vpop.xlane.xlu1 %1987  ;;  %v2173_v1 = vmul.f32 0.5, %v2172_v63 }
 0x69b   :  { %v2012_v61 = vmul.f32 %v6444_v17, %v1988_v4  ;;  %v2294_v16 = vmul.f32 %v6562_v23, %v2275_v2 }
 0x69c   :  { %v2174_v46 = vsub.f32 1.5, %v2173_v1 }
 0x69d   :  { %v6625_v26 = vsub.f32 %v6523_v33, %v2012_v61  ;;  %v2313_v59 = vadd.f32 %v6573_v40, %v2294_v16 }
 0x69e   :  { %v2175_v41 = vmul.f32 %v4831_v56, %v2174_v46 }
 0x69f   :  { %v2044_v34 = vmul.f32 %v6625_v26, %v6625_v26  ;;  %v2329_v52 = vmax.f32 %v2313_v59, 0.0 }
 0x6a0   :  { %v2179_v14 = vsel %vm2178_vm0, %v4831_v56, %v2175_v41 }
 0x6a1   :  { %2074 = vadd.xlane.f32.xlu1 %v2044_v34  ;;  %v2342_v60 = vpack.c.bf16 %v2329_v52, %v2328_v15  ;;  %v2276_v19 = vmul.f32 %v2179_v14, %v6510_v28 }
 0x6a3   :  { %2434 = vmatmul.bf16.gmra.mxu2 %v2342_v60  ;;  %v2295_v28 = vmul.f32 %v6562_v23, %v2276_v19 }
 0x6a5   :  { %v2314_v27 = vadd.f32 %v6573_v40, %v2295_v28 }
 0x6d0   :  { %v2061_v25 = vpop.xlane.xlu2 %2060 }
 0x6d1   :  { %v2085_v33 = vmul.f32 %v2061_v25, %v6444_v17 }
 0x6d3   :  { %v2101_v9 = vadd.f32 1e-05, %v2085_v33  ;;  %v6653_v33 = vld [vmem:[%s7548_s9] ss:$0 sm:$0xff]  ;;  %s4984_s9 = smov 8  }
 0x6d5   :  { %4832 = vrsqrt.f32 %v2101_v9  ;;  %vm2186_vm8 = vweird.f32 %v2101_v9 }
 0x6d8   :  { %v2063_v22 = vpop.xlane.xlu2 %2062 }
 0x6d9   :  { %v2086_v51 = vmul.f32 %v2063_v22, %v6444_v17 }
 0x6db   :  { %v4833_v49 = vpop.eup %4832  ;;  %v2102_v43 = vadd.f32 1e-05, %v2086_v51 }
 0x6dc   :  { %v2181_v3 = vmul.f32 %v4833_v49, %v2101_v9  ;;  %vm2187_vm6 = vweird.f32 %v4833_v49 }
 0x6dd   :  { %4834 = vrsqrt.f32 %v2102_v43  ;;  %vm2188_vm9 = vmor %vm2186_vm8, %vm2187_vm6  ;;  %vm2196_vm10 = vweird.f32 %v2102_v43 }
 0x6de   :  { %v2182_v50 = vmul.f32 %v4833_v49, %v2181_v3 }
 0x6e0   :  { %v2183_v29 = vmul.f32 0.5, %v2182_v50  ;;  %v2065_v39 = vpop.xlane.xlu0 %2064  ;;  %v1990_v8 = vpop.xlane.xlu2 %1989 }
 0x6e1   :  { %v2087_v54 = vmul.f32 %v2065_v39, %v6444_v17  ;;  %v2013_v48 = vmul.f32 %v6444_v17, %v1990_v8 }
 0x6e2   :  { %v2184_v31 = vsub.f32 1.5, %v2183_v29 }
 0x6e3   :  { %v4835_v58 = vpop.eup %4834  ;;  %v2103_v44 = vadd.f32 1e-05, %v2087_v54  ;;  %v6637_v10 = vsub.f32 %v6579_v11, %v2013_v48 }
 0x6e4   :  { %v2185_v18 = vmul.f32 %v4833_v49, %v2184_v31  ;;  %v2191_v62 = vmul.f32 %v4835_v58, %v2102_v43  ;;  %vm2197_vm1 = vweird.f32 %v4835_v58 }
 0x6e5   :  { %4836 = vrsqrt.f32 %v2103_v44  ;;  %v2045_v24 = vmul.f32 %v6637_v10, %v6637_v10  ;;  %vm2198_vm11 = vmor %vm2196_vm10, %vm2197_vm1  ;;  %vm2206_vm14 = vweird.f32 %v2103_v44 }
 0x6e6   :  { %v2189_v7 = vsel %vm2188_vm9, %v4833_v49, %v2185_v18  ;;  %v2192_v36 = vmul.f32 %v4835_v58, %v2191_v62 }
 0x6e7   :  { %v2277_v55 = vmul.f32 %v2189_v7, %v6542_v37  ;;  %2076 = vadd.xlane.f32.xlu2 %v2045_v24  ;;  %v2330_v37 = vmax.f32 %v2314_v27, 0.0 }
 0x6e8   :  { %v2193_v45 = vmul.f32 0.5, %v2192_v36  ;;  %v2067_v6 = vpop.xlane.xlu0 %2066 }
 0x6e9   :  { %v2088_v11 = vmul.f32 %v2067_v6, %v6444_v17  ;;  %v2296_v47 = vmul.f32 %v6562_v23, %v2277_v55 }
 0x6ea   :  { %v2194_v0 = vsub.f32 1.5, %v2193_v45 }
 0x6eb   :  { %v4837_v35 = vpop.eup %4836  ;;  %v2104_v13 = vadd.f32 1e-05, %v2088_v11  ;;  %v2315_v2 = vadd.f32 %v6573_v40, %v2296_v47 }
 0x6ec   :  { %v2195_v4 = vmul.f32 %v4835_v58, %v2194_v0  ;;  %v2201_v61 = vmul.f32 %v4837_v35, %v2103_v44  ;;  %vm2207_vm12 = vweird.f32 %v4837_v35 }
 0x6ed   :  { %4838 = vrsqrt.f32 %v2104_v13  ;;  %v2331_v16 = vmax.f32 %v2315_v2, 0.0  ;;  %vm2208_vm15 = vmor %vm2206_vm14, %vm2207_vm12  ;;  %vm2216_vm4 = vweird.f32 %v2104_v13 }
 0x6ee   :  { %v2199_v57 = vsel %vm2198_vm11, %v4835_v58, %v2195_v4  ;;  %v2202_v59 = vmul.f32 %v4837_v35, %v2201_v61 }
 0x6ef   :  { %v2343_v34 = vpack.c.bf16 %v2331_v16, %v2330_v37  ;;  %v2278_v52 = vmul.f32 %v2199_v57, %v6555_v20 }
 0x6f0   :  { %v2203_v15 = vmul.f32 0.5, %v2202_v59 }
 0x6f1   :  { %2439 = vmatmul.bf16.gmra.mxu2 %v2343_v34  ;;  %v2297_v56 = vmul.f32 %v6562_v23, %v2278_v52 }
 0x6f2   :  { %v2204_v60 = vsub.f32 1.5, %v2203_v15 }
 0x6f3   :  { %v4839_v38 = vpop.eup %4838  ;;  %v2316_v1 = vadd.f32 %v6573_v40, %v2297_v56 }
 0x6f4   :  { %v2205_v53 = vmul.f32 %v4837_v35, %v2204_v60  ;;  %v2211_v63 = vmul.f32 %v4839_v38, %v2104_v13  ;;  %vm2217_vm3 = vweird.f32 %v4839_v38 }
 0x6f5   :  { %v2332_v43 = vmax.f32 %v2316_v1, 0.0  ;;  %vm2218_vm5 = vmor %vm2216_vm4, %vm2217_vm3 }
 0x6f6   :  { %v2209_v5 = vsel %vm2208_vm15, %v4837_v35, %v2205_v53  ;;  %v2212_v9 = vmul.f32 %v4839_v38, %v2211_v63 }
 0x6f7   :  { %v2279_v25 = vmul.f32 %v2209_v5, %v6568_v32 }
 0x6f8   :  { %v2213_v14 = vmul.f32 0.5, %v2212_v9 }
 0x6f9   :  { %v2298_v20 = vmul.f32 %v6562_v23, %v2279_v25 }
 0x6fa   :  { %v2425_v46 = vpop.f32.mrf.mxu2  ;;  %v2214_v39 = vsub.f32 1.5, %v2213_v14 }
 0x6fb   :  { %v6658_v22 = vadd.f32 %v6653_v33, %v2425_v46  ;;  %v2317_v51 = vadd.f32 %v6573_v40, %v2298_v20 }
 0x6fc   :  { %v2069_v41 = vpop.xlane.xlu1 %2068  ;;  %v2215_v58 = vmul.f32 %v4839_v38, %v2214_v39 }
 0x6fd   :  { %v2089_v32 = vmul.f32 %v2069_v41, %v6444_v17  ;;  %v2468_v49 = vsel %vm2467_vm2, %v6658_v22, 0.0  ;;  %v2333_v3 = vmax.f32 %v2317_v51, 0.0 }
 0x6fe   :  { %2469 = vadd.xlane.f32.xlu0 %v2468_v49  ;;  %v2219_v24 = vsel %vm2218_vm5, %v4839_v38, %v2215_v58 }
 0x6ff   :  { %v2105_v50 = vadd.f32 1e-05, %v2089_v32  ;;  %v2344_v29 = vpack.c.bf16 %v2333_v3, %v2332_v43  ;;  %v2280_v6 = vmul.f32 %v2219_v24, %v6588_v21 }
 0x701   :  { %4840 = vrsqrt.f32 %v2105_v50  ;;  %2444 = vmatmul.bf16.gmra.mxu2 %v2344_v29  ;;  %vm2226_vm13 = vweird.f32 %v2105_v50  ;;  %v2299_v4 = vmul.f32 %v6562_v23, %v2280_v6 }
 0x702   :  { %v2427_v8 = vpop.f32.mrf.mxu2 }
 0x703   :  { %v6665_v19 = vadd.f32 %v6653_v33, %v2427_v8  ;;  %v2318_v52 = vadd.f32 %v6573_v40, %v2299_v4 }
 0x704   :  { %v2071_v54 = vpop.xlane.xlu2 %2070 }
 0x705   :  { %v2090_v48 = vmul.f32 %v2071_v54, %v6444_v17  ;;  %v2471_v31 = vsel %vm2467_vm2, %v6665_v19, 0.0  ;;  %v2334_v5 = vmax.f32 %v2318_v52, 0.0 }
 0x706   :  { %2472 = vadd.xlane.f32.xlu1 %v2471_v31 }
 0x707   :  { %v4841_v44 = vpop.eup %4840  ;;  %v2106_v18 = vadd.f32 1e-05, %v2090_v48 }
 0x708   :  { %v2221_v62 = vmul.f32 %v4841_v44, %v2105_v50  ;;  %vm2227_vm7 = vweird.f32 %v4841_v44 }
 0x709   :  { %4842 = vrsqrt.f32 %v2106_v18  ;;  %vm2228_vm0 = vmor %vm2226_vm13, %vm2227_vm7  ;;  %vm2236_vm8 = vweird.f32 %v2106_v18 }
 0x70a   :  { %v2222_v28 = vmul.f32 %v4841_v44, %v2221_v62  ;;  %v2430_v7 = vpop.f32.mrf.mxu2 }
 0x70b   :  { %v6671_v36 = vadd.f32 %v6653_v33, %v2430_v7  ;;  %v4980_v7 = vmov 64.0  }
 0x70c   :  { %v2223_v55 = vmul.f32 0.5, %v2222_v28  ;;  %v2073_v45 = vpop.xlane.xlu0 %2072 }
 0x70d   :  { %v2091_v11 = vmul.f32 %v2073_v45, %v6444_v17  ;;  %v2474_v47 = vsel %vm2467_vm2, %v6671_v36, 0.0 }
 0x70e   :  { %v2224_v27 = vsub.f32 1.5, %v2223_v55  ;;  %2475 = vadd.xlane.f32.xlu2 %v2474_v47 }
 0x70f   :  { %v4843_v0 = vpop.eup %4842  ;;  %v2107_v35 = vadd.f32 1e-05, %v2091_v11 }
 0x710   :  { %v2225_v13 = vmul.f32 %v4841_v44, %v2224_v27  ;;  %v2231_v2 = vmul.f32 %v4843_v0, %v2106_v18  ;;  %vm2237_vm6 = vweird.f32 %v4843_v0 }
 0x711   :  { %4844 = vrsqrt.f32 %v2107_v35  ;;  %vm2238_vm9 = vmor %vm2236_vm8, %vm2237_vm6  ;;  %vm2246_vm10 = vweird.f32 %v2107_v35 }
 0x712   :  { %v2229_v61 = vsel %vm2228_vm0, %v4841_v44, %v2225_v13  ;;  %v2232_v37 = vmul.f32 %v4843_v0, %v2231_v2  ;;  %v2432_v21 = vpop.f32.mrf.mxu2 }
 0x713   :  { %v2281_v16 = vmul.f32 %v2229_v61, %v6602_v12  ;;  %v6680_v57 = vadd.f32 %v6653_v33, %v2432_v21 }
 0x714   :  { %v2233_v59 = vmul.f32 0.5, %v2232_v37  ;;  %v2075_v44 = vpop.xlane.xlu1 %2074 }
 0x715   :  { %v2477_v34 = vsel %vm2467_vm2, %v6680_v57, 0.0  ;;  %v2300_v15 = vmul.f32 %v6562_v23, %v2281_v16  ;;  %v2092_v18 = vmul.f32 %v2075_v44, %v6444_v17 }
 0x716   :  { %v2234_v60 = vsub.f32 1.5, %v2233_v59  ;;  %2478 = vadd.xlane.f32.xlu0 %v2477_v34 }
 0x717   :  { %v4845_v38 = vpop.eup %4844  ;;  %v2319_v53 = vadd.f32 %v6573_v40, %v2300_v15  ;;  %v2108_v62 = vadd.f32 1e-05, %v2092_v18 }
 0x718   :  { %v2235_v56 = vmul.f32 %v4843_v0, %v2234_v60  ;;  %v2241_v12 = vmul.f32 %v4845_v38, %v2107_v35  ;;  %vm2247_vm1 = vweird.f32 %v4845_v38 }
 0x719   :  { %v2335_v63 = vmax.f32 %v2319_v53, 0.0  ;;  %vm2248_vm11 = vmor %vm2246_vm10, %vm2247_vm1  ;;  %4846 = vrsqrt.f32 %v2108_v62  ;;  %vm2256_vm14 = vweird.f32 %v2108_v62 }
 0x71a   :  { %v2239_v25 = vsel %vm2238_vm9, %v4843_v0, %v2235_v56  ;;  %v2242_v20 = vmul.f32 %v4845_v38, %v2241_v12  ;;  %4848 = vrcp.f32 %v4980_v7 }
 0x71b   :  { %v2345_v1 = vpack.c.bf16 %v2335_v63, %v2334_v5  ;;  %v2282_v46 = vmul.f32 %v2239_v25, %v6608_v42 }
 0x71c   :  { %v2243_v9 = vmul.f32 0.5, %v2242_v20 }
 0x71d   :  { %2449 = vmatmul.bf16.gmra.mxu2 %v2345_v1  ;;  %v2301_v32 = vmul.f32 %v6562_v23, %v2282_v46 }
 0x71e   :  { %v2244_v51 = vsub.f32 1.5, %v2243_v9 }
 0x71f   :  { %v2320_v14 = vadd.f32 %v6573_v40, %v2301_v32  ;;  %v4847_v24 = vpop.eup %4846 }
 0x720   :  { %v2245_v41 = vmul.f32 %v4845_v38, %v2244_v51  ;;  %v2251_v28 = vmul.f32 %v4847_v24, %v2108_v62  ;;  %v4849_v11 = vpop.eup %4848  ;;  %vm2257_vm12 = vweird.f32 %v4847_v24 }
 0x721   :  { %v2336_v8 = vmax.f32 %v2320_v14, 0.0  ;;  %v2517_v0 = vmul.f32 64.0, %v4849_v11  ;;  %vm2258_vm15 = vmor %vm2256_vm14, %vm2257_vm12  ;;  %vm2521_vm4 = vweird.f32 %v4849_v11 }
 0x722   :  { %v2249_v49 = vsel %vm2248_vm11, %v4845_v38, %v2245_v41  ;;  %v2252_v55 = vmul.f32 %v4847_v24, %v2251_v28 }
 0x723   :  { %v2283_v43 = vmul.f32 %v2249_v49, %v6615_v30  ;;  %v2518_v13 = vsub.f32 1.0, %v2517_v0 }
 0x724   :  { %v2253_v47 = vmul.f32 0.5, %v2252_v55 }
 0x725   :  { %v2302_v3 = vmul.f32 %v6562_v23, %v2283_v43  ;;  %v2519_v37 = vmul.f32 %v4849_v11, %v2518_v13 }
 0x726   :  { %v2435_v50 = vpop.f32.mrf.mxu2  ;;  %v2254_v35 = vsub.f32 1.5, %v2253_v47 }
 0x727   :  { %v6693_v29 = vadd.f32 %v6653_v33, %v2435_v50  ;;  %v2321_v42 = vadd.f32 %v6573_v40, %v2302_v3 }
 0x728   :  { %v2255_v2 = vmul.f32 %v4847_v24, %v2254_v35 }
 0x729   :  { %v2480_v39 = vsel %vm2467_vm2, %v6693_v29, 0.0  ;;  %v2337_v54 = vmax.f32 %v2321_v42, 0.0 }
 0x72a   :  { %2481 = vadd.xlane.f32.xlu1 %v2480_v39  ;;  %v2259_v21 = vsel %vm2258_vm15, %v4847_v24, %v2255_v2 }
 0x72b   :  { %v2346_v48 = vpack.c.bf16 %v2337_v54, %v2336_v8  ;;  %v2284_v34 = vmul.f32 %v2259_v21, %v6625_v26 }
 0x72d   :  { %2454 = vmatmul.bf16.gmra.mxu2 %v2346_v48  ;;  %v2303_v38 = vmul.f32 %v6562_v23, %v2284_v34 }
 0x72e   :  { %v2437_v31 = vpop.f32.mrf.mxu2 }
 0x72f   :  { %v6699_v30 = vadd.f32 %v6653_v33, %v2437_v31  ;;  %v2322_v26 = vadd.f32 %v6573_v40, %v2303_v38 }
 0x731   :  { %v2483_v58 = vsel %vm2467_vm2, %v6699_v30, 0.0  ;;  %v2338_v51 = vmax.f32 %v2322_v26, 0.0 }
 0x732   :  { %2484 = vadd.xlane.f32.xlu2 %v2483_v58 }
 0x75a   :  { %v2077_v45 = vpop.xlane.xlu2 %2076 }
 0x75b   :  { %v2093_v6 = vmul.f32 %v2077_v45, %v6444_v17  ;;  %v2520_v17 = vadd.f32 %v4849_v11, %v2519_v37 }
 0x75d   :  { %v2109_v27 = vadd.f32 1e-05, %v2093_v6  ;;  %v6706_v60 = vsel %vm2521_vm4, %v4849_v11, %v2520_v17  ;;  %v4582_v6 = vld [vmem:[%s7551_s12 + $0x18] sm:$0xff] }
 0x75e   :  { %2953 = vmatpush.bf16.msrb.mxu3 %v4582_v6 }
 0x75f   :  { %4850 = vrsqrt.f32 %v2109_v27  ;;  %vm2266_vm5 = vweird.f32 %v2109_v27 }
 0x765   :  { %v4851_v4 = vpop.eup %4850 }
 0x766   :  { %v2261_v61 = vmul.f32 %v4851_v4, %v2109_v27  ;;  %vm2267_vm3 = vweird.f32 %v4851_v4 }
 0x767   :  { %vm2268_vm7 = vmor %vm2266_vm5, %vm2267_vm3 }
 0x768   :  { %v2262_v16 = vmul.f32 %v4851_v4, %v2261_v61 }
 0x76a   :  { %v2263_v59 = vmul.f32 0.5, %v2262_v16 }
 0x76c   :  { %v2264_v15 = vsub.f32 1.5, %v2263_v59 }
 0x76e   :  { %v2265_v52 = vmul.f32 %v4851_v4, %v2264_v15 }
 0x770   :  { %v2269_v53 = vsel %vm2268_vm7, %v4851_v4, %v2265_v52 }
 0x771   :  { %v2285_v56 = vmul.f32 %v2269_v53, %v6637_v10  ;;  %v2470_v12 = vpop.xlane.xlu0 %2469 }
 0x772   :  { %v2523_v5 = vmul.f32 %v6706_v60, %v2470_v12 }
 0x773   :  { %v2304_v63 = vmul.f32 %v6562_v23, %v2285_v56 }
 0x774   :  { %v6714_v25 = vsub.f32 %v6658_v22, %v2523_v5  ;;  %v2440_v20 = vpop.f32.mrf.mxu2 }
 0x775   :  { %v6717_v1 = vadd.f32 %v6653_v33, %v2440_v20  ;;  %v2323_v9 = vadd.f32 %v6573_v40, %v2304_v63 }
 0x776   :  { %v2555_v46 = vmul.f32 %v6714_v25, %v6714_v25 }
 0x777   :  { %v2486_v10 = vsel %vm2467_vm2, %v6717_v1, 0.0  ;;  %v2339_v41 = vmax.f32 %v2323_v9, 0.0  ;;  %v4581_v9 = vld [vmem:[%s7551_s12 + $0x10] sm:$0xff] }
 0x778   :  { %2487 = vadd.xlane.f32.xlu2 %v2486_v10  ;;  %v2571_v23 = vsel %vm2467_vm2, %v2555_v46, 0.0  ;;  %2954 = vmatpush.bf16.msrb.mxu3 %v4581_v9 }
 0x779   :  { %2572 = vadd.xlane.f32.xlu0 %v2571_v23  ;;  %v2473_v22 = vpop.xlane.xlu1 %2472  ;;  %v2347_v32 = vpack.c.bf16 %v2339_v41, %v2338_v51 }
 0x77a   :  { %v2524_v49 = vmul.f32 %v6706_v60, %v2473_v22 }
 0x77b   :  { %2459 = vmatmul.bf16.gmra.mxu2 %v2347_v32 }
 0x77c   :  { %v6727_v43 = vsub.f32 %v6665_v19, %v2524_v49  ;;  %v2442_v40 = vpop.f32.mrf.mxu2 }
 0x77d   :  { %v6730_v3 = vadd.f32 %v6653_v33, %v2442_v40 }
 0x77e   :  { %v2556_v14 = vmul.f32 %v6727_v43, %v6727_v43 }
 0x77f   :  { %v2489_v50 = vsel %vm2467_vm2, %v6730_v3, 0.0 }
 0x780   :  { %v2574_v42 = vsel %vm2467_vm2, %v2556_v14, 0.0  ;;  %v4580_v14 = vld [vmem:[%s7551_s12 + $0x8] sm:$0xff] }
 0x781   :  { %v2476_v39 = vpop.xlane.xlu2 %2475  ;;  %2490 = vadd.xlane.f32.xlu0 %v2489_v50  ;;  %2575 = vadd.xlane.f32.xlu1 %v2574_v42 }
 0x782   :  { %v2525_v8 = vmul.f32 %v6706_v60, %v2476_v39  ;;  %2955 = vmatpush.bf16.msrb.mxu3 %v4580_v14 }
 0x784   :  { %v6739_v19 = vsub.f32 %v6671_v36, %v2525_v8  ;;  %v2445_v54 = vpop.f32.mrf.mxu2 }
 0x785   :  { %v6742_v48 = vadd.f32 %v6653_v33, %v2445_v54 }
 0x786   :  { %v2557_v31 = vmul.f32 %v6739_v19, %v6739_v19 }
 0x787   :  { %v2492_v58 = vsel %vm2467_vm2, %v6742_v48, 0.0 }
 0x788   :  { %v2577_v44 = vsel %vm2467_vm2, %v2557_v31, 0.0 }
 0x789   :  { %2493 = vadd.xlane.f32.xlu0 %v2492_v58  ;;  %v2479_v18 = vpop.xlane.xlu0 %2478  ;;  %2578 = vadd.xlane.f32.xlu1 %v2577_v44  ;;  %v4579_v44 = vld [vmem:[%s7551_s12] sm:$0xff] }
 0x78a   :  { %v2526_v62 = vmul.f32 %v6706_v60, %v2479_v18  ;;  %2956 = vmatpush.bf16.msrb.mxu3 %v4579_v44 }
 0x78c   :  { %v6751_v36 = vsub.f32 %v6680_v57, %v2526_v62  ;;  %v2447_v24 = vpop.f32.mrf.mxu2 }
 0x78d   :  { %v6754_v28 = vadd.f32 %v6653_v33, %v2447_v24 }
 0x78e   :  { %v2558_v7 = vmul.f32 %v6751_v36, %v6751_v36 }
 0x78f   :  { %v2495_v55 = vsel %vm2467_vm2, %v6754_v28, 0.0 }
 0x790   :  { %v2580_v45 = vsel %vm2467_vm2, %v2558_v7, 0.0 }
 0x791   :  { %2581 = vadd.xlane.f32.xlu2 %v2580_v45  ;;  %2496 = vadd.xlane.f32.xlu1 %v2495_v55 }
 0x79d   :  { %v2482_v57 = vpop.xlane.xlu1 %2481 }
 0x79e   :  { %v2527_v11 = vmul.f32 %v6706_v60, %v2482_v57 }
 0x7a0   :  { %v6766_v47 = vsub.f32 %v6693_v29, %v2527_v11  ;;  %v2450_v27 = vpop.f32.mrf.mxu2 }
 0x7a1   :  { %v6769_v0 = vadd.f32 %v6653_v33, %v2450_v27 }
 0x7a2   :  { %v2559_v35 = vmul.f32 %v6766_v47, %v6766_v47 }
 0x7a3   :  { %v2498_v13 = vsel %vm2467_vm2, %v6769_v0, 0.0 }
 0x7a4   :  { %2499 = vadd.xlane.f32.xlu1 %v2498_v13  ;;  %v2583_v2 = vsel %vm2467_vm2, %v2559_v35, 0.0 }
 0x7a5   :  { %v2485_v4 = vpop.xlane.xlu2 %2484  ;;  %2584 = vadd.xlane.f32.xlu2 %v2583_v2 }
 0x7a6   :  { %v2528_v61 = vmul.f32 %v6706_v60, %v2485_v4 }
 0x7a8   :  { %v6778_v29 = vsub.f32 %v6699_v30, %v2528_v61  ;;  %v2452_v37 = vpop.f32.mrf.mxu2 }
 0x7a9   :  { %v6781_v21 = vadd.f32 %v6653_v33, %v2452_v37  ;;  %v6839_v37 = vld [vmem:[%s7549_s10] ss:$0 sm:$0xff] }
 0x7aa   :  { %v2560_v16 = vmul.f32 %v6778_v29, %v6778_v29 }
 0x7ab   :  { %v2501_v59 = vsel %vm2467_vm2, %v6781_v21, 0.0 }
 0x7ac   :  { %v2586_v34 = vsel %vm2467_vm2, %v2560_v16, 0.0 }
 0x7ad   :  { %2587 = vadd.xlane.f32.xlu0 %v2586_v34  ;;  %2502 = vadd.xlane.f32.xlu2 %v2501_v59 }
 0x7b0   :  { %v2455_v17 = vpop.f32.mrf.mxu2 }
 0x7b1   :  { %v6789_v15 = vadd.f32 %v6653_v33, %v2455_v17 }
 0x7b3   :  { %v2504_v30 = vsel %vm2467_vm2, %v6789_v15, 0.0 }
 0x7b5   :  { %2505 = vadd.xlane.f32.xlu2 %v2504_v30 }
 0x7b8   :  { %v2457_v20 = vpop.f32.mrf.mxu2 }
 0x7b9   :  { %v6807_v41 = vadd.f32 %v6653_v33, %v2457_v20 }
 0x7bb   :  { %v2507_v42 = vsel %vm2467_vm2, %v6807_v41, 0.0 }
 0x7eb   :  { %v2488_v52 = vpop.xlane.xlu2 %2487 }
 0x7ec   :  { %v2529_v38 = vmul.f32 %v6706_v60, %v2488_v52  ;;  %v2573_v53 = vpop.xlane.xlu0 %2572 }
 0x7ed   :  { %v2619_v56 = vmul.f32 %v2573_v53, %v6706_v60 }
 0x7ee   :  { %v6796_v12 = vsub.f32 %v6717_v1, %v2529_v38 }
 0x7ef   :  { %v2635_v5 = vadd.f32 1e-05, %v2619_v56 }
 0x7f0   :  { %v2561_v63 = vmul.f32 %v6796_v12, %v6796_v12 }
 0x7f1   :  { %4852 = vrsqrt.f32 %v2635_v5  ;;  %vm2657_vm0 = vweird.f32 %v2635_v5 }
 0x7f2   :  { %v2589_v26 = vsel %vm2467_vm2, %v2561_v63, 0.0 }
 0x7f3   :  { %2590 = vadd.xlane.f32.xlu0 %v2589_v26 }
 0x7f4   :  { %v2491_v46 = vpop.xlane.xlu0 %2490  ;;  %v2576_v10 = vpop.xlane.xlu1 %2575 }
 0x7f5   :  { %v2530_v51 = vmul.f32 %v6706_v60, %v2491_v46  ;;  %v2620_v1 = vmul.f32 %v2576_v10, %v6706_v60 }
 0x7f7   :  { %v4853_v23 = vpop.eup %4852  ;;  %v6810_v22 = vsub.f32 %v6730_v3, %v2530_v51  ;;  %v2636_v32 = vadd.f32 1e-05, %v2620_v1 }
 0x7f8   :  { %v2652_v49 = vmul.f32 %v4853_v23, %v2635_v5  ;;  %vm2658_vm13 = vweird.f32 %v4853_v23 }
 0x7f9   :  { %4854 = vrsqrt.f32 %v2636_v32  ;;  %v2562_v40 = vmul.f32 %v6810_v22, %v6810_v22  ;;  %vm2659_vm6 = vmor %vm2657_vm0, %vm2658_vm13  ;;  %vm2667_vm9 = vweird.f32 %v2636_v32 }
 0x7fa   :  { %v2653_v50 = vmul.f32 %v4853_v23, %v2652_v49 }
 0x7fb   :  { %2508 = vadd.xlane.f32.xlu0 %v2507_v42  ;;  %v2592_v39 = vsel %vm2467_vm2, %v2562_v40, 0.0 }
 0x7fc   :  { %v2654_v3 = vmul.f32 0.5, %v2653_v50  ;;  %v2494_v8 = vpop.xlane.xlu0 %2493  ;;  %2593 = vadd.xlane.f32.xlu1 %v2592_v39  ;;  %v2579_v54 = vpop.xlane.xlu1 %2578 }
 0x7fd   :  { %v2531_v31 = vmul.f32 %v6706_v60, %v2494_v8  ;;  %v2621_v58 = vmul.f32 %v2579_v54, %v6706_v60 }
 0x7fe   :  { %v2655_v18 = vsub.f32 1.5, %v2654_v3  ;;  %v2460_v62 = vpop.f32.mrf.mxu2 }
 0x7ff   :  { %v4855_v24 = vpop.eup %4854  ;;  %v6826_v7 = vsub.f32 %v6742_v48, %v2531_v31  ;;  %v2637_v55 = vadd.f32 1e-05, %v2621_v58  ;;  %v6829_v45 = vadd.f32 %v6653_v33, %v2460_v62 }
 0x800   :  { %v2656_v6 = vmul.f32 %v4853_v23, %v2655_v18  ;;  %v2662_v57 = vmul.f32 %v4855_v24, %v2636_v32  ;;  %vm2668_vm8 = vweird.f32 %v4855_v24 }
 0x801   :  { %4856 = vrsqrt.f32 %v2637_v55  ;;  %v2510_v11 = vsel %vm2467_vm2, %v6829_v45, 0.0  ;;  %v2563_v27 = vmul.f32 %v6826_v7, %v6826_v7  ;;  %vm2669_vm1 = vmor %vm2667_vm9, %vm2668_vm8  ;;  %vm2677_vm11 = vweird.f32 %v2637_v55 }
 0x802   :  { %v2660_v35 = vsel %vm2659_vm6, %v4853_v23, %v2656_v6  ;;  %v2663_v13 = vmul.f32 %v4855_v24, %v2662_v57 }
 0x803   :  { %2511 = vadd.xlane.f32.xlu0 %v2510_v11  ;;  %v2595_v48 = vsel %vm2467_vm2, %v2563_v27, 0.0  ;;  %v2811_v16 = vmul.f32 %v2660_v35, %v6714_v25  ;;  %v6853_v25 = vld [vmem:[%s7550_s11] ss:$0 sm:$0xff] }
 0x804   :  { %v2664_v2 = vmul.f32 0.5, %v2663_v13  ;;  %v2582_v4 = vpop.xlane.xlu2 %2581  ;;  %2596 = vadd.xlane.f32.xlu1 %v2595_v48  ;;  %v2497_v61 = vpop.xlane.xlu1 %2496 }
 0x805   :  { %v2622_v59 = vmul.f32 %v2582_v4, %v6706_v60  ;;  %v2532_v34 = vmul.f32 %v6706_v60, %v2497_v61  ;;  %v2830_v26 = vmul.f32 %v6839_v37, %v2811_v16 }
 0x806   :  { %v2665_v17 = vsub.f32 1.5, %v2664_v2  ;;  %v2462_v30 = vpop.f32.mrf.mxu2 }
 0x807   :  { %v4857_v52 = vpop.eup %4856  ;;  %v2638_v38 = vadd.f32 1e-05, %v2622_v59  ;;  %v6845_v53 = vsub.f32 %v6754_v28, %v2532_v34  ;;  %v6848_v56 = vadd.f32 %v6653_v33, %v2462_v30  ;;  %v2849_v1 = vadd.f32 %v6853_v25, %v2830_v26 }
 0x808   :  { %v2666_v5 = vmul.f32 %v4855_v24, %v2665_v17  ;;  %v2672_v63 = vmul.f32 %v4857_v52, %v2637_v55  ;;  %vm2678_vm10 = vweird.f32 %v4857_v52 }
 0x809   :  { %4858 = vrsqrt.f32 %v2638_v38  ;;  %v2564_v28 = vmul.f32 %v6845_v53, %v6845_v53  ;;  %v2513_v46 = vsel %vm2467_vm2, %v6848_v56, 0.0  ;;  %v2865_v50 = vmax.f32 %v2849_v1, 0.0  ;;  %vm2679_vm12 = vmor %vm2677_vm11, %vm2678_vm10 }
 0x80a   :  { %v2670_v20 = vsel %vm2669_vm1, %v4855_v24, %v2666_v5  ;;  %v2673_v9 = vmul.f32 %v4857_v52, %v2672_v63  ;;  %vm2687_vm15 = vweird.f32 %v2638_v38 }
 0x80b   :  { %v2812_v33 = vmul.f32 %v2670_v20, %v6727_v43  ;;  %v2598_v51 = vsel %vm2467_vm2, %v2564_v28, 0.0 }
 0x80c   :  { %v2674_v10 = vmul.f32 0.5, %v2673_v9  ;;  %2514 = vadd.xlane.f32.xlu1 %v2513_v46  ;;  %2599 = vadd.xlane.f32.xlu2 %v2598_v51 }
 0x80d   :  { %v2831_v23 = vmul.f32 %v6839_v37, %v2812_v33 }
 0x80e   :  { %v2675_v32 = vsub.f32 1.5, %v2674_v10 }
 0x80f   :  { %v4859_v49 = vpop.eup %4858  ;;  %v2850_v40 = vadd.f32 %v6853_v25, %v2831_v23 }
 0x810   :  { %v2676_v14 = vmul.f32 %v4857_v52, %v2675_v32  ;;  %v2682_v43 = vmul.f32 %v4859_v49, %v2638_v38  ;;  %vm2688_vm14 = vweird.f32 %v4859_v49 }
 0x811   :  { %v2866_v42 = vmax.f32 %v2850_v40, 0.0  ;;  %vm2689_vm3 = vmor %vm2687_vm15, %vm2688_vm14 }
 0x812   :  { %v2680_v39 = vsel %vm2679_vm12, %v4857_v52, %v2676_v14  ;;  %v2683_v3 = vmul.f32 %v4859_v49, %v2682_v43 }
 0x813   :  { %v2881_v8 = vpack.c.bf16 %v2866_v42, %v2865_v50  ;;  %v2813_v31 = vmul.f32 %v2680_v39, %v6739_v19 }
 0x814   :  { %v2684_v54 = vmul.f32 0.5, %v2683_v3 }
 0x815   :  { %4435 = vmatmul.msk.bf16.vlgmr.msrb.gmra.mxu3 %vm2467_vm2, %v2881_v8  ;;  %v2832_v55 = vmul.f32 %v6839_v37, %v2813_v31 }
 0x816   :  { %v2685_v58 = vsub.f32 1.5, %v2684_v54 }
 0x817   :  { %v2500_v44 = vpop.xlane.xlu1 %2499  ;;  %v2851_v48 = vadd.f32 %v6853_v25, %v2832_v55 }
 0x818   :  { %v2686_v18 = vmul.f32 %v4859_v49, %v2685_v58  ;;  %v2533_v62 = vmul.f32 %v6706_v60, %v2500_v44  ;;  %v2585_v24 = vpop.xlane.xlu2 %2584 }
 0x819   :  { %v2623_v6 = vmul.f32 %v2585_v24, %v6706_v60  ;;  %v2867_v59 = vmax.f32 %v2851_v48, 0.0 }
 0x81a   :  { %v2690_v57 = vsel %vm2689_vm3, %v4859_v49, %v2686_v18  ;;  %v6871_v11 = vsub.f32 %v6769_v0, %v2533_v62 }
 0x81b   :  { %v2814_v19 = vmul.f32 %v2690_v57, %v6751_v36  ;;  %v2639_v27 = vadd.f32 1e-05, %v2623_v6 }
 0x81c   :  { %v2565_v35 = vmul.f32 %v6871_v11, %v6871_v11 }
 0x81d   :  { %v2833_v13 = vmul.f32 %v6839_v37, %v2814_v19  ;;  %4860 = vrsqrt.f32 %v2639_v27  ;;  %vm2697_vm5 = vweird.f32 %v2639_v27 }
 0x81e   :  { %v2601_v2 = vsel %vm2467_vm2, %v2565_v35, 0.0 }
 0x81f   :  { %2602 = vadd.xlane.f32.xlu2 %v2601_v2  ;;  %v2852_v4 = vadd.f32 %v6853_v25, %v2833_v13 }
 0x820   :  { %v2588_v61 = vpop.xlane.xlu0 %2587  ;;  %v2503_v16 = vpop.xlane.xlu2 %2502 }
 0x821   :  { %v2624_v0 = vmul.f32 %v2588_v61, %v6706_v60  ;;  %v2534_v36 = vmul.f32 %v6706_v60, %v2503_v16  ;;  %v2868_v34 = vmax.f32 %v2852_v4, 0.0 }
 0x823   :  { %v4861_v17 = vpop.eup %4860  ;;  %v2640_v30 = vadd.f32 1e-05, %v2624_v0  ;;  %v6883_v52 = vsub.f32 %v6781_v21, %v2534_v36  ;;  %v2882_v38 = vpack.c.bf16 %v2868_v34, %v2867_v59 }
 0x824   :  { %v2692_v5 = vmul.f32 %v4861_v17, %v2639_v27  ;;  %vm2698_vm4 = vweird.f32 %v4861_v17 }
 0x825   :  { %4862 = vrsqrt.f32 %v2640_v30  ;;  %4436 = vmatmul.msk.bf16.gmra.mxu3 %vm2467_vm2, %v2882_v38  ;;  %v2566_v63 = vmul.f32 %v6883_v52, %v6883_v52  ;;  %vm2699_vm7 = vmor %vm2697_vm5, %vm2698_vm4  ;;  %vm2707_vm0 = vweird.f32 %v2640_v30 }
 0x826   :  { %v2693_v26 = vmul.f32 %v4861_v17, %v2692_v5 }
 0x827   :  { %v2604_v20 = vsel %vm2467_vm2, %v2566_v63, 0.0 }
 0x828   :  { %v2694_v9 = vmul.f32 0.5, %v2693_v26  ;;  %2605 = vadd.xlane.f32.xlu0 %v2604_v20  ;;  %v2506_v28 = vpop.xlane.xlu2 %2505 }
 0x829   :  { %v2535_v33 = vmul.f32 %v6706_v60, %v2506_v28 }
 0x82a   :  { %v2695_v46 = vsub.f32 1.5, %v2694_v9 }
 0x82b   :  { %v4863_v21 = vpop.eup %4862  ;;  %v6891_v10 = vsub.f32 %v6789_v15, %v2535_v33 }
 0x82c   :  { %v2696_v51 = vmul.f32 %v4861_v17, %v2695_v46  ;;  %v2702_v1 = vmul.f32 %v4863_v21, %v2640_v30  ;;  %vm2708_vm13 = vweird.f32 %v4863_v21 }
 0x82d   :  { %v2567_v23 = vmul.f32 %v6891_v10, %v6891_v10  ;;  %vm2709_vm6 = vmor %vm2707_vm0, %vm2708_vm13  ;;  %vm3000_vm13 = vcmask 261120  }
 0x82e   :  { %v2700_v32 = vsel %vm2699_vm7, %v4861_v17, %v2696_v51  ;;  %v2703_v49 = vmul.f32 %v4863_v21, %v2702_v1 }
 0x82f   :  { %v2607_v40 = vsel %vm2467_vm2, %v2567_v23, 0.0  ;;  %v2815_v43 = vmul.f32 %v2700_v32, %v6766_v47 }
 0x830   :  { %v2704_v14 = vmul.f32 0.5, %v2703_v49  ;;  %2608 = vadd.xlane.f32.xlu1 %v2607_v40 }
 0x831   :  { %v2834_v15 = vmul.f32 %v6839_v37, %v2815_v43 }
 0x832   :  { %v2705_v50 = vsub.f32 1.5, %v2704_v14 }
 0x833   :  { %v2853_v54 = vadd.f32 %v6853_v25, %v2834_v15 }
 0x834   :  { %v2706_v42 = vmul.f32 %v4863_v21, %v2705_v50 }
 0x835   :  { %v2869_v58 = vmax.f32 %v2853_v54, 0.0 }
 0x836   :  { %v2710_v39 = vsel %vm2709_vm6, %v4863_v21, %v2706_v42 }
 0x837   :  { %v2816_v3 = vmul.f32 %v2710_v39, %v6778_v29 }
 0x839   :  { %v2835_v8 = vmul.f32 %v6839_v37, %v2816_v3 }
 0x83b   :  { %v2854_v31 = vadd.f32 %v6853_v25, %v2835_v8 }
 0x83d   :  { %v2870_v44 = vmax.f32 %v2854_v31, 0.0 }
 0x83f   :  { %v2883_v18 = vpack.c.bf16 %v2870_v44, %v2869_v58 }
 0x841   :  { %4437 = vmatmul.msk.bf16.gmra.mxu3 %vm2467_vm2, %v2883_v18 }
 0x866   :  { %v2591_v47 = vpop.xlane.xlu0 %2590 }
 0x867   :  { %v2625_v62 = vmul.f32 %v2591_v47, %v6706_v60 }
 0x869   :  { %v2641_v24 = vadd.f32 1e-05, %v2625_v62 }
 0x86b   :  { %4864 = vrsqrt.f32 %v2641_v24  ;;  %vm2717_vm9 = vweird.f32 %v2641_v24 }
 0x86e   :  { %v2509_v55 = vpop.xlane.xlu0 %2508 }
 0x86f   :  { %v2536_v6 = vmul.f32 %v6706_v60, %v2509_v55  ;;  %v2594_v29 = vpop.xlane.xlu1 %2593 }
 0x870   :  { %v2626_v57 = vmul.f32 %v2594_v29, %v6706_v60 }
 0x871   :  { %v4865_v19 = vpop.eup %4864  ;;  %v6907_v27 = vsub.f32 %v6807_v41, %v2536_v6 }
 0x872   :  { %v2712_v35 = vmul.f32 %v4865_v19, %v2641_v24  ;;  %v2642_v13 = vadd.f32 1e-05, %v2626_v57  ;;  %vm2718_vm8 = vweird.f32 %v4865_v19 }
 0x873   :  { %v2568_v48 = vmul.f32 %v6907_v27, %v6907_v27  ;;  %vm2719_vm1 = vmor %vm2717_vm9, %vm2718_vm8 }
 0x874   :  { %v2713_v2 = vmul.f32 %v4865_v19, %v2712_v35  ;;  %4866 = vrsqrt.f32 %v2642_v13  ;;  %vm2727_vm11 = vweird.f32 %v2642_v13 }
 0x875   :  { %v2610_v4 = vsel %vm2467_vm2, %v2568_v48, 0.0 }
 0x876   :  { %v2714_v61 = vmul.f32 0.5, %v2713_v2  ;;  %v2512_v16 = vpop.xlane.xlu0 %2511  ;;  %2611 = vadd.xlane.f32.xlu2 %v2610_v4  ;;  %v6941_v4 = vld [vmem:[%s7552_s13] ss:$0 sm:$0xff] }
 0x877   :  { %v2537_v0 = vmul.f32 %v6706_v60, %v2512_v16  ;;  %v2597_v36 = vpop.xlane.xlu1 %2596 }
 0x878   :  { %v2715_v59 = vsub.f32 1.5, %v2714_v61  ;;  %v2627_v34 = vmul.f32 %v2597_v36, %v6706_v60 }
 0x879   :  { %v6915_v41 = vsub.f32 %v6829_v45, %v2537_v0 }
 0x87a   :  { %v4867_v17 = vpop.eup %4866  ;;  %v2716_v30 = vmul.f32 %v4865_v19, %v2715_v59  ;;  %v2643_v38 = vadd.f32 1e-05, %v2627_v34 }
 0x87b   :  { %v2722_v5 = vmul.f32 %v4867_v17, %v2642_v13  ;;  %v2569_v63 = vmul.f32 %v6915_v41, %v6915_v41  ;;  %vm2728_vm10 = vweird.f32 %v4867_v17 }
 0x87c   :  { %4868 = vrsqrt.f32 %v2643_v38  ;;  %v2720_v26 = vsel %vm2719_vm1, %v4865_v19, %v2716_v30  ;;  %vm2729_vm12 = vmor %vm2727_vm11, %vm2728_vm10  ;;  %vm2737_vm15 = vweird.f32 %v2643_v38 }
 0x87d   :  { %v2723_v20 = vmul.f32 %v4867_v17, %v2722_v5  ;;  %v2613_v9 = vsel %vm2467_vm2, %v2569_v63, 0.0  ;;  %v2817_v45 = vmul.f32 %v2720_v26, %v6796_v12 }
 0x87e   :  { %2614 = vadd.xlane.f32.xlu0 %v2613_v9 }
 0x87f   :  { %v2724_v28 = vmul.f32 0.5, %v2723_v20  ;;  %v2515_v33 = vpop.xlane.xlu1 %2514  ;;  %v2600_v46 = vpop.xlane.xlu2 %2599  ;;  %v2836_v43 = vmul.f32 %v6839_v37, %v2817_v45 }
 0x880   :  { %v2538_v21 = vmul.f32 %v6706_v60, %v2515_v33  ;;  %v2628_v1 = vmul.f32 %v2600_v46, %v6706_v60 }
 0x881   :  { %v2725_v51 = vsub.f32 1.5, %v2724_v28  ;;  %v2855_v8 = vadd.f32 %v6853_v25, %v2836_v43 }
 0x882   :  { %v4869_v23 = vpop.eup %4868  ;;  %v6924_v32 = vsub.f32 %v6848_v56, %v2538_v21  ;;  %v2644_v14 = vadd.f32 1e-05, %v2628_v1 }
 0x883   :  { %v2726_v49 = vmul.f32 %v4867_v17, %v2725_v51  ;;  %v2732_v40 = vmul.f32 %v4869_v23, %v2643_v38  ;;  %vm2738_vm14 = vweird.f32 %v4869_v23  ;;  %v2871_v47 = vmax.f32 %v2855_v8, 0.0 }
 0x884   :  { %v2570_v12 = vmul.f32 %v6924_v32, %v6924_v32  ;;  %4870 = vrsqrt.f32 %v2644_v14  ;;  %vm2739_vm3 = vmor %vm2737_vm15, %vm2738_vm14  ;;  %vm2747_vm5 = vweird.f32 %v2644_v14 }
 0x885   :  { %v2730_v50 = vsel %vm2729_vm12, %v4867_v17, %v2726_v49  ;;  %v2733_v42 = vmul.f32 %v4869_v23, %v2732_v40 }
 0x886   :  { %v2818_v15 = vmul.f32 %v2730_v50, %v6810_v22  ;;  %v2616_v39 = vsel %vm2467_vm2, %v2570_v12, 0.0 }
 0x887   :  { %v2734_v3 = vmul.f32 0.5, %v2733_v42  ;;  %2617 = vadd.xlane.f32.xlu1 %v2616_v39 }
 0x888   :  { %v2837_v56 = vmul.f32 %v6839_v37, %v2818_v15 }
 0x889   :  { %v2735_v54 = vsub.f32 1.5, %v2734_v3 }
 0x88a   :  { %v2856_v31 = vadd.f32 %v6853_v25, %v2837_v56  ;;  %v4871_v58 = vpop.eup %4870 }
 0x88b   :  { %v2736_v44 = vmul.f32 %v4869_v23, %v2735_v54  ;;  %v2742_v18 = vmul.f32 %v4871_v58, %v2644_v14  ;;  %vm2748_vm4 = vweird.f32 %v4871_v58 }
 0x88c   :  { %v2872_v62 = vmax.f32 %v2856_v31, 0.0  ;;  %vm2749_vm7 = vmor %vm2747_vm5, %vm2748_vm4 }
 0x88d   :  { %v2740_v22 = vsel %vm2739_vm3, %v4869_v23, %v2736_v44  ;;  %v2743_v24 = vmul.f32 %v4871_v58, %v2742_v18 }
 0x88e   :  { %v2884_v55 = vpack.c.bf16 %v2872_v62, %v2871_v47  ;;  %v2819_v29 = vmul.f32 %v2740_v22, %v6826_v7 }
 0x88f   :  { %v2744_v6 = vmul.f32 0.5, %v2743_v24 }
 0x890   :  { %4438 = vmatmul.msk.bf16.gmra.mxu3 %vm2467_vm2, %v2884_v55  ;;  %v2838_v48 = vmul.f32 %v6839_v37, %v2819_v29 }
 0x891   :  { %v2745_v57 = vsub.f32 1.5, %v2744_v6 }
 0x892   :  { %v2603_v19 = vpop.xlane.xlu2 %2602  ;;  %v2857_v59 = vadd.f32 %v6853_v25, %v2838_v48 }
 0x893   :  { %v2629_v35 = vmul.f32 %v2603_v19, %v6706_v60  ;;  %v2746_v13 = vmul.f32 %v4871_v58, %v2745_v57 }
 0x894   :  { %v2873_v5 = vmax.f32 %v2857_v59, 0.0 }
 0x895   :  { %v2645_v2 = vadd.f32 1e-05, %v2629_v35  ;;  %v2750_v61 = vsel %vm2749_vm7, %v4871_v58, %v2746_v13 }
 0x896   :  { %v2820_v16 = vmul.f32 %v2750_v61, %v6845_v53 }
 0x897   :  { %4872 = vrsqrt.f32 %v2645_v2  ;;  %vm2757_vm6 = vweird.f32 %v2645_v2 }
 0x898   :  { %v2958_v7 = vpop.f32.mrf.mxu3  ;;  %v2839_v0 = vmul.f32 %v6839_v37, %v2820_v16 }
 0x899   :  { %v6946_v36 = vadd.f32 %v6941_v4, %v2958_v7 }
 0x89a   :  { %v2858_v30 = vadd.f32 %v6853_v25, %v2839_v0 }
 0x89b   :  { %v2606_v34 = vpop.xlane.xlu0 %2605  ;;  %v3001_v17 = vsel %vm3000_vm13, %v6946_v36, 0.0 }
 0x89c   :  { %v2630_v38 = vmul.f32 %v2606_v34, %v6706_v60  ;;  %3002 = vadd.xlane.f32.xlu2 %v3001_v17  ;;  %v2874_v63 = vmax.f32 %v2858_v30, 0.0 }
 0x89d   :  { %v4873_v53 = vpop.eup %4872 }
 0x89e   :  { %v2752_v26 = vmul.f32 %v4873_v53, %v2645_v2  ;;  %v2646_v20 = vadd.f32 1e-05, %v2630_v38  ;;  %v2885_v9 = vpack.c.bf16 %v2874_v63, %v2873_v5  ;;  %vm2758_vm0 = vweird.f32 %v4873_v53 }
 0x89f   :  { %vm2759_vm8 = vmor %vm2757_vm6, %vm2758_vm0 }
 0x8a0   :  { %v2753_v28 = vmul.f32 %v4873_v53, %v2752_v26  ;;  %4874 = vrsqrt.f32 %v2646_v20  ;;  %v2960_v33 = vpop.f32.mrf.mxu3  ;;  %4439 = vmatmul.msk.bf16.gmra.mxu3 %vm2467_vm2, %v2885_v9  ;;  %vm2767_vm1 = vweird.f32 %v2646_v20  ;;  %v4981_v26 = vmov 32.0  }
 0x8a1   :  { %v6954_v45 = vadd.f32 %v6941_v4, %v2960_v33 }
 0x8a2   :  { %v2754_v46 = vmul.f32 0.5, %v2753_v28 }
 0x8a3   :  { %v3004_v21 = vsel %vm3000_vm13, %v6954_v45, 0.0  ;;  %v2609_v19 = vpop.xlane.xlu1 %2608 }
 0x8a4   :  { %v2755_v51 = vsub.f32 1.5, %v2754_v46  ;;  %3005 = vadd.xlane.f32.xlu0 %v3004_v21  ;;  %v2631_v13 = vmul.f32 %v2609_v19, %v6706_v60 }
 0x8a6   :  { %v4875_v1 = vpop.eup %4874  ;;  %v2756_v23 = vmul.f32 %v4873_v53, %v2755_v51  ;;  %v2647_v48 = vadd.f32 1e-05, %v2631_v13 }
 0x8a7   :  { %v2762_v49 = vmul.f32 %v4875_v1, %v2646_v20  ;;  %vm2768_vm9 = vweird.f32 %v4875_v1 }
 0x8a8   :  { %v2963_v40 = vpop.f32.mrf.mxu3  ;;  %v2760_v14 = vsel %vm2759_vm8, %v4873_v53, %v2756_v23  ;;  %vm2769_vm10 = vmor %vm2767_vm1, %vm2768_vm9  ;;  %4876 = vrsqrt.f32 %v2647_v48  ;;  %vm2777_vm12 = vweird.f32 %v2647_v48 }
 0x8a9   :  { %v2763_v43 = vmul.f32 %v4875_v1, %v2762_v49  ;;  %v6960_v12 = vadd.f32 %v6941_v4, %v2963_v40  ;;  %v2821_v15 = vmul.f32 %v2760_v14, %v6871_v11 }
 0x8ab   :  { %v2764_v50 = vmul.f32 0.5, %v2763_v43  ;;  %v3007_v42 = vsel %vm3000_vm13, %v6960_v12, 0.0  ;;  %v2840_v56 = vmul.f32 %v6839_v37, %v2821_v15 }
 0x8ac   :  { %3008 = vadd.xlane.f32.xlu1 %v3007_v42 }
 0x8ad   :  { %v2765_v39 = vsub.f32 1.5, %v2764_v50  ;;  %v2859_v18 = vadd.f32 %v6853_v25, %v2840_v56 }
 0x8ae   :  { %v4877_v2 = vpop.eup %4876 }
 0x8af   :  { %v2766_v3 = vmul.f32 %v4875_v1, %v2765_v39  ;;  %v2875_v62 = vmax.f32 %v2859_v18, 0.0  ;;  %v2772_v61 = vmul.f32 %v4877_v2, %v2647_v48  ;;  %vm2778_vm11 = vweird.f32 %v4877_v2 }
 0x8b0   :  { %v2965_v8 = vpop.f32.mrf.mxu3  ;;  %vm2779_vm14 = vmor %vm2777_vm12, %vm2778_vm11 }
 0x8b1   :  { %v2770_v54 = vsel %vm2769_vm10, %v4875_v1, %v2766_v3  ;;  %v6967_v31 = vadd.f32 %v6941_v4, %v2965_v8  ;;  %v2773_v16 = vmul.f32 %v4877_v2, %v2772_v61 }
 0x8b2   :  { %v2822_v58 = vmul.f32 %v2770_v54, %v6883_v52 }
 0x8b3   :  { %v3010_v44 = vsel %vm3000_vm13, %v6967_v31, 0.0  ;;  %v2774_v59 = vmul.f32 0.5, %v2773_v16 }
 0x8b4   :  { %v2841_v11 = vmul.f32 %v6839_v37, %v2822_v58  ;;  %3011 = vadd.xlane.f32.xlu2 %v3010_v44 }
 0x8b5   :  { %v2775_v17 = vsub.f32 1.5, %v2774_v59 }
 0x8b6   :  { %v2860_v47 = vadd.f32 %v6853_v25, %v2841_v11 }
 0x8b7   :  { %v2776_v53 = vmul.f32 %v4877_v2, %v2775_v17 }
 0x8b8   :  { %v2876_v22 = vmax.f32 %v2860_v47, 0.0 }
 0x8b9   :  { %v2780_v9 = vsel %vm2779_vm14, %v4877_v2, %v2776_v53 }
 0x8ba   :  { %v2886_v24 = vpack.c.bf16 %v2876_v22, %v2875_v62  ;;  %v2823_v21 = vmul.f32 %v2780_v9, %v6891_v10 }
 0x8bc   :  { %4440 = vmatmul.msk.bf16.gmra.mxu3 %vm2467_vm2, %v2886_v24  ;;  %v2842_v42 = vmul.f32 %v6839_v37, %v2823_v21 }
 0x8c4   :  { %v2968_v55 = vpop.f32.mrf.mxu3 }
 0x8c5   :  { %v6977_v6 = vadd.f32 %v6941_v4, %v2968_v55 }
 0x8c7   :  { %v3013_v52 = vsel %vm3000_vm13, %v6977_v6, 0.0 }
 0x8c8   :  { %3014 = vadd.xlane.f32.xlu0 %v3013_v52 }
 0x8cc   :  { %v2970_v29 = vpop.f32.mrf.mxu3 }
 0x8cd   :  { %v6982_v57 = vadd.f32 %v6941_v4, %v2970_v29 }
 0x8cf   :  { %v3016_v35 = vsel %vm3000_vm13, %v6982_v57, 0.0 }
 0x8d0   :  { %3017 = vadd.xlane.f32.xlu1 %v3016_v35 }
 0x8e9   :  { %v2612_v7 = vpop.xlane.xlu2 %2611 }
 0x8ea   :  { %v2632_v0 = vmul.f32 %v2612_v7, %v6706_v60 }
 0x8ec   :  { %v2648_v34 = vadd.f32 1e-05, %v2632_v0 }
 0x8ee   :  { %4878 = vrsqrt.f32 %v2648_v34  ;;  %vm2787_vm3 = vweird.f32 %v2648_v34 }
 0x8ef   :  { %4880 = vrcp.f32 %v4981_v26 }
 0x8f1   :  { %v2615_v30 = vpop.xlane.xlu0 %2614 }
 0x8f2   :  { %v2633_v38 = vmul.f32 %v2615_v30, %v6706_v60 }
 0x8f4   :  { %v4879_v5 = vpop.eup %4878  ;;  %v2649_v63 = vadd.f32 1e-05, %v2633_v38 }
 0x8f5   :  { %v2782_v20 = vmul.f32 %v4879_v5, %v2648_v34  ;;  %v4881_v46 = vpop.eup %4880  ;;  %vm2788_vm15 = vweird.f32 %v4879_v5 }
 0x8f6   :  { %4882 = vrsqrt.f32 %v2649_v63  ;;  %v3050_v50 = vmul.f32 32.0, %v4881_v46  ;;  %vm2789_vm4 = vmor %vm2787_vm3, %vm2788_vm15  ;;  %vm2797_vm7 = vweird.f32 %v2649_v63  ;;  %vm3054_vm6 = vweird.f32 %v4881_v46 }
 0x8f7   :  { %v2783_v28 = vmul.f32 %v4879_v5, %v2782_v20 }
 0x8f8   :  { %v3051_v56 = vsub.f32 1.0, %v3050_v50 }
 0x8f9   :  { %v2784_v33 = vmul.f32 0.5, %v2783_v28 }
 0x8fa   :  { %v2618_v51 = vpop.xlane.xlu1 %2617  ;;  %v3052_v18 = vmul.f32 %v4881_v46, %v3051_v56 }
 0x8fb   :  { %v2785_v1 = vsub.f32 1.5, %v2784_v33  ;;  %v2634_v23 = vmul.f32 %v2618_v51, %v6706_v60  ;;  %v2861_v60 = vadd.f32 %v6853_v25, %v2842_v42 }
 0x8fc   :  { %v4883_v49 = vpop.eup %4882  ;;  %v3053_v52 = vadd.f32 %v4881_v46, %v3052_v18 }
 0x8fd   :  { %v2786_v40 = vmul.f32 %v4879_v5, %v2785_v1  ;;  %v2792_v14 = vmul.f32 %v4883_v49, %v2649_v63  ;;  %v2650_v43 = vadd.f32 1e-05, %v2634_v23  ;;  %vm2798_vm5 = vweird.f32 %v4883_v49 }
 0x8fe   :  { %v2877_v62 = vmax.f32 %v2861_v60, 0.0  ;;  %vm2799_vm0 = vmor %vm2797_vm7, %vm2798_vm5  ;;  %v6998_v13 = vsel %vm3054_vm6, %v4881_v46, %v3053_v52 }
 0x8ff   :  { %v2790_v15 = vsel %vm2789_vm4, %v4879_v5, %v2786_v40  ;;  %v2793_v39 = vmul.f32 %v4883_v49, %v2792_v14  ;;  %4884 = vrsqrt.f32 %v2650_v43  ;;  %vm2807_vm9 = vweird.f32 %v2650_v43 }
 0x900   :  { %v2824_v3 = vmul.f32 %v2790_v15, %v6907_v27 }
 0x901   :  { %v2794_v10 = vmul.f32 0.5, %v2793_v39 }
 0x902   :  { %v2843_v8 = vmul.f32 %v6839_v37, %v2824_v3 }
 0x903   :  { %v2795_v54 = vsub.f32 1.5, %v2794_v10 }
 0x904   :  { %v2862_v58 = vadd.f32 %v6853_v25, %v2843_v8 }
 0x905   :  { %v4885_v44 = vpop.eup %4884  ;;  %v2796_v11 = vmul.f32 %v4883_v49, %v2795_v54 }
 0x906   :  { %v2802_v47 = vmul.f32 %v4885_v44, %v2650_v43  ;;  %v2878_v22 = vmax.f32 %v2862_v58, 0.0  ;;  %vm2808_vm8 = vweird.f32 %v4885_v44 }
 0x907   :  { %v2800_v24 = vsel %vm2799_vm0, %v4883_v49, %v2796_v11  ;;  %vm2809_vm1 = vmor %vm2807_vm9, %vm2808_vm8 }
 0x908   :  { %v2803_v27 = vmul.f32 %v4885_v44, %v2802_v47  ;;  %v2887_v55 = vpack.c.bf16 %v2878_v22, %v2877_v62  ;;  %v2825_v19 = vmul.f32 %v2800_v24, %v6915_v41 }
 0x90a   :  { %v2804_v29 = vmul.f32 0.5, %v2803_v27  ;;  %4441 = vmatmul.msk.bf16.gmra.mxu3 %vm2467_vm2, %v2887_v55  ;;  %v2844_v2 = vmul.f32 %v6839_v37, %v2825_v19 }
 0x90c   :  { %v2805_v35 = vsub.f32 1.5, %v2804_v29  ;;  %v2863_v17 = vadd.f32 %v6853_v25, %v2844_v2 }
 0x90e   :  { %v2806_v48 = vmul.f32 %v4885_v44, %v2805_v35 }
 0x90f   :  { %v3003_v61 = vpop.xlane.xlu2 %3002 }
 0x910   :  { %v2810_v16 = vsel %vm2809_vm1, %v4885_v44, %v2806_v48  ;;  %v3056_v7 = vmul.f32 %v6998_v13, %v3003_v61 }
 0x911   :  { %v2826_v0 = vmul.f32 %v2810_v16, %v6924_v32 }
 0x912   :  { %v7004_v59 = vsub.f32 %v6946_v36, %v3056_v7 }
 0x913   :  { %v2845_v41 = vmul.f32 %v6839_v37, %v2826_v0  ;;  %v2973_v34 = vpop.f32.mrf.mxu3  ;;  %v2879_v37 = vmax.f32 %v2863_v17, 0.0 }
 0x914   :  { %v7009_v30 = vadd.f32 %v6941_v4, %v2973_v34  ;;  %v3088_v38 = vmul.f32 %v7004_v59, %v7004_v59 }
 0x915   :  { %v2864_v53 = vadd.f32 %v6853_v25, %v2845_v41 }
 0x916   :  { %v3104_v5 = vsel %vm3000_vm13, %v3088_v38, 0.0  ;;  %v3019_v32 = vsel %vm3000_vm13, %v7009_v30, 0.0 }
 0x917   :  { %v3006_v36 = vpop.xlane.xlu0 %3005  ;;  %3105 = vadd.xlane.f32.xlu2 %v3104_v5  ;;  %3020 = vadd.xlane.f32.xlu1 %v3019_v32  ;;  %v2880_v63 = vmax.f32 %v2864_v53, 0.0 }
 0x918   :  { %v3057_v26 = vmul.f32 %v6998_v13, %v3006_v36 }
 0x919   :  { %v2888_v20 = vpack.c.bf16 %v2880_v63, %v2879_v37 }
 0x91a   :  { %v7019_v9 = vsub.f32 %v6954_v45, %v3057_v26 }
 0x91b   :  { %v2975_v28 = vpop.f32.mrf.mxu3  ;;  %4442 = vmatmul.msk.bf16.gmra.mxu3 %vm2467_vm2, %v2888_v20  ;;  %v4584_v20 = vld [vmem:[%s7555_s16 + $0x8] sm:$0xff] }
 0x91c   :  { %v7023_v25 = vadd.f32 %v6941_v4, %v2975_v28  ;;  %v3089_v33 = vmul.f32 %v7019_v9, %v7019_v9  ;;  %3472 = vmatpush.bf16.msrb.mxu0 %v4584_v20 }
 0x91e   :  { %v3107_v46 = vsel %vm3000_vm13, %v3089_v33, 0.0  ;;  %v3022_v21 = vsel %vm3000_vm13, %v7023_v25, 0.0 }
 0x91f   :  { %3108 = vadd.xlane.f32.xlu0 %v3107_v46  ;;  %3023 = vadd.xlane.f32.xlu2 %v3022_v21  ;;  %v3009_v51 = vpop.xlane.xlu1 %3008 }
 0x920   :  { %v3058_v45 = vmul.f32 %v6998_v13, %v3009_v51 }
 0x922   :  { %v7032_v1 = vsub.f32 %v6960_v12, %v3058_v45 }
 0x923   :  { %v2978_v23 = vpop.f32.mrf.mxu3 }
 0x924   :  { %v3090_v49 = vmul.f32 %v7032_v1, %v7032_v1  ;;  %v7037_v40 = vadd.f32 %v6941_v4, %v2978_v23  ;;  %v4583_v23 = vld [vmem:[%s7555_s16] sm:$0xff] }
 0x925   :  { %3473 = vmatpush.bf16.msrb.mxu0 %v4583_v23 }
 0x926   :  { %v3110_v14 = vsel %vm3000_vm13, %v3090_v49, 0.0  ;;  %v3025_v50 = vsel %vm3000_vm13, %v7037_v40, 0.0 }
 0x927   :  { %v3012_v43 = vpop.xlane.xlu2 %3011  ;;  %3111 = vadd.xlane.f32.xlu0 %v3110_v14  ;;  %3026 = vadd.xlane.f32.xlu2 %v3025_v50 }
 0x928   :  { %v3059_v42 = vmul.f32 %v6998_v13, %v3012_v43 }
 0x92a   :  { %v7044_v12 = vsub.f32 %v6967_v31, %v3059_v42 }
 0x92b   :  { %v2980_v15 = vpop.f32.mrf.mxu3 }
 0x92c   :  { %v3091_v39 = vmul.f32 %v7044_v12, %v7044_v12  ;;  %v7049_v3 = vadd.f32 %v6941_v4, %v2980_v15 }
 0x92e   :  { %v3113_v10 = vsel %vm3000_vm13, %v3091_v39, 0.0  ;;  %v3028_v56 = vsel %vm3000_vm13, %v7049_v3, 0.0 }
 0x92f   :  { %3114 = vadd.xlane.f32.xlu1 %v3113_v10  ;;  %3029 = vadd.xlane.f32.xlu0 %v3028_v56 }
 0x93b   :  { %v3015_v8 = vpop.xlane.xlu0 %3014 }
 0x93c   :  { %v3060_v60 = vmul.f32 %v6998_v13, %v3015_v8 }
 0x93e   :  { %v7056_v31 = vsub.f32 %v6977_v6, %v3060_v60 }
 0x93f   :  { %v2983_v54 = vpop.f32.mrf.mxu3 }
 0x940   :  { %v7059_v58 = vadd.f32 %v6941_v4, %v2983_v54  ;;  %v3092_v44 = vmul.f32 %v7056_v31, %v7056_v31 }
 0x942   :  { %v3116_v11 = vsel %vm3000_vm13, %v3092_v44, 0.0  ;;  %v3031_v18 = vsel %vm3000_vm13, %v7059_v58, 0.0 }
 0x943   :  { %3117 = vadd.xlane.f32.xlu1 %v3116_v11  ;;  %3032 = vadd.xlane.f32.xlu0 %v3031_v18  ;;  %v3018_v47 = vpop.xlane.xlu1 %3017 }
 0x944   :  { %v3061_v62 = vmul.f32 %v6998_v13, %v3018_v47  ;;  %v7126_v47 = vld [vmem:[%s7553_s14] ss:$0 sm:$0xff] }
 0x946   :  { %v7068_v6 = vsub.f32 %v6982_v57, %v3061_v62 }
 0x947   :  { %v2985_v22 = vpop.f32.mrf.mxu3 }
 0x948   :  { %v7071_v24 = vadd.f32 %v6941_v4, %v2985_v22  ;;  %v3093_v27 = vmul.f32 %v7068_v6, %v7068_v6 }
 0x94a   :  { %v3034_v55 = vsel %vm3000_vm13, %v7071_v24, 0.0  ;;  %v3119_v52 = vsel %vm3000_vm13, %v3093_v27, 0.0 }
 0x94b   :  { %3035 = vadd.xlane.f32.xlu1 %v3034_v55  ;;  %3120 = vadd.xlane.f32.xlu2 %v3119_v52 }
 0x98a   :  { %v3106_v29 = vpop.xlane.xlu2 %3105  ;;  %v3021_v19 = vpop.xlane.xlu1 %3020 }
 0x98b   :  { %v3152_v35 = vmul.f32 %v3106_v29, %v6998_v13  ;;  %v3062_v57 = vmul.f32 %v6998_v13, %v3021_v19 }
 0x98d   :  { %v3168_v48 = vadd.f32 1e-05, %v3152_v35  ;;  %v7081_v2 = vsub.f32 %v7009_v30, %v3062_v57  ;;  %v2988_v61 = vpop.f32.mrf.mxu3 }
 0x98e   :  { %v7084_v16 = vadd.f32 %v6941_v4, %v2988_v61 }
 0x98f   :  { %4886 = vrsqrt.f32 %v3168_v48  ;;  %v3094_v7 = vmul.f32 %v7081_v2, %v7081_v2  ;;  %vm3190_vm10 = vweird.f32 %v3168_v48 }
 0x990   :  { %v3037_v0 = vsel %vm3000_vm13, %v7084_v16, 0.0 }
 0x991   :  { %3038 = vadd.xlane.f32.xlu1 %v3037_v0  ;;  %v3122_v41 = vsel %vm3000_vm13, %v3094_v7, 0.0 }
 0x992   :  { %v3109_v34 = vpop.xlane.xlu0 %3108  ;;  %v3024_v17 = vpop.xlane.xlu2 %3023  ;;  %3123 = vadd.xlane.f32.xlu2 %v3122_v41 }
 0x993   :  { %v3153_v30 = vmul.f32 %v3109_v34, %v6998_v13  ;;  %v3063_v38 = vmul.f32 %v6998_v13, %v3024_v17 }
 0x995   :  { %v4887_v53 = vpop.eup %4886  ;;  %v3169_v5 = vadd.f32 1e-05, %v3153_v30  ;;  %v7094_v32 = vsub.f32 %v7023_v25, %v3063_v38  ;;  %v2990_v36 = vpop.f32.mrf.mxu3 }
 0x996   :  { %v3185_v37 = vmul.f32 %v4887_v53, %v3168_v48  ;;  %v7097_v63 = vadd.f32 %v6941_v4, %v2990_v36  ;;  %vm3191_vm2 = vweird.f32 %v4887_v53 }
 0x997   :  { %4888 = vrsqrt.f32 %v3169_v5  ;;  %v3095_v26 = vmul.f32 %v7094_v32, %v7094_v32  ;;  %vm3192_vm11 = vmor %vm3190_vm10, %vm3191_vm2  ;;  %vm3200_vm14 = vweird.f32 %v3169_v5 }
 0x998   :  { %v3186_v28 = vmul.f32 %v4887_v53, %v3185_v37  ;;  %v3040_v33 = vsel %vm3000_vm13, %v7097_v63, 0.0 }
 0x999   :  { %v3125_v25 = vsel %vm3000_vm13, %v3095_v26, 0.0 }
 0x99a   :  { %v3187_v46 = vmul.f32 0.5, %v3186_v28  ;;  %3126 = vadd.xlane.f32.xlu0 %v3125_v25  ;;  %v3112_v21 = vpop.xlane.xlu0 %3111  ;;  %3041 = vadd.xlane.f32.xlu2 %v3040_v33  ;;  %v3027_v51 = vpop.xlane.xlu2 %3026 }
 0x99b   :  { %v3154_v45 = vmul.f32 %v3112_v21, %v6998_v13  ;;  %v3064_v14 = vmul.f32 %v6998_v13, %v3027_v51 }
 0x99c   :  { %v3188_v49 = vsub.f32 1.5, %v3187_v46 }
 0x99d   :  { %v4889_v43 = vpop.eup %4888  ;;  %v3170_v50 = vadd.f32 1e-05, %v3154_v45  ;;  %v7113_v39 = vsub.f32 %v7037_v40, %v3064_v14 }
 0x99e   :  { %v3189_v42 = vmul.f32 %v4887_v53, %v3188_v49  ;;  %v3195_v15 = vmul.f32 %v4889_v43, %v3169_v5  ;;  %v2993_v10 = vpop.f32.mrf.mxu3  ;;  %vm3201_vm12 = vweird.f32 %v4889_v43 }
 0x99f   :  { %4890 = vrsqrt.f32 %v3170_v50  ;;  %v7116_v56 = vadd.f32 %v6941_v4, %v2993_v10  ;;  %v3096_v54 = vmul.f32 %v7113_v39, %v7113_v39  ;;  %vm3202_vm15 = vmor %vm3200_vm14, %vm3201_vm12  ;;  %vm3210_vm4 = vweird.f32 %v3170_v50 }
 0x9a0   :  { %v3193_v8 = vsel %vm3192_vm11, %v4887_v53, %v3189_v42  ;;  %v3196_v60 = vmul.f32 %v4889_v43, %v3195_v15 }
 0x9a1   :  { %v3043_v44 = vsel %vm3000_vm13, %v7116_v56, 0.0  ;;  %v3128_v18 = vsel %vm3000_vm13, %v3096_v54, 0.0  ;;  %v3344_v62 = vmul.f32 %v3193_v8, %v7004_v59  ;;  %v7137_v59 = vld [vmem:[%s7554_s15] ss:$0 sm:$0xff] }
 0x9a2   :  { %v3197_v11 = vmul.f32 0.5, %v3196_v60  ;;  %3044 = vadd.xlane.f32.xlu2 %v3043_v44  ;;  %v3115_v40 = vpop.xlane.xlu1 %3114  ;;  %3129 = vadd.xlane.f32.xlu0 %v3128_v18  ;;  %v3030_v22 = vpop.xlane.xlu0 %3029 }
 0x9a3   :  { %v3155_v27 = vmul.f32 %v3115_v40, %v6998_v13  ;;  %v3065_v52 = vmul.f32 %v6998_v13, %v3030_v22  ;;  %v3363_v7 = vmul.f32 %v7126_v47, %v3344_v62 }
 0x9a4   :  { %v3198_v55 = vsub.f32 1.5, %v3197_v11 }
 0x9a5   :  { %v4891_v29 = vpop.eup %4890  ;;  %v3171_v19 = vadd.f32 1e-05, %v3155_v27  ;;  %v7132_v48 = vsub.f32 %v7049_v3, %v3065_v52  ;;  %v3382_v5 = vadd.f32 %v7137_v59, %v3363_v7 }
 0x9a6   :  { %v3199_v35 = vmul.f32 %v4889_v43, %v3198_v55  ;;  %v3205_v57 = vmul.f32 %v4891_v29, %v3170_v50  ;;  %v2995_v61 = vpop.f32.mrf.mxu3  ;;  %vm3211_vm3 = vweird.f32 %v4891_v29 }
 0x9a7   :  { %4892 = vrsqrt.f32 %v3171_v19  ;;  %v7141_v0 = vadd.f32 %v6941_v4, %v2995_v61  ;;  %v3097_v17 = vmul.f32 %v7132_v48, %v7132_v48  ;;  %v3398_v28 = vmax.f32 %v3382_v5, 0.0  ;;  %vm3212_vm5 = vmor %vm3210_vm4, %vm3211_vm3 }
 0x9a8   :  { %v3203_v41 = vsel %vm3202_vm15, %v4889_v43, %v3199_v35  ;;  %v3206_v34 = vmul.f32 %v4891_v29, %v3205_v57  ;;  %vm3220_vm0 = vweird.f32 %v3171_v19 }
 0x9a9   :  { %v3345_v3 = vmul.f32 %v3203_v41, %v7019_v9  ;;  %v3046_v30 = vsel %vm3000_vm13, %v7141_v0, 0.0  ;;  %v3131_v53 = vsel %vm3000_vm13, %v3097_v17, 0.0 }
 0x9aa   :  { %v3207_v38 = vmul.f32 0.5, %v3206_v34  ;;  %3047 = vadd.xlane.f32.xlu0 %v3046_v30  ;;  %3132 = vadd.xlane.f32.xlu1 %v3131_v53 }
 0x9ab   :  { %v3364_v36 = vmul.f32 %v7126_v47, %v3345_v3 }
 0x9ac   :  { %v3208_v4 = vsub.f32 1.5, %v3207_v38 }
 0x9ad   :  { %v4893_v37 = vpop.eup %4892  ;;  %v3383_v26 = vadd.f32 %v7137_v59, %v3364_v36 }
 0x9ae   :  { %v3209_v20 = vmul.f32 %v4891_v29, %v3208_v4  ;;  %v3215_v9 = vmul.f32 %v4893_v37, %v3171_v19  ;;  %vm3221_vm7 = vweird.f32 %v4893_v37 }
 0x9af   :  { %v3399_v33 = vmax.f32 %v3383_v26, 0.0  ;;  %vm3222_vm6 = vmor %vm3220_vm0, %vm3221_vm7 }
 0x9b0   :  { %v3213_v25 = vsel %vm3212_vm5, %v4891_v29, %v3209_v20  ;;  %v3216_v46 = vmul.f32 %v4893_v37, %v3215_v9 }
 0x9b1   :  { %v3414_v21 = vpack.c.bf16 %v3399_v33, %v3398_v28  ;;  %v3346_v45 = vmul.f32 %v3213_v25, %v7032_v1 }
 0x9b2   :  { %v3217_v51 = vmul.f32 0.5, %v3216_v46 }
 0x9b3   :  { %4451 = vmatmul.msk.bf16.vlgmr.msrb.gmra.mxu0 %vm3000_vm13, %v3414_v21  ;;  %v3365_v50 = vmul.f32 %v7126_v47, %v3346_v45 }
 0x9b4   :  { %v3218_v23 = vsub.f32 1.5, %v3217_v51 }
 0x9b5   :  { %v3384_v11 = vadd.f32 %v7137_v59, %v3365_v50 }
 0x9b6   :  { %v3219_v49 = vmul.f32 %v4893_v37, %v3218_v23  ;;  %v3033_v14 = vpop.xlane.xlu0 %3032  ;;  %v3118_v43 = vpop.xlane.xlu1 %3117 }
 0x9b7   :  { %v3066_v42 = vmul.f32 %v6998_v13, %v3033_v14  ;;  %v3156_v15 = vmul.f32 %v3118_v43, %v6998_v13  ;;  %v3400_v27 = vmax.f32 %v3384_v11, 0.0 }
 0x9b8   :  { %v3223_v10 = vsel %vm3222_vm6, %v4893_v37, %v3219_v49 }
 0x9b9   :  { %v3347_v8 = vmul.f32 %v3223_v10, %v7044_v12  ;;  %v7159_v1 = vsub.f32 %v7059_v58, %v3066_v42  ;;  %v3172_v60 = vadd.f32 1e-05, %v3156_v15 }
 0x9bb   :  { %v3366_v54 = vmul.f32 %v7126_v47, %v3347_v8  ;;  %4894 = vrsqrt.f32 %v3172_v60  ;;  %v3098_v44 = vmul.f32 %v7159_v1, %v7159_v1  ;;  %vm3230_vm9 = vweird.f32 %v3172_v60 }
 0x9bd   :  { %v3134_v18 = vsel %vm3000_vm13, %v3098_v44, 0.0  ;;  %v3385_v40 = vadd.f32 %v7137_v59, %v3366_v54 }
 0x9be   :  { %3135 = vadd.xlane.f32.xlu1 %v3134_v18  ;;  %v3121_v62 = vpop.xlane.xlu2 %3120  ;;  %v3036_v22 = vpop.xlane.xlu1 %3035 }
 0x9bf   :  { %v3157_v12 = vmul.f32 %v3121_v62, %v6998_v13  ;;  %v3067_v58 = vmul.f32 %v6998_v13, %v3036_v22  ;;  %v3401_v55 = vmax.f32 %v3385_v40, 0.0 }
 0x9c1   :  { %v4895_v52 = vpop.eup %4894  ;;  %v3173_v29 = vadd.f32 1e-05, %v3157_v12  ;;  %v7170_v19 = vsub.f32 %v7071_v24, %v3067_v58  ;;  %v3415_v35 = vpack.c.bf16 %v3401_v55, %v3400_v27 }
 0x9c2   :  { %v3225_v57 = vmul.f32 %v4895_v52, %v3172_v60  ;;  %vm3231_vm8 = vweird.f32 %v4895_v52 }
 0x9c3   :  { %4896 = vrsqrt.f32 %v3173_v29  ;;  %4452 = vmatmul.msk.bf16.gmra.mxu0 %vm3000_vm13, %v3415_v35  ;;  %v3099_v61 = vmul.f32 %v7170_v19, %v7170_v19  ;;  %vm3232_vm1 = vmor %vm3230_vm9, %vm3231_vm8  ;;  %vm3240_vm10 = vweird.f32 %v3173_v29 }
 0x9c4   :  { %v3226_v7 = vmul.f32 %v4895_v52, %v3225_v57 }
 0x9c5   :  { %v3137_v41 = vsel %vm3000_vm13, %v3099_v61, 0.0 }
 0x9c6   :  { %v3227_v34 = vmul.f32 0.5, %v3226_v7  ;;  %3138 = vadd.xlane.f32.xlu2 %v3137_v41 }
 0x9c8   :  { %v3228_v17 = vsub.f32 1.5, %v3227_v34 }
 0x9c9   :  { %v4897_v3 = vpop.eup %4896 }
 0x9ca   :  { %v3229_v30 = vmul.f32 %v4895_v52, %v3228_v17  ;;  %v3235_v24 = vmul.f32 %v4897_v3, %v3173_v29  ;;  %vm3241_vm2 = vweird.f32 %v4897_v3 }
 0x9cb   :  { %vm3242_vm11 = vmor %vm3240_vm10, %vm3241_vm2 }
 0x9cc   :  { %v3233_v38 = vsel %vm3232_vm1, %v4895_v52, %v3229_v30  ;;  %v3236_v53 = vmul.f32 %v4897_v3, %v3235_v24  ;;  %vm3531_vm1 = vcmask 23552  }
 0x9cd   :  { %v3348_v36 = vmul.f32 %v3233_v38, %v7056_v31 }
 0x9ce   :  { %v3237_v5 = vmul.f32 0.5, %v3236_v53 }
 0x9cf   :  { %v3367_v26 = vmul.f32 %v7126_v47, %v3348_v36 }
 0x9d0   :  { %v3238_v4 = vsub.f32 1.5, %v3237_v5 }
 0x9d1   :  { %v3386_v33 = vadd.f32 %v7137_v59, %v3367_v26 }
 0x9d2   :  { %v3239_v37 = vmul.f32 %v4897_v3, %v3238_v4 }
 0x9d3   :  { %v3402_v46 = vmax.f32 %v3386_v33, 0.0 }
 0x9d4   :  { %v3243_v20 = vsel %vm3242_vm11, %v4897_v3, %v3239_v37 }
 0x9d5   :  { %v3349_v9 = vmul.f32 %v3243_v20, %v7068_v6 }
 0x9d7   :  { %v3368_v28 = vmul.f32 %v7126_v47, %v3349_v9 }
 0x9d9   :  { %v3387_v25 = vadd.f32 %v7137_v59, %v3368_v28 }
 0x9db   :  { %v3403_v21 = vmax.f32 %v3387_v25, 0.0 }
 0x9dd   :  { %v3416_v51 = vpack.c.bf16 %v3403_v21, %v3402_v46 }
 0x9df   :  { %4453 = vmatmul.msk.bf16.gmra.mxu0 %vm3000_vm13, %v3416_v51 }
 0xa04   :  { %v3039_v31 = vpop.xlane.xlu1 %3038 }
 0xa05   :  { %v3068_v45 = vmul.f32 %v6998_v13, %v3039_v31  ;;  %v3124_v23 = vpop.xlane.xlu2 %3123 }
 0xa06   :  { %v3158_v49 = vmul.f32 %v3124_v23, %v6998_v13 }
 0xa07   :  { %v7186_v14 = vsub.f32 %v7084_v16, %v3068_v45 }
 0xa08   :  { %v3174_v6 = vadd.f32 1e-05, %v3158_v49 }
 0xa09   :  { %v3100_v43 = vmul.f32 %v7186_v14, %v7186_v14 }
 0xa0a   :  { %4898 = vrsqrt.f32 %v3174_v6  ;;  %vm3250_vm14 = vweird.f32 %v3174_v6 }
 0xa0b   :  { %v3140_v50 = vsel %vm3000_vm13, %v3100_v43, 0.0 }
 0xa0c   :  { %3141 = vadd.xlane.f32.xlu0 %v3140_v50 }
 0xa0d   :  { %v3127_v42 = vpop.xlane.xlu0 %3126  ;;  %v3042_v15 = vpop.xlane.xlu2 %3041 }
 0xa0e   :  { %v3159_v10 = vmul.f32 %v3127_v42, %v6998_v13  ;;  %v3069_v8 = vmul.f32 %v6998_v13, %v3042_v15  ;;  %v7224_v15 = vld [vmem:[%s7556_s17] ss:$0 sm:$0xff]  ;;  %s4982_s17 = smov [#allocation2]  }
 0xa0f   :  { %s4053_s3 = sshll.u32 %s4982_s17, 4  ;;  %s4054_s3 = int_to_ptr.vmem [resolvable:$true] %s4053_s3 }
 0xa10   :  { %v4899_v60 = vpop.eup %4898  ;;  %v3175_v54 = vadd.f32 1e-05, %v3159_v10  ;;  %v7194_v44 = vsub.f32 %v7097_v63, %v3069_v8 }
 0xa11   :  { %v3245_v16 = vmul.f32 %v4899_v60, %v3174_v6  ;;  %vm3251_vm12 = vweird.f32 %v4899_v60 }
 0xa12   :  { %4900 = vrsqrt.f32 %v3175_v54  ;;  %v3101_v11 = vmul.f32 %v7194_v44, %v7194_v44  ;;  %vm3252_vm15 = vmor %vm3250_vm14, %vm3251_vm12  ;;  %vm3260_vm4 = vweird.f32 %v3175_v54 }
 0xa13   :  { %v3246_v18 = vmul.f32 %v4899_v60, %v3245_v16 }
 0xa14   :  { %v3143_v40 = vsel %vm3000_vm13, %v3101_v11, 0.0 }
 0xa15   :  { %v3247_v62 = vmul.f32 0.5, %v3246_v18  ;;  %3144 = vadd.xlane.f32.xlu1 %v3143_v40  ;;  %v3045_v22 = vpop.xlane.xlu2 %3044  ;;  %v3130_v12 = vpop.xlane.xlu0 %3129 }
 0xa16   :  { %v3070_v58 = vmul.f32 %v6998_v13, %v3045_v22  ;;  %v3160_v55 = vmul.f32 %v3130_v12, %v6998_v13 }
 0xa17   :  { %v3248_v27 = vsub.f32 1.5, %v3247_v62 }
 0xa18   :  { %v4901_v63 = vpop.eup %4900  ;;  %v7202_v52 = vsub.f32 %v7116_v56, %v3070_v58  ;;  %v3176_v57 = vadd.f32 1e-05, %v3160_v55 }
 0xa19   :  { %v3249_v29 = vmul.f32 %v4899_v60, %v3248_v27  ;;  %v3255_v35 = vmul.f32 %v4901_v63, %v3175_v54  ;;  %vm3261_vm3 = vweird.f32 %v4901_v63 }
 0xa1a   :  { %v3102_v61 = vmul.f32 %v7202_v52, %v7202_v52  ;;  %4902 = vrsqrt.f32 %v3176_v57  ;;  %vm3262_vm5 = vmor %vm3260_vm4, %vm3261_vm3  ;;  %vm3270_vm0 = vweird.f32 %v3176_v57 }
 0xa1b   :  { %v3253_v7 = vsel %vm3252_vm15, %v4899_v60, %v3249_v29  ;;  %v3256_v41 = vmul.f32 %v4901_v63, %v3255_v35 }
 0xa1c   :  { %v3146_v34 = vsel %vm3000_vm13, %v3102_v61, 0.0  ;;  %v3350_v3 = vmul.f32 %v3253_v7, %v7081_v2 }
 0xa1d   :  { %v3257_v17 = vmul.f32 0.5, %v3256_v41  ;;  %3147 = vadd.xlane.f32.xlu2 %v3146_v34  ;;  %v3048_v30 = vpop.xlane.xlu0 %3047  ;;  %v3133_v56 = vpop.xlane.xlu1 %3132 }
 0xa1e   :  { %v3071_v38 = vmul.f32 %v6998_v13, %v3048_v30  ;;  %v3161_v53 = vmul.f32 %v3133_v56, %v6998_v13  ;;  %v3369_v26 = vmul.f32 %v7126_v47, %v3350_v3 }
 0xa1f   :  { %v3258_v24 = vsub.f32 1.5, %v3257_v17 }
 0xa20   :  { %v4903_v5 = vpop.eup %4902  ;;  %v7211_v4 = vsub.f32 %v7141_v0, %v3071_v38  ;;  %v3177_v37 = vadd.f32 1e-05, %v3161_v53  ;;  %v3388_v0 = vadd.f32 %v7137_v59, %v3369_v26 }
 0xa21   :  { %v3259_v36 = vmul.f32 %v4901_v63, %v3258_v24  ;;  %v3265_v20 = vmul.f32 %v4903_v5, %v3176_v57  ;;  %vm3271_vm7 = vweird.f32 %v4903_v5 }
 0xa22   :  { %4904 = vrsqrt.f32 %v3177_v37  ;;  %v3103_v9 = vmul.f32 %v7211_v4, %v7211_v4  ;;  %v3404_v6 = vmax.f32 %v3388_v0, 0.0  ;;  %vm3272_vm6 = vmor %vm3270_vm0, %vm3271_vm7  ;;  %vm3280_vm9 = vweird.f32 %v3177_v37 }
 0xa23   :  { %v3263_v2 = vsel %vm3262_vm5, %v4901_v63, %v3259_v36  ;;  %v3266_v33 = vmul.f32 %v4903_v5, %v3265_v20 }
 0xa24   :  { %v3351_v28 = vmul.f32 %v3263_v2, %v7094_v32  ;;  %v3149_v25 = vsel %vm3000_vm13, %v3103_v9, 0.0 }
 0xa25   :  { %v3267_v21 = vmul.f32 0.5, %v3266_v33  ;;  %3150 = vadd.xlane.f32.xlu0 %v3149_v25 }
 0xa26   :  { %v3370_v46 = vmul.f32 %v7126_v47, %v3351_v28 }
 0xa27   :  { %v3268_v51 = vsub.f32 1.5, %v3267_v21 }
 0xa28   :  { %v3389_v31 = vadd.f32 %v7137_v59, %v3370_v46  ;;  %v4905_v45 = vpop.eup %4904 }
 0xa29   :  { %v3269_v23 = vmul.f32 %v4903_v5, %v3268_v51  ;;  %v3275_v49 = vmul.f32 %v4905_v45, %v3177_v37  ;;  %vm3281_vm8 = vweird.f32 %v4905_v45 }
 0xa2a   :  { %v3405_v43 = vmax.f32 %v3389_v31, 0.0  ;;  %vm3282_vm2 = vmor %vm3280_vm9, %vm3281_vm8 }
 0xa2b   :  { %v3273_v32 = vsel %vm3272_vm6, %v4903_v5, %v3269_v23  ;;  %v3276_v50 = vmul.f32 %v4905_v45, %v3275_v49 }
 0xa2c   :  { %v3417_v42 = vpack.c.bf16 %v3405_v43, %v3404_v6  ;;  %v3352_v8 = vmul.f32 %v3273_v32, %v7113_v39 }
 0xa2d   :  { %v3277_v10 = vmul.f32 0.5, %v3276_v50 }
 0xa2e   :  { %4454 = vmatmul.msk.bf16.gmra.mxu0 %vm3000_vm13, %v3417_v42  ;;  %v3371_v62 = vmul.f32 %v7126_v47, %v3352_v8 }
 0xa2f   :  { %v3278_v60 = vsub.f32 1.5, %v3277_v10 }
 0xa30   :  { %v3475_v54 = vpop.f32.mrf.mxu0  ;;  %v3390_v63 = vadd.f32 %v7137_v59, %v3371_v62 }
 0xa31   :  { %v7229_v16 = vadd.f32 %v7224_v15, %v3475_v54  ;;  %v3136_v11 = vpop.xlane.xlu1 %3135  ;;  %v3279_v18 = vmul.f32 %v4905_v45, %v3278_v60 }
 0xa32   :  { %v3162_v40 = vmul.f32 %v3136_v11, %v6998_v13  ;;  %v3406_v41 = vmax.f32 %v3390_v63, 0.0 }
 0xa33   :  { %v3515_v22 = vmul.f32 %v7229_v16, %v7229_v16  ;;  %v3283_v12 = vsel %vm3282_vm2, %v4905_v45, %v3279_v18 }
 0xa34   :  { %v3178_v39 = vadd.f32 1e-05, %v3162_v40  ;;  %v3353_v58 = vmul.f32 %v3283_v12, %v7132_v48 }
 0xa35   :  { %v3532_v27 = vsel %vm3531_vm1, %v3515_v22, 0.0 }
 0xa36   :  { %4906 = vrsqrt.f32 %v3178_v39  ;;  %3533 = vadd.xlane.f32.xlu1 %v3532_v27  ;;  %v3372_v55 = vmul.f32 %v7126_v47, %v3353_v58  ;;  %vm3290_vm11 = vweird.f32 %v3178_v39 }
 0xa38   :  { %v3477_v29 = vpop.f32.mrf.mxu0  ;;  %v3391_v61 = vadd.f32 %v7137_v59, %v3372_v55 }
 0xa39   :  { %v7240_v35 = vadd.f32 %v7224_v15, %v3477_v29  ;;  %v3139_v57 = vpop.xlane.xlu2 %3138 }
 0xa3a   :  { %v3163_v7 = vmul.f32 %v3139_v57, %v6998_v13  ;;  %v3407_v34 = vmax.f32 %v3391_v61, 0.0 }
 0xa3b   :  { %v3516_v48 = vmul.f32 %v7240_v35, %v7240_v35 }
 0xa3c   :  { %v4907_v17 = vpop.eup %4906  ;;  %v3179_v3 = vadd.f32 1e-05, %v3163_v7  ;;  %v3418_v24 = vpack.c.bf16 %v3407_v34, %v3406_v41 }
 0xa3d   :  { %v3285_v30 = vmul.f32 %v4907_v17, %v3178_v39  ;;  %v3535_v56 = vsel %vm3531_vm1, %v3516_v48, 0.0  ;;  %vm3291_vm10 = vweird.f32 %v4907_v17 }
 0xa3e   :  { %4908 = vrsqrt.f32 %v3179_v3  ;;  %3536 = vadd.xlane.f32.xlu2 %v3535_v56  ;;  %4455 = vmatmul.msk.bf16.gmra.mxu0 %vm3000_vm13, %v3418_v24  ;;  %vm3292_vm12 = vmor %vm3290_vm11, %vm3291_vm10  ;;  %vm3300_vm15 = vweird.f32 %v3179_v3 }
 0xa3f   :  { %v3286_v38 = vmul.f32 %v4907_v17, %v3285_v30 }
 0xa40   :  { %v3480_v53 = vpop.f32.mrf.mxu0 }
 0xa41   :  { %v3287_v5 = vmul.f32 0.5, %v3286_v38  ;;  %v7249_v36 = vadd.f32 %v7224_v15, %v3480_v53 }
 0xa43   :  { %v3288_v37 = vsub.f32 1.5, %v3287_v5  ;;  %v3517_v26 = vmul.f32 %v7249_v36, %v7249_v36 }
 0xa44   :  { %v4909_v20 = vpop.eup %4908 }
 0xa45   :  { %v3289_v2 = vmul.f32 %v4907_v17, %v3288_v37  ;;  %v3295_v9 = vmul.f32 %v4909_v20, %v3179_v3  ;;  %v3538_v28 = vsel %vm3531_vm1, %v3517_v26, 0.0  ;;  %vm3301_vm14 = vweird.f32 %v4909_v20 }
 0xa46   :  { %3539 = vadd.xlane.f32.xlu0 %v3538_v28  ;;  %vm3302_vm3 = vmor %vm3300_vm15, %vm3301_vm14 }
 0xa47   :  { %v3293_v33 = vsel %vm3292_vm12, %v4907_v17, %v3289_v2  ;;  %v3296_v25 = vmul.f32 %v4909_v20, %v3295_v9 }
 0xa48   :  { %v3482_v46 = vpop.f32.mrf.mxu0  ;;  %v3354_v51 = vmul.f32 %v3293_v33, %v7159_v1 }
 0xa49   :  { %v3297_v21 = vmul.f32 0.5, %v3296_v25  ;;  %v7255_v0 = vadd.f32 %v7224_v15, %v3482_v46 }
 0xa4a   :  { %v3373_v6 = vmul.f32 %v7126_v47, %v3354_v51 }
 0xa4b   :  { %v3298_v31 = vsub.f32 1.5, %v3297_v21  ;;  %v3518_v45 = vmul.f32 %v7255_v0, %v7255_v0 }
 0xa4c   :  { %v3392_v1 = vadd.f32 %v7137_v59, %v3373_v6 }
 0xa4d   :  { %v3299_v23 = vmul.f32 %v4909_v20, %v3298_v31  ;;  %v3541_v49 = vsel %vm3531_vm1, %v3518_v45, 0.0 }
 0xa4e   :  { %3542 = vadd.xlane.f32.xlu1 %v3541_v49  ;;  %v3408_v10 = vmax.f32 %v3392_v1, 0.0 }
 0xa4f   :  { %v3303_v43 = vsel %vm3302_vm3, %v4909_v20, %v3299_v23 }
 0xa50   :  { %v3355_v32 = vmul.f32 %v3303_v43, %v7170_v19 }
 0xa52   :  { %v3374_v50 = vmul.f32 %v7126_v47, %v3355_v32 }
 0xa54   :  { %v3393_v42 = vadd.f32 %v7137_v59, %v3374_v50 }
 0xa56   :  { %v3409_v8 = vmax.f32 %v3393_v42, 0.0 }
 0xa58   :  { %v3419_v60 = vpack.c.bf16 %v3409_v8, %v3408_v10 }
 0xa5a   :  { %4456 = vmatmul.msk.bf16.gmra.mxu0 %vm3000_vm13, %v3419_v60 }
 0xa5c   :  { %v3485_v54 = vpop.f32.mrf.mxu0 }
 0xa5d   :  { %v7268_v11 = vadd.f32 %v7224_v15, %v3485_v54 }
 0xa5f   :  { %v3519_v18 = vmul.f32 %v7268_v11, %v7268_v11 }
 0xa61   :  { %v3544_v19 = vsel %vm3531_vm1, %v3519_v18, 0.0 }
 0xa62   :  { %3545 = vadd.xlane.f32.xlu2 %v3544_v19 }
 0xa64   :  { %v3487_v40 = vpop.f32.mrf.mxu0 }
 0xa65   :  { %v7274_v62 = vadd.f32 %v7224_v15, %v3487_v40 }
 0xa67   :  { %v3520_v22 = vmul.f32 %v7274_v62, %v7274_v62 }
 0xa69   :  { %v3547_v12 = vsel %vm3531_vm1, %v3520_v22, 0.0 }
 0xa6a   :  { %3548 = vadd.xlane.f32.xlu0 %v3547_v12 }
 0xa7f   :  { %v3142_v39 = vpop.xlane.xlu0 %3141 }
 0xa80   :  { %v3164_v58 = vmul.f32 %v3142_v39, %v6998_v13 }
 0xa82   :  { %v3180_v27 = vadd.f32 1e-05, %v3164_v58 }
 0xa84   :  { %4910 = vrsqrt.f32 %v3180_v27  ;;  %vm3310_vm5 = vweird.f32 %v3180_v27 }
 0xa88   :  { %v3145_v55 = vpop.xlane.xlu1 %3144 }
 0xa89   :  { %v3165_v63 = vmul.f32 %v3145_v55, %v6998_v13 }
 0xa8a   :  { %v4911_v29 = vpop.eup %4910 }
 0xa8b   :  { %v3305_v57 = vmul.f32 %v4911_v29, %v3180_v27  ;;  %v3181_v61 = vadd.f32 1e-05, %v3165_v63  ;;  %vm3311_vm4 = vweird.f32 %v4911_v29 }
 0xa8c   :  { %vm3312_vm7 = vmor %vm3310_vm5, %vm3311_vm4 }
 0xa8d   :  { %v3306_v7 = vmul.f32 %v4911_v29, %v3305_v57  ;;  %4912 = vrsqrt.f32 %v3181_v61  ;;  %vm3320_vm6 = vweird.f32 %v3181_v61 }
 0xa8f   :  { %v3307_v48 = vmul.f32 0.5, %v3306_v7 }
 0xa90   :  { %v3148_v41 = vpop.xlane.xlu2 %3147 }
 0xa91   :  { %v3308_v34 = vsub.f32 1.5, %v3307_v48  ;;  %v3166_v17 = vmul.f32 %v3148_v41, %v6998_v13 }
 0xa93   :  { %v4913_v3 = vpop.eup %4912  ;;  %v3309_v30 = vmul.f32 %v4911_v29, %v3308_v34  ;;  %v3182_v56 = vadd.f32 1e-05, %v3166_v17 }
 0xa94   :  { %v3315_v24 = vmul.f32 %v4913_v3, %v3181_v61  ;;  %vm3321_vm0 = vweird.f32 %v4913_v3 }
 0xa95   :  { %4914 = vrsqrt.f32 %v3182_v56  ;;  %v3313_v38 = vsel %vm3312_vm7, %v4911_v29, %v3309_v30  ;;  %vm3322_vm8 = vmor %vm3320_vm6, %vm3321_vm0  ;;  %vm3330_vm2 = vweird.f32 %v3182_v56 }
 0xa96   :  { %v3316_v53 = vmul.f32 %v4913_v3, %v3315_v24  ;;  %v3356_v37 = vmul.f32 %v3313_v38, %v7186_v14 }
 0xa98   :  { %v3317_v5 = vmul.f32 0.5, %v3316_v53  ;;  %v3151_v26 = vpop.xlane.xlu0 %3150  ;;  %v3375_v46 = vmul.f32 %v7126_v47, %v3356_v37 }
 0xa99   :  { %v3167_v2 = vmul.f32 %v3151_v26, %v6998_v13 }
 0xa9a   :  { %v3318_v20 = vsub.f32 1.5, %v3317_v5  ;;  %v3394_v23 = vadd.f32 %v7137_v59, %v3375_v46 }
 0xa9b   :  { %v4915_v9 = vpop.eup %4914  ;;  %v3183_v25 = vadd.f32 1e-05, %v3167_v2 }
 0xa9c   :  { %v3319_v28 = vmul.f32 %v4913_v3, %v3318_v20  ;;  %v3325_v33 = vmul.f32 %v4915_v9, %v3182_v56  ;;  %vm3331_vm9 = vweird.f32 %v4915_v9  ;;  %v3410_v50 = vmax.f32 %v3394_v23, 0.0 }
 0xa9d   :  { %4916 = vrsqrt.f32 %v3183_v25  ;;  %vm3332_vm10 = vmor %vm3330_vm2, %vm3331_vm9  ;;  %vm3340_vm12 = vweird.f32 %v3183_v25 }
 0xa9e   :  { %v3323_v21 = vsel %vm3322_vm8, %v4913_v3, %v3319_v28  ;;  %v3326_v51 = vmul.f32 %v4915_v9, %v3325_v33 }
 0xa9f   :  { %v3357_v31 = vmul.f32 %v3323_v21, %v7194_v44 }
 0xaa0   :  { %v3327_v45 = vmul.f32 0.5, %v3326_v51 }
 0xaa1   :  { %v3376_v14 = vmul.f32 %v7126_v47, %v3357_v31 }
 0xaa2   :  { %v3328_v49 = vsub.f32 1.5, %v3327_v45 }
 0xaa3   :  { %v3395_v13 = vadd.f32 %v7137_v59, %v3376_v14  ;;  %v4917_v6 = vpop.eup %4916 }
 0xaa4   :  { %v3329_v43 = vmul.f32 %v4915_v9, %v3328_v49  ;;  %v3335_v32 = vmul.f32 %v4917_v6, %v3183_v25  ;;  %vm3341_vm11 = vweird.f32 %v4917_v6 }
 0xaa5   :  { %v3411_v1 = vmax.f32 %v3395_v13, 0.0  ;;  %vm3342_vm14 = vmor %vm3340_vm12, %vm3341_vm11 }
 0xaa6   :  { %v3333_v42 = vsel %vm3332_vm10, %v4915_v9, %v3329_v43  ;;  %v3336_v10 = vmul.f32 %v4917_v6, %v3335_v32 }
 0xaa7   :  { %v3420_v8 = vpack.c.bf16 %v3411_v1, %v3410_v50  ;;  %v3358_v60 = vmul.f32 %v3333_v42, %v7202_v52 }
 0xaa8   :  { %v3337_v44 = vmul.f32 0.5, %v3336_v10 }
 0xaa9   :  { %4457 = vmatmul.msk.bf16.gmra.mxu0 %vm3000_vm13, %v3420_v8  ;;  %v3377_v22 = vmul.f32 %v7126_v47, %v3358_v60 }
 0xaaa   :  { %v3338_v54 = vsub.f32 1.5, %v3337_v44 }
 0xaab   :  { %v3490_v18 = vpop.f32.mrf.mxu0  ;;  %v3396_v55 = vadd.f32 %v7137_v59, %v3377_v22 }
 0xaac   :  { %v7292_v19 = vadd.f32 %v7224_v15, %v3490_v18  ;;  %v3339_v40 = vmul.f32 %v4917_v6, %v3338_v54 }
 0xaad   :  { %v3412_v7 = vmax.f32 %v3396_v55, 0.0 }
 0xaae   :  { %v3521_v12 = vmul.f32 %v7292_v19, %v7292_v19  ;;  %v3343_v39 = vsel %vm3342_vm14, %v4917_v6, %v3339_v40 }
 0xaaf   :  { %v3359_v58 = vmul.f32 %v3343_v39, %v7211_v4 }
 0xab0   :  { %v3550_v27 = vsel %vm3531_vm1, %v3521_v12, 0.0  ;;  %v3790_v12 = vlaneseq }
 0xab1   :  { %3551 = vadd.xlane.f32.xlu1 %v3550_v27  ;;  %v3378_v52 = vmul.f32 %v7126_v47, %v3359_v58  ;;  %v7378_v1 = vpop.xlane.xlu2 %3536 }
 0xab2   :  { %v7471_v55 = vshrl.u32 %v3790_v12, 7 }
 0xab3   :  { %v3492_v63 = vpop.f32.mrf.mxu0  ;;  %v3397_v57 = vadd.f32 %v7137_v59, %v3378_v52 }
 0xab4   :  { %v7302_v29 = vadd.f32 %v7224_v15, %v3492_v63  ;;  %v7473_v63 = vand.u32 127, %v3790_v12 }
 0xab5   :  { %v3413_v48 = vmax.f32 %v3397_v57, 0.0 }
 0xab6   :  { %v3522_v61 = vmul.f32 %v7302_v29, %v7302_v29 }
 0xab7   :  { %v3421_v41 = vpack.c.bf16 %v3413_v48, %v3412_v7 }
 0xab8   :  { %v3553_v4 = vsel %vm3531_vm1, %v3522_v61, 0.0 }
 0xab9   :  { %3554 = vadd.xlane.f32.xlu2 %v3553_v4  ;;  %4458 = vmatmul.msk.bf16.gmra.mxu0 %vm3000_vm13, %v3421_v41  ;;  %v7385_v42 = vpop.xlane.xlu0 %3539  ;;  %vm3809_vm13 = vcmp.eq.s32.totalorder %v7471_v55, %v7473_v63  ;;  %v3792_v41 = vadd.s32 8, %v7471_v55 }
 0xabb   :  { %v3495_v47 = vpop.f32.mrf.mxu0 }
 0xabc   :  { %v7310_v34 = vadd.f32 %v7224_v15, %v3495_v47 }
 0xabe   :  { %v3523_v17 = vmul.f32 %v7310_v34, %v7310_v34 }
 0xac0   :  { %v3556_v59 = vsel %vm3531_vm1, %v3523_v17, 0.0 }
 0xac1   :  { %3557 = vadd.xlane.f32.xlu0 %v3556_v59 }
 0xac3   :  { %v3497_v3 = vpop.f32.mrf.mxu0 }
 0xac4   :  { %v7316_v30 = vadd.f32 %v7224_v15, %v3497_v3 }
 0xac6   :  { %v3524_v56 = vmul.f32 %v7316_v30, %v7316_v30 }
 0xac8   :  { %v3559_v24 = vsel %vm3531_vm1, %v3524_v56, 0.0 }
 0xac9   :  { %3560 = vadd.xlane.f32.xlu1 %v3559_v24 }
 0xad5   :  { %v7399_v8 = vpop.xlane.xlu2 %3545 }
 0xad7   :  { %v3500_v38 = vpop.f32.mrf.mxu0 }
 0xad8   :  { %v7322_v53 = vadd.f32 %v7224_v15, %v3500_v38  ;;  %v3793_v38 = vadd.s32 16, %v7471_v55 }
 0xada   :  { %v3525_v5 = vmul.f32 %v7322_v53, %v7322_v53  ;;  %vm3811_vm15 = vcmp.eq.s32.totalorder %v3793_v38, %v7473_v63 }
 0xadc   :  { %v3562_v37 = vsel %vm3531_vm1, %v3525_v5, 0.0 }
 0xadd   :  { %3563 = vadd.xlane.f32.xlu2 %v3562_v37  ;;  %v7406_v44 = vpop.xlane.xlu0 %3548 }
 0xadf   :  { %v3502_v26 = vpop.f32.mrf.mxu0 }
 0xae0   :  { %v7328_v20 = vadd.f32 %v7224_v15, %v3502_v26 }
 0xae2   :  { %v3526_v2 = vmul.f32 %v7328_v20, %v7328_v20 }
 0xae4   :  { %v3565_v9 = vsel %vm3531_vm1, %v3526_v2, 0.0 }
 0xae5   :  { %3566 = vadd.xlane.f32.xlu0 %v3565_v9 }
 0xb26   :  { %v3505_v28 = vpop.f32.mrf.mxu0 }
 0xb27   :  { %v7334_v33 = vadd.f32 %v7224_v15, %v3505_v28 }
 0xb29   :  { %v3527_v25 = vmul.f32 %v7334_v33, %v7334_v33 }
 0xb2b   :  { %v3568_v46 = vsel %vm3531_vm1, %v3527_v25, 0.0 }
 0xb2c   :  { %3569 = vadd.xlane.f32.xlu1 %v3568_v46  ;;  %v7416_v54 = vpop.xlane.xlu2 %3554 }
 0xb2e   :  { %v3507_v21 = vpop.f32.mrf.mxu0 }
 0xb2f   :  { %v7340_v51 = vadd.f32 %v7224_v15, %v3507_v21 }
 0xb31   :  { %v3528_v31 = vmul.f32 %v7340_v51, %v7340_v51 }
 0xb33   :  { %v3571_v45 = vsel %vm3531_vm1, %v3528_v31, 0.0 }
 0xb34   :  { %3572 = vadd.xlane.f32.xlu2 %v3571_v45 }
 0xb36   :  { %v3510_v14 = vpop.f32.mrf.mxu0 }
 0xb37   :  { %v7346_v23 = vadd.f32 %v7224_v15, %v3510_v14 }
 0xb39   :  { %v3529_v49 = vmul.f32 %v7346_v23, %v7346_v23 }
 0xb3b   :  { %v3574_v13 = vsel %vm3531_vm1, %v3529_v49, 0.0 }
 0xb3c   :  { %3575 = vadd.xlane.f32.xlu0 %v3574_v13 }
 0xb3e   :  { %v3512_v6 = vpop.f32.mrf.mxu0 }
 0xb3f   :  { %v7352_v43 = vadd.f32 %v7224_v15, %v3512_v6  ;;  %v7371_v15 = vpop.xlane.xlu1 %3533 }
 0xb41   :  { %4459 = vmatpush.xpose.msk.msrb.mxu1 %vm3531_vm1, %v7352_v43  ;;  %v3530_v32 = vmul.f32 %v7352_v43, %v7352_v43 }
 0xb43   :  { %v3577_v50 = vsel %vm3531_vm1, %v3530_v32, 0.0 }
 0xb44   :  { %3578 = vadd.xlane.f32.xlu1 %v3577_v50 }
 0xb45   :  { %4460 = vmatpush.xpose.msk.msrb.mxu1 %vm3531_vm1, %v7346_v23 }
 0xb47   :  { %v7392_v10 = vpop.xlane.xlu1 %3542 }
 0xb49   :  { %4461 = vmatpush.xpose.msk.msrb.mxu1 %vm3531_vm1, %v7340_v51 }
 0xb4d   :  { %4462 = vmatpush.xpose.msk.msrb.mxu1 %vm3531_vm1, %v7334_v33 }
 0xb4f   :  { %v7411_v60 = vpop.xlane.xlu1 %3551 }
 0xb51   :  { %4463 = vmatpush.xpose.msk.msrb.mxu1 %vm3531_vm1, %v7328_v20 }
 0xb55   :  { %4464 = vmatpush.xpose.msk.msrb.mxu1 %vm3531_vm1, %v7322_v53 }
 0xb59   :  { %4465 = vmatpush.xpose.msk.msrb.mxu1 %vm3531_vm1, %v7316_v30 }
 0xb5d   :  { %3693 = vxpose.xlu2.b32.start [1/16] (narrow) %v7371_v15, 8  ;;  %4466 = vmatpush.xpose.msk.msrb.mxu1 %vm3531_vm1, %v7310_v34 }
 0xb61   :  { %4467 = vmatpush.xpose.msk.msrb.mxu1 %vm3531_vm1, %v7302_v29 }
 0xb65   :  { %3694 = vxpose.xlu2.b32.cont [2/16] (narrow) %v7378_v1, 8  ;;  %4468 = vmatpush.xpose.msk.msrb.mxu1 %vm3531_vm1, %v7292_v19 }
 0xb69   :  { %4469 = vmatpush.xpose.msk.msrb.mxu1 %vm3531_vm1, %v7274_v62 }
 0xb6d   :  { %3695 = vxpose.xlu2.b32.cont [3/16] (narrow) %v7385_v42, 8  ;;  %4470 = vmatpush.xpose.msk.msrb.mxu1 %vm3531_vm1, %v7268_v11 }
 0xb71   :  { %4471 = vmatpush.xpose.msk.msrb.mxu1 %vm3531_vm1, %v7255_v0 }
 0xb75   :  { %3696 = vxpose.xlu2.b32.cont [4/16] (narrow) %v7392_v10, 8  ;;  %4472 = vmatpush.xpose.msk.msrb.mxu1 %vm3531_vm1, %v7249_v36 }
 0xb79   :  { %4473 = vmatpush.xpose.msk.msrb.mxu1 %vm3531_vm1, %v7240_v35 }
 0xb7d   :  { %3697 = vxpose.xlu2.b32.cont [5/16] (narrow) %v7399_v8, 8  ;;  %4474 = vmatpush.xpose.msk.msrb.mxu1 %vm3531_vm1, %v7229_v16 }
 0xb80   :  { %4475 = vmatmul.msk.f32.vlgmr.msrb.gmra.mxu1 %vm3531_vm1, %v7229_v16  ;;  %v7421_v16 = vpop.xlane.xlu0 %3557 }
 0xb85   :  { %3698 = vxpose.xlu2.b32.cont [6/16] (narrow) %v7406_v44, 8 }
 0xb88   :  { %4476 = vmatmul.msk.f32.gmra.mxu1 %vm3531_vm1, %v7240_v35  ;;  %v7426_v35 = vpop.xlane.xlu1 %3560 }
 0xb8d   :  { %3699 = vxpose.xlu2.b32.cont [7/16] (narrow) %v7411_v60, 8 }
 0xb90   :  { %4477 = vmatmul.msk.f32.gmra.mxu1 %vm3531_vm1, %v7249_v36  ;;  %v7431_v36 = vpop.xlane.xlu2 %3563 }
 0xb95   :  { %3700 = vxpose.xlu2.b32.cont [8/16] (narrow) %v7416_v54, 8 }
 0xb98   :  { %4478 = vmatmul.msk.f32.gmra.mxu1 %vm3531_vm1, %v7255_v0  ;;  %v7436_v0 = vpop.xlane.xlu0 %3566 }
 0xb9d   :  { %3701 = vxpose.xlu2.b32.cont [9/16] (narrow) %v7421_v16, 8 }
 0xba0   :  { %4479 = vmatmul.msk.f32.gmra.mxu1 %vm3531_vm1, %v7268_v11  ;;  %v7441_v11 = vpop.xlane.xlu1 %3569 }
 0xba5   :  { %3702 = vxpose.xlu2.b32.cont [10/16] (narrow) %v7426_v35, 8 }
 0xba8   :  { %4480 = vmatmul.msk.f32.gmra.mxu1 %vm3531_vm1, %v7274_v62  ;;  %v3573_v62 = vpop.xlane.xlu2 %3572 }
 0xbad   :  { %3703 = vxpose.xlu2.b32.cont [11/16] (narrow) %v7431_v36, 8 }
 0xbaf   :  { %v3576_v18 = vpop.xlane.xlu0 %3575 }
 0xbb0   :  { %4481 = vmatmul.msk.f32.gmra.mxu1 %vm3531_vm1, %v7292_v19 }
 0xbb5   :  { %3704 = vxpose.xlu2.b32.cont [12/16] (narrow) %v7436_v0, 8 }
 0xbb7   :  { %v3579_v19 = vpop.xlane.xlu1 %3578 }
 0xbb8   :  { %4482 = vmatmul.msk.f32.gmra.mxu1 %vm3531_vm1, %v7302_v29 }
 0xbbd   :  { %3705 = vxpose.xlu2.b32.cont [13/16] (narrow) %v7441_v11, 8 }
 0xbc0   :  { %4483 = vmatmul.msk.f32.gmra.mxu1 %vm3531_vm1, %v7310_v34 }
 0xbc5   :  { %3706 = vxpose.xlu2.b32.cont [14/16] (narrow) %v3573_v62, 8 }
 0xbc8   :  { %4484 = vmatmul.msk.f32.gmra.mxu1 %vm3531_vm1, %v7316_v30 }
 0xbcd   :  { %3707 = vxpose.xlu2.b32.cont [15/16] (narrow) %v3576_v18, 8 }
 0xbd0   :  { %4485 = vmatmul.msk.f32.gmra.mxu1 %vm3531_vm1, %v7322_v53 }
 0xbd5   :  { %3708 = vxpose.xlu2.b32.end [16/16] (narrow) %v3579_v19, 8 }
 0xbd8   :  { %4486 = vmatmul.msk.f32.gmra.mxu1 %vm3531_vm1, %v7328_v20 }
 0xbe0   :  { %4487 = vmatmul.msk.f32.gmra.mxu1 %vm3531_vm1, %v7334_v33 }
 0xbe8   :  { %4488 = vmatmul.msk.f32.gmra.mxu1 %vm3531_vm1, %v7340_v51  ;;  %v3794_v51 = vadd.s32 24, %v7471_v55 }
 0xbea   :  { %vm3812_vm5 = vcmp.eq.s32.totalorder %v3794_v51, %v7473_v63 }
 0xbf0   :  { %4489 = vmatmul.msk.f32.gmra.mxu1 %vm3531_vm1, %v7346_v23 }
 0xbf6   :  { %v3709_v40 = vpop.trf.xlu2 }
 0xbf7   :  { %v7458_v22 = vperm.slane %v3709_v40, 0 }
 0xbf8   :  { %4490 = vmatmul.msk.f32.gmra.mxu1 %vm3531_vm1, %v7352_v43  ;;  %vm3810_vm1 = vcmp.eq.s32.totalorder %v3792_v41, %v7473_v63 }
 0xbf9   :  { %v7463_v39 = vadd.f32 %v7458_v22, %v3573_v62  ;;  %v7466_v58 = vadd.f32 %v7458_v22, %v3576_v18  ;;  %v7469_v27 = vadd.f32 %v7458_v22, %v3579_v19  ;;  %v3726_v29 = vadd.f32 %v7458_v22, %v7371_v15 }
 0xbfa   :  { %v3727_v47 = vadd.f32 %v7458_v22, %v7378_v1  ;;  %v3728_v5 = vadd.f32 %v7458_v22, %v7385_v42  ;;  %v3729_v14 = vadd.f32 %v7458_v22, %v7392_v10  ;;  %v3795_v10 = vadd.s32 32, %v7471_v55 }
 0xbfc   :  { %vm3813_vm6 = vcmp.eq.s32.totalorder %v3795_v10, %v7473_v63 }
 0xbfd   :  { %v3645_v52 = vpop.f32.mrf.mxu1 }
 0xbfe   :  { %v3742_v57 = vmul.f32 2.0, %v3645_v52  ;;  %v3730_v52 = vadd.f32 %v7458_v22, %v7399_v8  ;;  %v3796_v8 = vadd.s32 40, %v7471_v55 }
 0xc00   :  { %v3758_v61 = vsub.f32 %v3726_v29, %v3742_v57  ;;  %vm3814_vm2 = vcmp.eq.s32.totalorder %v3796_v8, %v7473_v63 }
 0xc02   :  { %v3774_v7 = vmax.f32 %v3758_v61, 0.0 }
 0xc04   :  { %v3825_v48 = vsel %vm3809_vm13, 0.0, %v3774_v7 }
 0xc05   :  { %4918 = vrsqrt.f32 %v3825_v48  ;;  %v3648_v4 = vpop.f32.mrf.mxu1  ;;  %vm3848_vm3 = vcmp.eq.f32.partialorder %v3825_v48, inf  ;;  %v3851_v49 = vand.u32 2147483648, %v3825_v48  ;;  %vm3850_vm4 = vcmp.eq.f32.partialorder %v3825_v48, 0.0 }
 0xc06   :  { %v3743_v34 = vmul.f32 2.0, %v3648_v4 }
 0xc08   :  { %v3759_v17 = vsub.f32 %v3727_v47, %v3743_v34 }
 0xc0a   :  { %v3775_v59 = vmax.f32 %v3759_v17, 0.0 }
 0xc0b   :  { %v4919_v3 = vpop.eup %4918 }
 0xc0c   :  { %v3842_v30 = vmul.f32 %v4919_v3, %v3825_v48  ;;  %v3826_v56 = vsel %vm3810_vm1, 0.0, %v3775_v59 }
 0xc0d   :  { %4920 = vrsqrt.f32 %v3826_v56  ;;  %v3651_v24 = vpop.f32.mrf.mxu1  ;;  %vm3860_vm7 = vcmp.eq.f32.partialorder %v3826_v56, inf  ;;  %v3863_v57 = vand.u32 2147483648, %v3826_v56  ;;  %vm3862_vm0 = vcmp.eq.f32.partialorder %v3826_v56, 0.0 }
 0xc0e   :  { %v3843_v53 = vmul.f32 %v4919_v3, %v3842_v30  ;;  %v3744_v37 = vmul.f32 2.0, %v3651_v24 }
 0xc10   :  { %v3844_v26 = vmul.f32 0.5, %v3843_v53  ;;  %v3760_v20 = vsub.f32 %v3728_v5, %v3744_v37 }
 0xc12   :  { %v3845_v2 = vsub.f32 1.5, %v3844_v26  ;;  %v3776_v9 = vmax.f32 %v3760_v20, 0.0 }
 0xc13   :  { %v4921_v28 = vpop.eup %4920 }
 0xc14   :  { %v3846_v33 = vmul.f32 %v4919_v3, %v3845_v2  ;;  %v3854_v25 = vmul.f32 %v4921_v28, %v3826_v56  ;;  %v3827_v46 = vsel %vm3811_vm15, 0.0, %v3776_v9 }
 0xc15   :  { %4922 = vrsqrt.f32 %v3827_v46  ;;  %v3654_v21 = vpop.f32.mrf.mxu1  ;;  %vm3872_vm8 = vcmp.eq.f32.partialorder %v3827_v46, inf  ;;  %v3875_v5 = vand.u32 2147483648, %v3827_v46  ;;  %vm3874_vm9 = vcmp.eq.f32.partialorder %v3827_v46, 0.0 }
 0xc16   :  { %v3847_v31 = vmul.f32 %v3846_v33, %v3825_v48  ;;  %v3855_v45 = vmul.f32 %v4921_v28, %v3854_v25  ;;  %v3745_v23 = vmul.f32 2.0, %v3654_v21 }
 0xc18   :  { %v3849_v13 = vsel %vm3848_vm3, %v3825_v48, %v3847_v31  ;;  %v3856_v6 = vmul.f32 0.5, %v3855_v45  ;;  %v3761_v43 = vsub.f32 %v3729_v14, %v3745_v23 }
 0xc19   :  { %v3852_v32 = vsel %vm3850_vm4, %v3851_v49, %v3849_v13 }
 0xc1a   :  { %4033 = vst [vmem:[#allocation2] sm:$0xff] %v3852_v32  ;;  %v3857_v50 = vsub.f32 1.5, %v3856_v6  ;;  %v3777_v15 = vmax.f32 %v3761_v43, 0.0 }
 0xc1b   :  { %v4923_v1 = vpop.eup %4922 }
 0xc1c   :  { %v3858_v42 = vmul.f32 %v4921_v28, %v3857_v50  ;;  %v3866_v62 = vmul.f32 %v4923_v1, %v3827_v46  ;;  %v3828_v18 = vsel %vm3812_vm5, 0.0, %v3777_v15 }
 0xc1d   :  { %4924 = vrsqrt.f32 %v3828_v18  ;;  %v3657_v19 = vpop.f32.mrf.mxu1  ;;  %vm3884_vm10 = vcmp.eq.f32.partialorder %v3828_v18, inf  ;;  %v3887_v49 = vand.u32 2147483648, %v3828_v18  ;;  %vm3886_vm11 = vcmp.eq.f32.partialorder %v3828_v18, 0.0 }
 0xc1e   :  { %v3859_v40 = vmul.f32 %v3858_v42, %v3826_v56  ;;  %v3867_v12 = vmul.f32 %v4923_v1, %v3866_v62  ;;  %v3746_v29 = vmul.f32 2.0, %v3657_v19 }
 0xc20   :  { %v3861_v61 = vsel %vm3860_vm7, %v3826_v56, %v3859_v40  ;;  %v3868_v7 = vmul.f32 0.5, %v3867_v12  ;;  %v3762_v48 = vsub.f32 %v3730_v52, %v3746_v29  ;;  %v3731_v56 = vadd.f32 %v7458_v22, %v7406_v44 }
 0xc21   :  { %v3864_v4 = vsel %vm3862_vm0, %v3863_v57, %v3861_v61  ;;  %v3797_v44 = vadd.s32 48, %v7471_v55 }
 0xc22   :  { %4034 = vst [vmem:[#allocation2 + $0x8] sm:$0xff] %v3864_v4  ;;  %v3869_v41 = vsub.f32 1.5, %v3868_v7  ;;  %v3778_v47 = vmax.f32 %v3762_v48, 0.0 }
 0xc23   :  { %v4925_v34 = vpop.eup %4924  ;;  %vm3815_vm12 = vcmp.eq.s32.totalorder %v3797_v44, %v7473_v63 }
 0xc24   :  { %v3870_v17 = vmul.f32 %v4923_v1, %v3869_v41  ;;  %v3878_v59 = vmul.f32 %v4925_v34, %v3828_v18  ;;  %v3829_v3 = vsel %vm3813_vm6, 0.0, %v3778_v47 }
 0xc25   :  { %4926 = vrsqrt.f32 %v3829_v3  ;;  %v3660_v30 = vpop.f32.mrf.mxu1  ;;  %vm3896_vm14 = vcmp.eq.f32.partialorder %v3829_v3, inf  ;;  %v3899_v29 = vand.u32 2147483648, %v3829_v3  ;;  %vm3898_vm13 = vcmp.eq.f32.partialorder %v3829_v3, 0.0 }
 0xc26   :  { %v3871_v24 = vmul.f32 %v3870_v17, %v3827_v46  ;;  %v3879_v38 = vmul.f32 %v4925_v34, %v3878_v59  ;;  %v3747_v53 = vmul.f32 2.0, %v3660_v30 }
 0xc28   :  { %v3873_v37 = vsel %vm3872_vm8, %v3827_v46, %v3871_v24  ;;  %v3880_v26 = vmul.f32 0.5, %v3879_v38  ;;  %v3763_v20 = vsub.f32 %v3731_v56, %v3747_v53  ;;  %v3732_v46 = vadd.f32 %v7458_v22, %v7411_v60 }
 0xc29   :  { %v3876_v2 = vsel %vm3874_vm9, %v3875_v5, %v3873_v37  ;;  %v3798_v60 = vadd.s32 56, %v7471_v55 }
 0xc2a   :  { %4035 = vst [vmem:[#allocation2 + $0x10] sm:$0xff] %v3876_v2  ;;  %v3881_v9 = vsub.f32 1.5, %v3880_v26  ;;  %v3779_v28 = vmax.f32 %v3763_v20, 0.0 }
 0xc2b   :  { %v4927_v33 = vpop.eup %4926  ;;  %vm3816_vm1 = vcmp.eq.s32.totalorder %v3798_v60, %v7473_v63 }
 0xc2c   :  { %v3882_v25 = vmul.f32 %v4925_v34, %v3881_v9  ;;  %v3890_v21 = vmul.f32 %v4927_v33, %v3829_v3  ;;  %v3830_v51 = vsel %vm3814_vm2, 0.0, %v3779_v28 }
 0xc2d   :  { %4928 = vrsqrt.f32 %v3830_v51  ;;  %v3663_v31 = vpop.f32.mrf.mxu1  ;;  %vm3908_vm15 = vcmp.eq.f32.partialorder %v3830_v51, inf  ;;  %v3911_v56 = vand.u32 2147483648, %v3830_v51  ;;  %vm3910_vm3 = vcmp.eq.f32.partialorder %v3830_v51, 0.0 }
 0xc2e   :  { %v3883_v45 = vmul.f32 %v3882_v25, %v3828_v18  ;;  %v3891_v14 = vmul.f32 %v4927_v33, %v3890_v21  ;;  %v3748_v23 = vmul.f32 2.0, %v3663_v31 }
 0xc30   :  { %v3885_v13 = vsel %vm3884_vm10, %v3828_v18, %v3883_v45  ;;  %v3892_v6 = vmul.f32 0.5, %v3891_v14  ;;  %v3764_v43 = vsub.f32 %v3732_v46, %v3748_v23  ;;  %v3733_v18 = vadd.f32 %v7458_v22, %v7416_v54 }
 0xc31   :  { %v3888_v32 = vsel %vm3886_vm11, %v3887_v49, %v3885_v13  ;;  %v3799_v54 = vadd.s32 64, %v7471_v55 }
 0xc32   :  { %4036 = vst [vmem:[#allocation2 + $0x18] sm:$0xff] %v3888_v32  ;;  %v3893_v50 = vsub.f32 1.5, %v3892_v6  ;;  %v3780_v15 = vmax.f32 %v3764_v43, 0.0 }
 0xc33   :  { %v4929_v1 = vpop.eup %4928  ;;  %vm3817_vm4 = vcmp.eq.s32.totalorder %v3799_v54, %v7473_v63 }
 0xc34   :  { %v3894_v42 = vmul.f32 %v4927_v33, %v3893_v50  ;;  %v3902_v62 = vmul.f32 %v4929_v1, %v3830_v51  ;;  %v3831_v19 = vsel %vm3815_vm12, 0.0, %v3780_v15 }
 0xc35   :  { %4930 = vrsqrt.f32 %v3831_v19  ;;  %v3666_v10 = vpop.f32.mrf.mxu1  ;;  %vm3920_vm5 = vcmp.eq.f32.partialorder %v3831_v19, inf  ;;  %v3923_v14 = vand.u32 2147483648, %v3831_v19  ;;  %vm3922_vm7 = vcmp.eq.f32.partialorder %v3831_v19, 0.0 }
 0xc36   :  { %v3895_v40 = vmul.f32 %v3894_v42, %v3829_v3  ;;  %v3903_v12 = vmul.f32 %v4929_v1, %v3902_v62  ;;  %v3749_v52 = vmul.f32 2.0, %v3666_v10 }
 0xc38   :  { %v3897_v57 = vsel %vm3896_vm14, %v3829_v3, %v3895_v40  ;;  %v3904_v61 = vmul.f32 0.5, %v3903_v12  ;;  %v3765_v7 = vsub.f32 %v3733_v18, %v3749_v52  ;;  %v3734_v3 = vadd.f32 %v7458_v22, %v7421_v16 }
 0xc39   :  { %v3900_v48 = vsel %vm3898_vm13, %v3899_v29, %v3897_v57  ;;  %v3800_v16 = vadd.s32 72, %v7471_v55 }
 0xc3a   :  { %4037 = vst [vmem:[#allocation2 + $0x20] sm:$0xff] %v3900_v48  ;;  %v3905_v4 = vsub.f32 1.5, %v3904_v61  ;;  %v3781_v41 = vmax.f32 %v3765_v7, 0.0 }
 0xc3b   :  { %v4931_v47 = vpop.eup %4930  ;;  %vm3818_vm0 = vcmp.eq.s32.totalorder %v3800_v16, %v7473_v63 }
 0xc3c   :  { %v3906_v34 = vmul.f32 %v4929_v1, %v3905_v4  ;;  %v3914_v17 = vmul.f32 %v4931_v47, %v3831_v19  ;;  %v3832_v59 = vsel %vm3816_vm1, 0.0, %v3781_v41 }
 0xc3d   :  { %4932 = vrsqrt.f32 %v3832_v59  ;;  %v3669_v30 = vpop.f32.mrf.mxu1  ;;  %vm3932_vm6 = vcmp.eq.f32.partialorder %v3832_v59, inf  ;;  %v3935_v40 = vand.u32 2147483648, %v3832_v59  ;;  %vm3934_vm8 = vcmp.eq.f32.partialorder %v3832_v59, 0.0 }
 0xc3e   :  { %v3907_v8 = vmul.f32 %v3906_v34, %v3830_v51  ;;  %v3915_v24 = vmul.f32 %v4931_v47, %v3914_v17  ;;  %v3750_v38 = vmul.f32 2.0, %v3669_v30 }
 0xc40   :  { %v3909_v53 = vsel %vm3908_vm15, %v3830_v51, %v3907_v8  ;;  %v3916_v5 = vmul.f32 0.5, %v3915_v24  ;;  %v3766_v37 = vsub.f32 %v3734_v3, %v3750_v38  ;;  %v3735_v51 = vadd.f32 %v7458_v22, %v7426_v35 }
 0xc41   :  { %v3912_v26 = vsel %vm3910_vm3, %v3911_v56, %v3909_v53  ;;  %v3801_v35 = vadd.s32 80, %v7471_v55 }
 0xc42   :  { %4038 = vst [vmem:[#allocation2 + $0x28] sm:$0xff] %v3912_v26  ;;  %v3917_v20 = vsub.f32 1.5, %v3916_v5  ;;  %v3782_v2 = vmax.f32 %v3766_v37, 0.0 }
 0xc43   :  { %v4933_v9 = vpop.eup %4932  ;;  %vm3819_vm9 = vcmp.eq.s32.totalorder %v3801_v35, %v7473_v63 }
 0xc44   :  { %v3918_v28 = vmul.f32 %v4931_v47, %v3917_v20  ;;  %v3926_v33 = vmul.f32 %v4933_v9, %v3832_v59  ;;  %v3833_v25 = vsel %vm3817_vm4, 0.0, %v3782_v2 }
 0xc45   :  { %4934 = vrsqrt.f32 %v3833_v25  ;;  %v3672_v21 = vpop.f32.mrf.mxu1  ;;  %vm3944_vm2 = vcmp.eq.f32.partialorder %v3833_v25, inf  ;;  %v3947_v54 = vand.u32 2147483648, %v3833_v25  ;;  %vm3946_vm10 = vcmp.eq.f32.partialorder %v3833_v25, 0.0 }
 0xc46   :  { %v3919_v31 = vmul.f32 %v3918_v28, %v3831_v19  ;;  %v3927_v44 = vmul.f32 %v4933_v9, %v3926_v33  ;;  %v3751_v45 = vmul.f32 2.0, %v3672_v21  ;;  %v3738_v33 = vadd.f32 %v7458_v22, %v7441_v11 }
 0xc47   :  { %v3804_v11 = vadd.s32 104, %v7471_v55 }
 0xc48   :  { %v3921_v46 = vsel %vm3920_vm5, %v3831_v19, %v3919_v31  ;;  %v3928_v23 = vmul.f32 0.5, %v3927_v44  ;;  %v3767_v49 = vsub.f32 %v3735_v51, %v3751_v45  ;;  %v3736_v19 = vadd.f32 %v7458_v22, %v7431_v36 }
 0xc49   :  { %v3924_v13 = vsel %vm3922_vm7, %v3923_v14, %v3921_v46  ;;  %v3802_v36 = vadd.s32 88, %v7471_v55  ;;  %vm3822_vm3 = vcmp.eq.s32.totalorder %v3804_v11, %v7473_v63 }
 0xc4a   :  { %4039 = vst [vmem:[#allocation2 + $0x30] sm:$0xff] %v3924_v13  ;;  %v3929_v6 = vsub.f32 1.5, %v3928_v23  ;;  %v3783_v43 = vmax.f32 %v3767_v49, 0.0 }
 0xc4b   :  { %v4935_v32 = vpop.eup %4934  ;;  %vm3820_vm11 = vcmp.eq.s32.totalorder %v3802_v36, %v7473_v63 }
 0xc4c   :  { %v3930_v50 = vmul.f32 %v4933_v9, %v3929_v6  ;;  %v3938_v15 = vmul.f32 %v4935_v32, %v3833_v25  ;;  %v3834_v1 = vsel %vm3818_vm0, 0.0, %v3783_v43 }
 0xc4d   :  { %4936 = vrsqrt.f32 %v3834_v1  ;;  %v3675_v42 = vpop.f32.mrf.mxu1  ;;  %vm3956_vm12 = vcmp.eq.f32.partialorder %v3834_v1, inf  ;;  %v3959_v21 = vand.u32 2147483648, %v3834_v1  ;;  %vm3958_vm14 = vcmp.eq.f32.partialorder %v3834_v1, 0.0 }
 0xc4e   :  { %v3931_v62 = vmul.f32 %v3930_v50, %v3832_v59  ;;  %v3939_v10 = vmul.f32 %v4935_v32, %v3938_v15  ;;  %v3752_v60 = vmul.f32 2.0, %v3675_v42 }
 0xc50   :  { %v3933_v12 = vsel %vm3932_vm6, %v3832_v59, %v3931_v62  ;;  %v3940_v18 = vmul.f32 0.5, %v3939_v10  ;;  %v3768_v52 = vsub.f32 %v3736_v19, %v3752_v60  ;;  %v3737_v59 = vadd.f32 %v7458_v22, %v7436_v0 }
 0xc51   :  { %v3936_v29 = vsel %vm3934_vm8, %v3935_v40, %v3933_v12  ;;  %v3803_v0 = vadd.s32 96, %v7471_v55 }
 0xc52   :  { %4040 = vst [vmem:[#allocation2 + $0x38] sm:$0xff] %v3936_v29  ;;  %v3941_v57 = vsub.f32 1.5, %v3940_v18  ;;  %v3784_v61 = vmax.f32 %v3768_v52, 0.0  ;;  %v3805_v52 = vadd.s32 112, %v7471_v55 }
 0xc53   :  { %v4937_v7 = vpop.eup %4936  ;;  %vm3821_vm13 = vcmp.eq.s32.totalorder %v3803_v0, %v7473_v63 }
 0xc54   :  { %v3942_v48 = vmul.f32 %v4935_v32, %v3941_v57  ;;  %v3950_v4 = vmul.f32 %v4937_v7, %v3834_v1  ;;  %v3835_v41 = vsel %vm3819_vm9, 0.0, %v3784_v61  ;;  %vm3823_vm7 = vcmp.eq.s32.totalorder %v3805_v52, %v7473_v63 }
 0xc55   :  { %4938 = vrsqrt.f32 %v3835_v41  ;;  %v3678_v47 = vpop.f32.mrf.mxu1  ;;  %vm3968_vm1 = vcmp.eq.f32.partialorder %v3835_v41, inf  ;;  %v3971_v50 = vand.u32 2147483648, %v3835_v41  ;;  %vm3970_vm15 = vcmp.eq.f32.partialorder %v3835_v41, 0.0 }
 0xc56   :  { %v3943_v34 = vmul.f32 %v3942_v48, %v3833_v25  ;;  %v3951_v17 = vmul.f32 %v4937_v7, %v3950_v4  ;;  %v3753_v30 = vmul.f32 2.0, %v3678_v47 }
 0xc58   :  { %v3945_v8 = vsel %vm3944_vm2, %v3833_v25, %v3943_v34  ;;  %v3952_v24 = vmul.f32 0.5, %v3951_v17  ;;  %v3769_v3 = vsub.f32 %v3737_v59, %v3753_v30 }
 0xc59   :  { %v3948_v38 = vsel %vm3946_vm10, %v3947_v54, %v3945_v8  ;;  %v3806_v8 = vadd.s32 120, %v7471_v55 }
 0xc5a   :  { %4041 = vst [vmem:[#allocation2 + $0x40] sm:$0xff] %v3948_v38  ;;  %v3953_v56 = vsub.f32 1.5, %v3952_v24  ;;  %v3785_v53 = vmax.f32 %v3769_v3, 0.0 }
 0xc5b   :  { %v4939_v5 = vpop.eup %4938  ;;  %vm3824_vm8 = vcmp.eq.s32.totalorder %v3806_v8, %v7473_v63 }
 0xc5c   :  { %v3954_v37 = vmul.f32 %v4937_v7, %v3953_v56  ;;  %v3962_v26 = vmul.f32 %v4939_v5, %v3835_v41  ;;  %v3836_v20 = vsel %vm3820_vm11, 0.0, %v3785_v53 }
 0xc5d   :  { %4940 = vrsqrt.f32 %v3836_v20  ;;  %v3681_v2 = vpop.f32.mrf.mxu1  ;;  %vm3980_vm4 = vcmp.eq.f32.partialorder %v3836_v20, inf  ;;  %v3983_v7 = vand.u32 2147483648, %v3836_v20  ;;  %vm3982_vm5 = vcmp.eq.f32.partialorder %v3836_v20, 0.0 }
 0xc5e   :  { %v3955_v9 = vmul.f32 %v3954_v37, %v3834_v1  ;;  %v3963_v28 = vmul.f32 %v4939_v5, %v3962_v26  ;;  %v3754_v25 = vmul.f32 2.0, %v3681_v2 }
 0xc60   :  { %v3957_v16 = vsel %vm3956_vm12, %v3834_v1, %v3955_v9  ;;  %v3964_v31 = vmul.f32 0.5, %v3963_v28  ;;  %v3770_v44 = vsub.f32 %v3738_v33, %v3754_v25 }
 0xc61   :  { %v3960_v51 = vsel %vm3958_vm14, %v3959_v21, %v3957_v16 }
 0xc62   :  { %4042 = vst [vmem:[#allocation2 + $0x48] sm:$0xff] %v3960_v51  ;;  %v3965_v45 = vsub.f32 1.5, %v3964_v31  ;;  %v3786_v14 = vmax.f32 %v3770_v44, 0.0 }
 0xc63   :  { %v4941_v46 = vpop.eup %4940 }
 0xc64   :  { %v3966_v23 = vmul.f32 %v4939_v5, %v3965_v45  ;;  %v3974_v49 = vmul.f32 %v4941_v46, %v3836_v20  ;;  %v3837_v13 = vsel %vm3821_vm13, 0.0, %v3786_v14 }
 0xc65   :  { %4942 = vrsqrt.f32 %v3837_v13  ;;  %v3684_v6 = vpop.f32.mrf.mxu1  ;;  %vm3992_vm0 = vcmp.eq.f32.partialorder %v3837_v13, inf  ;;  %v3995_v56 = vand.u32 2147483648, %v3837_v13  ;;  %vm3994_vm6 = vcmp.eq.f32.partialorder %v3837_v13, 0.0 }
 0xc66   :  { %v3967_v22 = vmul.f32 %v3966_v23, %v3835_v41  ;;  %v3975_v43 = vmul.f32 %v4941_v46, %v3974_v49  ;;  %v3755_v32 = vmul.f32 2.0, %v3684_v6 }
 0xc68   :  { %v3969_v15 = vsel %vm3968_vm1, %v3835_v41, %v3967_v22  ;;  %v3976_v1 = vmul.f32 0.5, %v3975_v43  ;;  %v3771_v42 = vsub.f32 %v7463_v39, %v3755_v32 }
 0xc69   :  { %v3972_v35 = vsel %vm3970_vm15, %v3971_v50, %v3969_v15 }
 0xc6a   :  { %4043 = vst [vmem:[#allocation2 + $0x50] sm:$0xff] %v3972_v35  ;;  %v3977_v62 = vsub.f32 1.5, %v3976_v1  ;;  %v3787_v10 = vmax.f32 %v3771_v42, 0.0 }
 0xc6b   :  { %v4943_v19 = vpop.eup %4942 }
 0xc6c   :  { %v3978_v60 = vmul.f32 %v4941_v46, %v3977_v62  ;;  %v3986_v40 = vmul.f32 %v4943_v19, %v3837_v13  ;;  %v3838_v12 = vsel %vm3822_vm3, 0.0, %v3787_v10 }
 0xc6d   :  { %4944 = vrsqrt.f32 %v3838_v12  ;;  %v3687_v18 = vpop.f32.mrf.mxu1  ;;  %vm4004_vm9 = vcmp.eq.f32.partialorder %v3838_v12, inf  ;;  %v4007_v25 = vand.u32 2147483648, %v3838_v12  ;;  %vm4006_vm2 = vcmp.eq.f32.partialorder %v3838_v12, 0.0 }
 0xc6e   :  { %v3979_v29 = vmul.f32 %v3978_v60, %v3836_v20  ;;  %v3987_v57 = vmul.f32 %v4943_v19, %v3986_v40  ;;  %v3756_v61 = vmul.f32 2.0, %v3687_v18 }
 0xc70   :  { %v3981_v39 = vsel %vm3980_vm4, %v3836_v20, %v3979_v29  ;;  %v3988_v48 = vmul.f32 0.5, %v3987_v57  ;;  %v3772_v4 = vsub.f32 %v7466_v58, %v3756_v61 }
 0xc71   :  { %v3984_v41 = vsel %vm3982_vm5, %v3983_v7, %v3981_v39 }
 0xc72   :  { %4044 = vst [vmem:[#allocation2 + $0x58] sm:$0xff] %v3984_v41  ;;  %v3989_v47 = vsub.f32 1.5, %v3988_v48  ;;  %v3788_v36 = vmax.f32 %v3772_v4, 0.0 }
 0xc73   :  { %v4945_v34 = vpop.eup %4944 }
 0xc74   :  { %v3990_v17 = vmul.f32 %v4943_v19, %v3989_v47  ;;  %v3998_v59 = vmul.f32 %v4945_v34, %v3838_v12  ;;  %v3839_v30 = vsel %vm3823_vm7, 0.0, %v3788_v36 }
 0xc75   :  { %4946 = vrsqrt.f32 %v3839_v30  ;;  %v3690_v54 = vpop.f32.mrf.mxu1  ;;  %vm4016_vm10 = vcmp.eq.f32.partialorder %v3839_v30, inf  ;;  %v4019_v46 = vand.u32 2147483648, %v3839_v30  ;;  %vm4018_vm11 = vcmp.eq.f32.partialorder %v3839_v30, 0.0 }
 0xc76   :  { %v3991_v24 = vmul.f32 %v3990_v17, %v3837_v13  ;;  %v3999_v3 = vmul.f32 %v4945_v34, %v3998_v59  ;;  %v3757_v38 = vmul.f32 2.0, %v3690_v54 }
 0xc78   :  { %v3993_v58 = vsel %vm3992_vm0, %v3837_v13, %v3991_v24  ;;  %v4000_v53 = vmul.f32 0.5, %v3999_v3  ;;  %v3773_v5 = vsub.f32 %v7469_v27, %v3757_v38 }
 0xc79   :  { %v3996_v37 = vsel %vm3994_vm6, %v3995_v56, %v3993_v58 }
 0xc7a   :  { %4045 = vst [vmem:[#allocation2 + $0x60] sm:$0xff] %v3996_v37  ;;  %v4001_v26 = vsub.f32 1.5, %v4000_v53  ;;  %v3789_v20 = vmax.f32 %v3773_v5, 0.0 }
 0xc7b   :  { %v4947_v2 = vpop.eup %4946 }
 0xc7c   :  { %v4002_v0 = vmul.f32 %v4945_v34, %v4001_v26  ;;  %v4010_v9 = vmul.f32 %v4947_v2, %v3839_v30  ;;  %v3840_v55 = vsel %vm3824_vm8, 0.0, %v3789_v20 }
 0xc7d   :  { %4948 = vrsqrt.f32 %v3840_v55  ;;  %vm4028_vm12 = vcmp.eq.f32.partialorder %v3840_v55, inf  ;;  %v4031_v43 = vand.u32 2147483648, %v3840_v55  ;;  %vm4030_vm14 = vcmp.eq.f32.partialorder %v3840_v55, 0.0 }
 0xc7e   :  { %v4003_v28 = vmul.f32 %v4002_v0, %v3838_v12  ;;  %v4011_v33 = vmul.f32 %v4947_v2, %v4010_v9 }
 0xc80   :  { %v4005_v21 = vsel %vm4004_vm9, %v3838_v12, %v4003_v28  ;;  %v4012_v16 = vmul.f32 0.5, %v4011_v33 }
 0xc81   :  { %v4008_v31 = vsel %vm4006_vm2, %v4007_v25, %v4005_v21 }
 0xc82   :  { %4046 = vst [vmem:[#allocation2 + $0x68] sm:$0xff] %v4008_v31  ;;  %v4013_v27 = vsub.f32 1.5, %v4012_v16 }
 0xc83   :  { %v4949_v44 = vpop.eup %4948 }
 0xc84   :  { %v4014_v63 = vmul.f32 %v4947_v2, %v4013_v27  ;;  %v4022_v51 = vmul.f32 %v4949_v44, %v3840_v55 }
 0xc86   :  { %v4015_v45 = vmul.f32 %v4014_v63, %v3839_v30  ;;  %v4023_v14 = vmul.f32 %v4949_v44, %v4022_v51 }
 0xc88   :  { %v4017_v23 = vsel %vm4016_vm10, %v3839_v30, %v4015_v45  ;;  %v4024_v49 = vmul.f32 0.5, %v4023_v14 }
 0xc89   :  { %v4020_v13 = vsel %vm4018_vm11, %v4019_v46, %v4017_v23 }
 0xc8a   :  { %4047 = vst [vmem:[#allocation2 + $0x70] sm:$0xff] %v4020_v13  ;;  %v4025_v6 = vsub.f32 1.5, %v4024_v49 }
 0xc8c   :  { %v4026_v11 = vmul.f32 %v4949_v44, %v4025_v6 }
 0xc8e   :  { %v4027_v22 = vmul.f32 %v4026_v11, %v3840_v55 }
 0xc90   :  { %v4029_v32 = vsel %vm4028_vm12, %v3840_v55, %v4027_v22 }
 0xc91   :  { %v4032_v50 = vsel %vm4030_vm14, %v4031_v43, %v4029_v32 }
 0xc92   :  { %4048 = vst [vmem:[#allocation2 + $0x78] sm:$0xff] %v4032_v50 }
 0xc93   :  { %4061 = dma.vmem_to_hbm [thread:$0]  %s4054_s3, 2048, %s4056_s6, [#allocation3], %s4983_s7, %s4983_s7, %s4984_s9  }
 0xc94   :  { %4974 = dma.done.wait [#allocation3], 2048  }
 0xc95   :  { %4975 = vsyncadd [#allocation3], 4294965248 }
 0xc96   :  { %4066 = vsyncpa [#allocation3], 1 }

</bundles_post_ra>
